<compile_context>
chip_gen: v5e
topology: v5e:2x2
jax: 0.10.0
libtpu: 0.0.40
codegen_flags: <defaults>
</compile_context>

<pallas_src>
import functools

import jax
import jax.numpy as jnp
from jax.experimental import pallas as pl
from jax.experimental.pallas import tpu as pltpu


def _round_up(n: int, m: int) -> int:
    return ((n + m - 1) // m) * m


def idec_kernel(
    # inputs
    x_ref,
    we1, be1, we2, be2, we3, be3, we4, be4,   # encoder
    wd1, bd1, wd2, bd2, wd3, bd3, wd4, bd4,   # decoder
    mu_t_ref,                                 # cluster centers, pre-transposed (latent, K_pad)
    # outputs
    c_ref, recon_ref,
    *, alpha: float, n_clusters: int, matmul_dtype,
):
    x = x_ref[...]

    def linear(h, w_ref, b_ref, relu):
        w = w_ref[...]
        if matmul_dtype != jnp.float32:
            h = h.astype(matmul_dtype)
            w = w.astype(matmul_dtype)
        y = jnp.dot(h, w, preferred_element_type=jnp.float32) + b_ref[...]
        return jnp.maximum(y, 0.0) if relu else y

    # ---- encoder (ReLU on hidden layers, linear latent) ----
    h = linear(x, we1, be1, relu=True)
    h = linear(h, we2, be2, relu=True)
    h = linear(h, we3, be3, relu=True)
    z = linear(h, we4, be4, relu=False)          # feat_encode  (bm, latent), f32

    # ---- decoder (ReLU on hidden layers, linear reconstruction) ----
    d = linear(z, wd1, bd1, relu=True)
    d = linear(d, wd2, bd2, relu=True)
    d = linear(d, wd3, bd3, relu=True)
    recon_ref[...] = linear(d, wd4, bd4, relu=False).astype(recon_ref.dtype)

    # ---- clustering layer: Student's t-distribution soft assignment ----
    # q_ij = (1 + ||z_i - mu_j||^2 / alpha)^(-(alpha+1)/2),  normalized over j.
    # mu comes in pre-transposed (latent, K_pad): no in-kernel transpose.
    # Distance math kept in f32 regardless of matmul_dtype (cancellation safety).
    mu_t = mu_t_ref[...].astype(jnp.float32)                      # (L, K_pad)
    cross = jnp.dot(z, mu_t, preferred_element_type=jnp.float32)  # (bm, K_pad)
    z_sq = jnp.sum(z * z, axis=-1, keepdims=True)                 # (bm, 1)
    mu_sq = jnp.sum(mu_t * mu_t, axis=0, keepdims=True)           # (1, K_pad)
    dist = jnp.maximum(z_sq + mu_sq - 2.0 * cross, 0.0)

    q = 1.0 / (1.0 + dist / alpha)
    if alpha != 1.0:  # power is 1 when alpha == 1 (default)
        q = jnp.exp(((alpha + 1.0) / 2.0) * jnp.log(q))
    # zero out the padded cluster columns so they don't pollute the row sum
    col = jax.lax.broadcasted_iota(jnp.int32, q.shape, 1)
    q = jnp.where(col < n_clusters, q, 0.0)
    # exact f32 normalization (approx reciprocal was not accurate enough for
    # the probability-sum contract; this divide is negligible vs. the matmuls)
    q = q / jnp.sum(q, axis=-1, keepdims=True)
    c_ref[...] = q.astype(c_ref.dtype)


def idec_forward(x, params, *, n_clusters, alpha=1.0, bm=128,
                 matmul_dtype=jnp.float32):
    """x: (B, in_dim) float32. Returns (c, recon_x) like IDEC.forward."""
    B, in_dim = x.shape
    (we1, be1, we2, be2, we3, be3, we4, be4,
     wd1, bd1, wd2, bd2, wd3, bd3, wd4, bd4, mu) = params

    # ---- host-side layout prep: lane-dense, tile-aligned blocks ----
    if B < bm:
        bm = _round_up(B, 8)
    B_pad = _round_up(B, bm)
    in_dim_p = _round_up(in_dim, 128)
    k_pad = _round_up(n_clusters, 128)

    x_p = jnp.pad(x, ((0, B_pad - B), (0, in_dim_p - in_dim)))
    we1_p = jnp.pad(we1, ((0, in_dim_p - in_dim), (0, 0)))   # zero rows: no effect
    wd4_p = jnp.pad(wd4, ((0, 0), (0, in_dim_p - in_dim)))   # zero output cols
    bd4_p = jnp.pad(bd4, ((0, 0), (0, in_dim_p - in_dim)))
    # pre-transpose cluster centers once on host: (K, L) -> (L, K_pad)
    mu_t = jnp.pad(mu.T, ((0, 0), (0, k_pad - n_clusters)))

    args = (x_p, we1_p, be1, we2, be2, we3, be3, we4, be4,
            wd1, bd1, wd2, bd2, wd3, bd3, wd4_p, bd4_p, mu_t)

    def rep_spec(shape):
        # full-array (replicated) block for weights / biases / centers
        return pl.BlockSpec(shape, lambda i: (0, 0))

    in_specs = [pl.BlockSpec((bm, in_dim_p), lambda i: (i, 0))]
    for p in args[1:]:
        in_specs.append(rep_spec(p.shape))

    out_specs = (
        pl.BlockSpec((bm, k_pad), lambda i: (i, 0)),
        pl.BlockSpec((bm, in_dim_p), lambda i: (i, 0)),
    )
    out_shape = (
        jax.ShapeDtypeStruct((B_pad, k_pad), jnp.float32),
        jax.ShapeDtypeStruct((B_pad, in_dim_p), jnp.float32),
    )

    kernel = functools.partial(idec_kernel, alpha=alpha,
                               n_clusters=n_clusters, matmul_dtype=matmul_dtype)
    c_full, recon_full = pl.pallas_call(
        kernel,
        grid=(B_pad // bm,),
        in_specs=in_specs,
        out_specs=out_specs,
        out_shape=out_shape,
        compiler_params=pltpu.CompilerParams(
            dimension_semantics=("parallel",),
            vmem_limit_bytes=48 * 1024 * 1024),
    )(*args)

    # slice off lane/batch padding
    return c_full[:B, :n_clusters], recon_full[:B, :in_dim]


def init_params(key, in_dim, h1, h2, h3, latent, n_clusters):
    """Deterministic synthetic parameters (shapes mirror the DEC/IDEC stacked AE)."""
    dims_enc = [(in_dim, h1), (h1, h2), (h2, h3), (h3, latent)]
    dims_dec = [(latent, h3), (h3, h2), (h2, h1), (h1, in_dim)]
    params = []
    keys = jax.random.split(key, 2 * (len(dims_enc) + len(dims_dec)) + 1)
    ki = 0
    for (di, do) in dims_enc + dims_dec:
        w = 0.1 * jax.random.normal(keys[ki], (di, do), dtype=jnp.float32); ki += 1
        b = 0.1 * jax.random.normal(keys[ki], (1, do), dtype=jnp.float32);  ki += 1
        params += [w, b]
    # cluster centers (would come from KMeans in init_pretrain; synthetic here)
    mu = jax.random.normal(keys[ki], (n_clusters, latent), dtype=jnp.float32)
    params.append(mu)
    return tuple(params)


def idec_reference(x, params, *, alpha=1.0):
    """Plain-JAX reference of the same forward (for sanity check)."""
    (we1, be1, we2, be2, we3, be3, we4, be4,
     wd1, bd1, wd2, bd2, wd3, bd3, wd4, bd4, mu) = params
    relu = lambda v: jnp.maximum(v, 0.0)
    h = relu(x @ we1 + be1); h = relu(h @ we2 + be2); h = relu(h @ we3 + be3)
    z = h @ we4 + be4
    d = relu(z @ wd1 + bd1); d = relu(d @ wd2 + bd2); d = relu(d @ wd3 + bd3)
    recon = d @ wd4 + bd4
    dist = jnp.sum((z[:, None, :] - mu[None, :, :]) ** 2, axis=-1)
    q = 1.0 / (1.0 + dist / alpha)
    q = q ** ((alpha + 1.0) / 2.0)
    q = q / jnp.sum(q, axis=1, keepdims=True)
    return q, recon


if __name__ == "__main__":
    # Small synthetic shapes consistent with the flattened-image forward
    # (in_dim = 14*14 = 196 exercises the lane-padding path; B=200 exercises
    #  the batch-padding path; bm=128 -> grid of 2).
    B, in_dim = 200, 196
    h1, h2, h3, latent = 128, 128, 64, 16
    n_clusters, alpha = 10, 1.0

    key = jax.random.PRNGKey(0)
    kx, kp = jax.random.split(key)
    x = jax.random.normal(kx, (B, in_dim), dtype=jnp.float32)
    params = init_params(kp, in_dim, h1, h2, h3, latent, n_clusters)

    # --- f32 matmul path (strict correctness check) ---
    c, recon = idec_forward(x, params, n_clusters=n_clusters, alpha=alpha, bm=128)
    jax.block_until_ready((c, recon))

    c_ref, recon_ref = idec_reference(x, params, alpha=alpha)
    assert c.shape == (B, n_clusters) and recon.shape == (B, in_dim)
    assert jnp.allclose(recon, recon_ref, atol=1e-4, rtol=1e-4)
    assert jnp.allclose(c, c_ref, atol=1e-4, rtol=1e-4)
    # rows of c are probability distributions over clusters (exact normalization)
    assert jnp.allclose(jnp.sum(c, axis=1), 1.0, atol=1e-4)

    # --- bf16 matmul path (v6e/v7x MXU-peak option); loose sanity check only ---
    c_bf, recon_bf = idec_forward(x, params, n_clusters=n_clusters, alpha=alpha,
                                  bm=128, matmul_dtype=jnp.bfloat16)
    jax.block_until_ready((c_bf, recon_bf))
    assert c_bf.shape == (B, n_clusters) and recon_bf.shape == (B, in_dim)
    assert bool(jnp.all(jnp.isfinite(c_bf))) and bool(jnp.all(jnp.isfinite(recon_bf)))
    assert jnp.allclose(jnp.sum(c_bf, axis=1), 1.0, atol=1e-3)

    print("KERNEL_OK")
</pallas_src>

<mosaic_0001>
module attributes {stable_mosaic.version = 11 : i64} {
  func.func @idec_kernel(%arg0: i32, %arg1: memref<128x256xf32, #tpu.memory_space<vmem>>, %arg2: memref<256x128xf32, #tpu.memory_space<vmem>>, %arg3: memref<1x128xf32, #tpu.memory_space<vmem>>, %arg4: memref<128x128xf32, #tpu.memory_space<vmem>>, %arg5: memref<1x128xf32, #tpu.memory_space<vmem>>, %arg6: memref<128x64xf32, #tpu.memory_space<vmem>>, %arg7: memref<1x64xf32, #tpu.memory_space<vmem>>, %arg8: memref<64x16xf32, #tpu.memory_space<vmem>>, %arg9: memref<1x16xf32, #tpu.memory_space<vmem>>, %arg10: memref<16x64xf32, #tpu.memory_space<vmem>>, %arg11: memref<1x64xf32, #tpu.memory_space<vmem>>, %arg12: memref<64x128xf32, #tpu.memory_space<vmem>>, %arg13: memref<1x128xf32, #tpu.memory_space<vmem>>, %arg14: memref<128x128xf32, #tpu.memory_space<vmem>>, %arg15: memref<1x128xf32, #tpu.memory_space<vmem>>, %arg16: memref<128x256xf32, #tpu.memory_space<vmem>>, %arg17: memref<1x256xf32, #tpu.memory_space<vmem>>, %arg18: memref<16x128xf32, #tpu.memory_space<vmem>>, %arg19: memref<128x128xf32, #tpu.memory_space<vmem>>, %arg20: memref<128x256xf32, #tpu.memory_space<vmem>>) attributes {dimension_semantics = [#tpu.dimension_semantics<parallel>], iteration_bounds = array<i64: 2>, scalar_prefetch = 0 : i64, scratch_operands = 0 : i64, tpu.core_type = #tpu.core_type<tc>, window_params = [{transform_indices = @transform_0, window_bounds = array<i64: 128, 256>}, {pipeline_mode = #tpu.pipeline_mode<synchronous>, transform_indices = @transform_1, window_bounds = array<i64: 256, 128>}, {pipeline_mode = #tpu.pipeline_mode<synchronous>, transform_indices = @transform_2, window_bounds = array<i64: 1, 128>}, {pipeline_mode = #tpu.pipeline_mode<synchronous>, transform_indices = @transform_3, window_bounds = array<i64: 128, 128>}, {pipeline_mode = #tpu.pipeline_mode<synchronous>, transform_indices = @transform_4, window_bounds = array<i64: 1, 128>}, {pipeline_mode = #tpu.pipeline_mode<synchronous>, transform_indices = @transform_5, window_bounds = array<i64: 128, 64>}, {pipeline_mode = #tpu.pipeline_mode<synchronous>, transform_indices = @transform_6, window_bounds = array<i64: 1, 64>}, {pipeline_mode = #tpu.pipeline_mode<synchronous>, transform_indices = @transform_7, window_bounds = array<i64: 64, 16>}, {pipeline_mode = #tpu.pipeline_mode<synchronous>, transform_indices = @transform_8, window_bounds = array<i64: 1, 16>}, {pipeline_mode = #tpu.pipeline_mode<synchronous>, transform_indices = @transform_9, window_bounds = array<i64: 16, 64>}, {pipeline_mode = #tpu.pipeline_mode<synchronous>, transform_indices = @transform_10, window_bounds = array<i64: 1, 64>}, {pipeline_mode = #tpu.pipeline_mode<synchronous>, transform_indices = @transform_11, window_bounds = array<i64: 64, 128>}, {pipeline_mode = #tpu.pipeline_mode<synchronous>, transform_indices = @transform_12, window_bounds = array<i64: 1, 128>}, {pipeline_mode = #tpu.pipeline_mode<synchronous>, transform_indices = @transform_13, window_bounds = array<i64: 128, 128>}, {pipeline_mode = #tpu.pipeline_mode<synchronous>, transform_indices = @transform_14, window_bounds = array<i64: 1, 128>}, {pipeline_mode = #tpu.pipeline_mode<synchronous>, transform_indices = @transform_15, window_bounds = array<i64: 128, 256>}, {pipeline_mode = #tpu.pipeline_mode<synchronous>, transform_indices = @transform_16, window_bounds = array<i64: 1, 256>}, {pipeline_mode = #tpu.pipeline_mode<synchronous>, transform_indices = @transform_17, window_bounds = array<i64: 16, 128>}, {transform_indices = @transform_18, window_bounds = array<i64: 128, 128>}, {transform_indices = @transform_19, window_bounds = array<i64: 128, 256>}]} {
    %c0 = arith.constant 0 : index
    %c0_0 = arith.constant 0 : index
    %0 = vector.load %arg1[%c0, %c0_0] : memref<128x256xf32, #tpu.memory_space<vmem>>, vector<128x256xf32>
    %c0_1 = arith.constant 0 : index
    %c0_2 = arith.constant 0 : index
    %1 = vector.load %arg2[%c0_1, %c0_2] : memref<256x128xf32, #tpu.memory_space<vmem>>, vector<256x128xf32>
    %cst = arith.constant dense<0.000000e+00> : vector<128x128xf32>
    %2 = tpu.matmul %0, %1, %cst {dimension_numbers = #tpu.dot_dimension_numbers<[1], [0], [0], [1], [0, 0, 1, 1], [], []>} : vector<128x256xf32>, vector<256x128xf32>, vector<128x128xf32> -> vector<128x128xf32>
    %c0_3 = arith.constant 0 : index
    %c0_4 = arith.constant 0 : index
    %3 = vector.load %arg3[%c0_3, %c0_4] : memref<1x128xf32, #tpu.memory_space<vmem>>, vector<1x128xf32>
    %4 = vector.broadcast %3 : vector<1x128xf32> to vector<128x128xf32>
    %5 = arith.addf %2, %4 : vector<128x128xf32>
    %cst_5 = arith.constant 0.000000e+00 : f32
    %6 = vector.broadcast %cst_5 : f32 to vector<128x128xf32>
    %7 = arith.maximumf %5, %6 : vector<128x128xf32>
    %c0_6 = arith.constant 0 : index
    %c0_7 = arith.constant 0 : index
    %8 = vector.load %arg4[%c0_6, %c0_7] : memref<128x128xf32, #tpu.memory_space<vmem>>, vector<128x128xf32>
    %cst_8 = arith.constant dense<0.000000e+00> : vector<128x128xf32>
    %9 = tpu.matmul %7, %8, %cst_8 {dimension_numbers = #tpu.dot_dimension_numbers<[1], [0], [0], [1], [0, 0, 1, 1], [], []>} : vector<128x128xf32>, vector<128x128xf32>, vector<128x128xf32> -> vector<128x128xf32>
    %c0_9 = arith.constant 0 : index
    %c0_10 = arith.constant 0 : index
    %10 = vector.load %arg5[%c0_9, %c0_10] : memref<1x128xf32, #tpu.memory_space<vmem>>, vector<1x128xf32>
    %11 = vector.broadcast %10 : vector<1x128xf32> to vector<128x128xf32>
    %12 = arith.addf %9, %11 : vector<128x128xf32>
    %cst_11 = arith.constant 0.000000e+00 : f32
    %13 = vector.broadcast %cst_11 : f32 to vector<128x128xf32>
    %14 = arith.maximumf %12, %13 : vector<128x128xf32>
    %c0_12 = arith.constant 0 : index
    %c0_13 = arith.constant 0 : index
    %15 = vector.load %arg6[%c0_12, %c0_13] : memref<128x64xf32, #tpu.memory_space<vmem>>, vector<128x64xf32>
    %cst_14 = arith.constant dense<0.000000e+00> : vector<128x64xf32>
    %16 = tpu.matmul %14, %15, %cst_14 {dimension_numbers = #tpu.dot_dimension_numbers<[1], [0], [0], [1], [0, 0, 1, 1], [], []>} : vector<128x128xf32>, vector<128x64xf32>, vector<128x64xf32> -> vector<128x64xf32>
    %c0_15 = arith.constant 0 : index
    %c0_16 = arith.constant 0 : index
    %17 = vector.load %arg7[%c0_15, %c0_16] : memref<1x64xf32, #tpu.memory_space<vmem>>, vector<1x64xf32>
    %18 = vector.broadcast %17 : vector<1x64xf32> to vector<128x64xf32>
    %19 = arith.addf %16, %18 : vector<128x64xf32>
    %cst_17 = arith.constant 0.000000e+00 : f32
    %20 = vector.broadcast %cst_17 : f32 to vector<128x64xf32>
    %21 = arith.maximumf %19, %20 : vector<128x64xf32>
    %c0_18 = arith.constant 0 : index
    %c0_19 = arith.constant 0 : index
    %22 = vector.load %arg8[%c0_18, %c0_19] : memref<64x16xf32, #tpu.memory_space<vmem>>, vector<64x16xf32>
    %cst_20 = arith.constant dense<0.000000e+00> : vector<128x16xf32>
    %23 = tpu.matmul %21, %22, %cst_20 {dimension_numbers = #tpu.dot_dimension_numbers<[1], [0], [0], [1], [0, 0, 1, 1], [], []>} : vector<128x64xf32>, vector<64x16xf32>, vector<128x16xf32> -> vector<128x16xf32>
    %c0_21 = arith.constant 0 : index
    %c0_22 = arith.constant 0 : index
    %24 = vector.load %arg9[%c0_21, %c0_22] : memref<1x16xf32, #tpu.memory_space<vmem>>, vector<1x16xf32>
    %25 = vector.broadcast %24 : vector<1x16xf32> to vector<128x16xf32>
    %26 = arith.addf %23, %25 : vector<128x16xf32>
    %c0_23 = arith.constant 0 : index
    %c0_24 = arith.constant 0 : index
    %27 = vector.load %arg10[%c0_23, %c0_24] : memref<16x64xf32, #tpu.memory_space<vmem>>, vector<16x64xf32>
    %cst_25 = arith.constant dense<0.000000e+00> : vector<128x64xf32>
    %28 = tpu.matmul %26, %27, %cst_25 {dimension_numbers = #tpu.dot_dimension_numbers<[1], [0], [0], [1], [0, 0, 1, 1], [], []>} : vector<128x16xf32>, vector<16x64xf32>, vector<128x64xf32> -> vector<128x64xf32>
    %c0_26 = arith.constant 0 : index
    %c0_27 = arith.constant 0 : index
    %29 = vector.load %arg11[%c0_26, %c0_27] : memref<1x64xf32, #tpu.memory_space<vmem>>, vector<1x64xf32>
    %30 = vector.broadcast %29 : vector<1x64xf32> to vector<128x64xf32>
    %31 = arith.addf %28, %30 : vector<128x64xf32>
    %cst_28 = arith.constant 0.000000e+00 : f32
    %32 = vector.broadcast %cst_28 : f32 to vector<128x64xf32>
    %33 = arith.maximumf %31, %32 : vector<128x64xf32>
    %c0_29 = arith.constant 0 : index
    %c0_30 = arith.constant 0 : index
    %34 = vector.load %arg12[%c0_29, %c0_30] : memref<64x128xf32, #tpu.memory_space<vmem>>, vector<64x128xf32>
    %cst_31 = arith.constant dense<0.000000e+00> : vector<128x128xf32>
    %35 = tpu.matmul %33, %34, %cst_31 {dimension_numbers = #tpu.dot_dimension_numbers<[1], [0], [0], [1], [0, 0, 1, 1], [], []>} : vector<128x64xf32>, vector<64x128xf32>, vector<128x128xf32> -> vector<128x128xf32>
    %c0_32 = arith.constant 0 : index
    %c0_33 = arith.constant 0 : index
    %36 = vector.load %arg13[%c0_32, %c0_33] : memref<1x128xf32, #tpu.memory_space<vmem>>, vector<1x128xf32>
    %37 = vector.broadcast %36 : vector<1x128xf32> to vector<128x128xf32>
    %38 = arith.addf %35, %37 : vector<128x128xf32>
    %cst_34 = arith.constant 0.000000e+00 : f32
    %39 = vector.broadcast %cst_34 : f32 to vector<128x128xf32>
    %40 = arith.maximumf %38, %39 : vector<128x128xf32>
    %c0_35 = arith.constant 0 : index
    %c0_36 = arith.constant 0 : index
    %41 = vector.load %arg14[%c0_35, %c0_36] : memref<128x128xf32, #tpu.memory_space<vmem>>, vector<128x128xf32>
    %cst_37 = arith.constant dense<0.000000e+00> : vector<128x128xf32>
    %42 = tpu.matmul %40, %41, %cst_37 {dimension_numbers = #tpu.dot_dimension_numbers<[1], [0], [0], [1], [0, 0, 1, 1], [], []>} : vector<128x128xf32>, vector<128x128xf32>, vector<128x128xf32> -> vector<128x128xf32>
    %c0_38 = arith.constant 0 : index
    %c0_39 = arith.constant 0 : index
    %43 = vector.load %arg15[%c0_38, %c0_39] : memref<1x128xf32, #tpu.memory_space<vmem>>, vector<1x128xf32>
    %44 = vector.broadcast %43 : vector<1x128xf32> to vector<128x128xf32>
    %45 = arith.addf %42, %44 : vector<128x128xf32>
    %cst_40 = arith.constant 0.000000e+00 : f32
    %46 = vector.broadcast %cst_40 : f32 to vector<128x128xf32>
    %47 = arith.maximumf %45, %46 : vector<128x128xf32>
    %c0_41 = arith.constant 0 : index
    %c0_42 = arith.constant 0 : index
    %48 = vector.load %arg16[%c0_41, %c0_42] : memref<128x256xf32, #tpu.memory_space<vmem>>, vector<128x256xf32>
    %cst_43 = arith.constant dense<0.000000e+00> : vector<128x256xf32>
    %49 = tpu.matmul %47, %48, %cst_43 {dimension_numbers = #tpu.dot_dimension_numbers<[1], [0], [0], [1], [0, 0, 1, 1], [], []>} : vector<128x128xf32>, vector<128x256xf32>, vector<128x256xf32> -> vector<128x256xf32>
    %c0_44 = arith.constant 0 : index
    %c0_45 = arith.constant 0 : index
    %50 = vector.load %arg17[%c0_44, %c0_45] : memref<1x256xf32, #tpu.memory_space<vmem>>, vector<1x256xf32>
    %51 = vector.broadcast %50 : vector<1x256xf32> to vector<128x256xf32>
    %52 = arith.addf %49, %51 : vector<128x256xf32>
    %c0_46 = arith.constant 0 : index
    %c0_47 = arith.constant 0 : index
    %53 = vector.load %arg20[%c0_46, %c0_47] : memref<128x256xf32, #tpu.memory_space<vmem>>, vector<128x256xf32>
    tpu.vector_store %arg20[%c0_46, %c0_47], %52 {strides = array<i32>} : memref<128x256xf32, #tpu.memory_space<vmem>>, vector<128x256xf32>,
    %c0_48 = arith.constant 0 : index
    %c0_49 = arith.constant 0 : index
    %54 = vector.load %arg18[%c0_48, %c0_49] : memref<16x128xf32, #tpu.memory_space<vmem>>, vector<16x128xf32>
    %cst_50 = arith.constant dense<0.000000e+00> : vector<128x128xf32>
    %55 = tpu.matmul %26, %54, %cst_50 {dimension_numbers = #tpu.dot_dimension_numbers<[1], [0], [0], [1], [0, 0, 1, 1], [], []>} : vector<128x16xf32>, vector<16x128xf32>, vector<128x128xf32> -> vector<128x128xf32>
    %56 = arith.mulf %26, %26 : vector<128x16xf32>
    %cst_51 = arith.constant dense<0.000000e+00> : vector<128xf32>
    %57 = vector.multi_reduction <add>, %56, %cst_51 [1] : vector<128x16xf32> to vector<128xf32>
    %58 = vector.shape_cast %57 : vector<128xf32> to vector<128x1xf32>
    %59 = arith.mulf %54, %54 : vector<16x128xf32>
    %cst_52 = arith.constant dense<0.000000e+00> : vector<128xf32>
    %60 = vector.multi_reduction <add>, %59, %cst_52 [0] : vector<16x128xf32> to vector<128xf32>
    %61 = vector.shape_cast %60 : vector<128xf32> to vector<1x128xf32>
    %62 = vector.broadcast %58 : vector<128x1xf32> to vector<128x128xf32>
    %63 = vector.broadcast %61 : vector<1x128xf32> to vector<128x128xf32>
    %64 = arith.addf %62, %63 : vector<128x128xf32>
    %cst_53 = arith.constant 2.000000e+00 : f32
    %65 = vector.broadcast %cst_53 : f32 to vector<128x128xf32>
    %66 = arith.mulf %65, %55 : vector<128x128xf32>
    %67 = arith.subf %64, %66 : vector<128x128xf32>
    %cst_54 = arith.constant 0.000000e+00 : f32
    %68 = vector.broadcast %cst_54 : f32 to vector<128x128xf32>
    %69 = arith.maximumf %67, %68 : vector<128x128xf32>
    %cst_55 = arith.constant 1.000000e+00 : f32
    %70 = vector.broadcast %cst_55 : f32 to vector<128x128xf32>
    %71 = arith.divf %69, %70 : vector<128x128xf32>
    %cst_56 = arith.constant 1.000000e+00 : f32
    %72 = vector.broadcast %cst_56 : f32 to vector<128x128xf32>
    %73 = arith.addf %72, %71 : vector<128x128xf32>
    %cst_57 = arith.constant 1.000000e+00 : f32
    %74 = vector.broadcast %cst_57 : f32 to vector<128x128xf32>
    %75 = arith.divf %74, %73 : vector<128x128xf32>
    %76 = tpu.iota {dimensions = array<i32: 1>} : vector<128x128xi32>
    %c10_i32 = arith.constant 10 : i32
    %77 = vector.broadcast %c10_i32 : i32 to vector<128x128xi32>
    %78 = arith.cmpi slt, %76, %77 : vector<128x128xi32>
    %cst_58 = arith.constant 0.000000e+00 : f32
    %79 = vector.broadcast %cst_58 : f32 to vector<128x128xf32>
    %80 = arith.select %78, %75, %79 : vector<128x128xi1>, vector<128x128xf32>
    %cst_59 = arith.constant dense<0.000000e+00> : vector<128xf32>
    %81 = vector.multi_reduction <add>, %80, %cst_59 [1] : vector<128x128xf32> to vector<128xf32>
    %82 = vector.shape_cast %81 : vector<128xf32> to vector<128x1xf32>
    %83 = vector.broadcast %82 : vector<128x1xf32> to vector<128x128xf32>
    %84 = arith.divf %80, %83 : vector<128x128xf32>
    %c0_60 = arith.constant 0 : index
    %c0_61 = arith.constant 0 : index
    %85 = vector.load %arg19[%c0_60, %c0_61] : memref<128x128xf32, #tpu.memory_space<vmem>>, vector<128x128xf32>
    tpu.vector_store %arg19[%c0_60, %c0_61], %84 {strides = array<i32>} : memref<128x128xf32, #tpu.memory_space<vmem>>, vector<128x128xf32>,
    return
  }
  func.func @transform_0(%arg0: i32) -> (i32, i32) {
    %c0_i32 = arith.constant 0 : i32
    %c0_i32_0 = arith.constant 0 : i32
    return %arg0, %c0_i32 : i32, i32
  }
  func.func @transform_1(%arg0: i32) -> (i32, i32) {
    %c0_i32 = arith.constant 0 : i32
    %c0_i32_0 = arith.constant 0 : i32
    %c0_i32_1 = arith.constant 0 : i32
    return %c0_i32, %c0_i32_0 : i32, i32
  }
  func.func @transform_2(%arg0: i32) -> (i32, i32) {
    %c0_i32 = arith.constant 0 : i32
    %c0_i32_0 = arith.constant 0 : i32
    %c0_i32_1 = arith.constant 0 : i32
    return %c0_i32, %c0_i32_0 : i32, i32
  }
  func.func @transform_3(%arg0: i32) -> (i32, i32) {
    %c0_i32 = arith.constant 0 : i32
    %c0_i32_0 = arith.constant 0 : i32
    %c0_i32_1 = arith.constant 0 : i32
    return %c0_i32, %c0_i32_0 : i32, i32
  }
  func.func @transform_4(%arg0: i32) -> (i32, i32) {
    %c0_i32 = arith.constant 0 : i32
    %c0_i32_0 = arith.constant 0 : i32
    %c0_i32_1 = arith.constant 0 : i32
    return %c0_i32, %c0_i32_0 : i32, i32
  }
  func.func @transform_5(%arg0: i32) -> (i32, i32) {
    %c0_i32 = arith.constant 0 : i32
    %c0_i32_0 = arith.constant 0 : i32
    %c0_i32_1 = arith.constant 0 : i32
    return %c0_i32, %c0_i32_0 : i32, i32
  }
  func.func @transform_6(%arg0: i32) -> (i32, i32) {
    %c0_i32 = arith.constant 0 : i32
    %c0_i32_0 = arith.constant 0 : i32
    %c0_i32_1 = arith.constant 0 : i32
    return %c0_i32, %c0_i32_0 : i32, i32
  }
  func.func @transform_7(%arg0: i32) -> (i32, i32) {
    %c0_i32 = arith.constant 0 : i32
    %c0_i32_0 = arith.constant 0 : i32
    %c0_i32_1 = arith.constant 0 : i32
    return %c0_i32, %c0_i32_0 : i32, i32
  }
  func.func @transform_8(%arg0: i32) -> (i32, i32) {
    %c0_i32 = arith.constant 0 : i32
    %c0_i32_0 = arith.constant 0 : i32
    %c0_i32_1 = arith.constant 0 : i32
    return %c0_i32, %c0_i32_0 : i32, i32
  }
  func.func @transform_9(%arg0: i32) -> (i32, i32) {
    %c0_i32 = arith.constant 0 : i32
    %c0_i32_0 = arith.constant 0 : i32
    %c0_i32_1 = arith.constant 0 : i32
    return %c0_i32, %c0_i32_0 : i32, i32
  }
  func.func @transform_10(%arg0: i32) -> (i32, i32) {
    %c0_i32 = arith.constant 0 : i32
    %c0_i32_0 = arith.constant 0 : i32
    %c0_i32_1 = arith.constant 0 : i32
    return %c0_i32, %c0_i32_0 : i32, i32
  }
  func.func @transform_11(%arg0: i32) -> (i32, i32) {
    %c0_i32 = arith.constant 0 : i32
    %c0_i32_0 = arith.constant 0 : i32
    %c0_i32_1 = arith.constant 0 : i32
    return %c0_i32, %c0_i32_0 : i32, i32
  }
  func.func @transform_12(%arg0: i32) -> (i32, i32) {
    %c0_i32 = arith.constant 0 : i32
    %c0_i32_0 = arith.constant 0 : i32
    %c0_i32_1 = arith.constant 0 : i32
    return %c0_i32, %c0_i32_0 : i32, i32
  }
  func.func @transform_13(%arg0: i32) -> (i32, i32) {
    %c0_i32 = arith.constant 0 : i32
    %c0_i32_0 = arith.constant 0 : i32
    %c0_i32_1 = arith.constant 0 : i32
    return %c0_i32, %c0_i32_0 : i32, i32
  }
  func.func @transform_14(%arg0: i32) -> (i32, i32) {
    %c0_i32 = arith.constant 0 : i32
    %c0_i32_0 = arith.constant 0 : i32
    %c0_i32_1 = arith.constant 0 : i32
    return %c0_i32, %c0_i32_0 : i32, i32
  }
  func.func @transform_15(%arg0: i32) -> (i32, i32) {
    %c0_i32 = arith.constant 0 : i32
    %c0_i32_0 = arith.constant 0 : i32
    %c0_i32_1 = arith.constant 0 : i32
    return %c0_i32, %c0_i32_0 : i32, i32
  }
  func.func @transform_16(%arg0: i32) -> (i32, i32) {
    %c0_i32 = arith.constant 0 : i32
    %c0_i32_0 = arith.constant 0 : i32
    %c0_i32_1 = arith.constant 0 : i32
    return %c0_i32, %c0_i32_0 : i32, i32
  }
  func.func @transform_17(%arg0: i32) -> (i32, i32) {
    %c0_i32 = arith.constant 0 : i32
    %c0_i32_0 = arith.constant 0 : i32
    %c0_i32_1 = arith.constant 0 : i32
    return %c0_i32, %c0_i32_0 : i32, i32
  }
  func.func @transform_18(%arg0: i32) -> (i32, i32) {
    %c0_i32 = arith.constant 0 : i32
    %c0_i32_0 = arith.constant 0 : i32
    return %arg0, %c0_i32 : i32, i32
  }
  func.func @transform_19(%arg0: i32) -> (i32, i32) {
    %c0_i32 = arith.constant 0 : i32
    %c0_i32_0 = arith.constant 0 : i32
    return %arg0, %c0_i32 : i32, i32
  }
}

</mosaic_0001>

<bundles_post_ra>
// kernel: tpu_custom_call.1
= control target key start
LH: loop header
LB: loop body
LE: loop exit
PB: predicated region body
PF: predicated region fallthrough
CT: control target
= control target key end

     0   :  { %s4577_s0 = inlined_call_operand.hbm [shape: f32[256,256], index: 0, kind: input, shape index: {}]   ;;  %s4578_s1 = inlined_call_operand.hbm [shape: f32[256,128], index: 1, kind: input, shape index: {}]   ;;  %s4579_s2 = inlined_call_operand.vmem [shape: f32[1,128], index: 2, kind: input, shape index: {}]   ;;  %s4580_s3 = inlined_call_operand.vmem [shape: f32[128,128], index: 3, kind: input, shape index: {}]   ;;  %s4581_s4 = inlined_call_operand.vmem [shape: f32[1,128], index: 4, kind: input, shape index: {}]   ;;  %s4582_s5 = inlined_call_operand.vmem [shape: f32[128,64], index: 5, kind: input, shape index: {}]   ;;  %s4583_s6 = inlined_call_operand.vmem [shape: f32[1,64], index: 6, kind: input, shape index: {}]   ;;  %s4584_s7 = inlined_call_operand.vmem [shape: f32[64,16], index: 7, kind: input, shape index: {}]   ;;  %s4585_s8 = inlined_call_operand.hbm [shape: f32[1,16], index: 8, kind: input, shape index: {}]   ;;  %s4586_s9 = inlined_call_operand.vmem [shape: f32[16,64], index: 9, kind: input, shape index: {}]   ;;  %s4587_s10 = inlined_call_operand.vmem [shape: f32[1,64], index: 10, kind: input, shape index: {}]   ;;  %s4588_s11 = inlined_call_operand.vmem [shape: f32[64,128], index: 11, kind: input, shape index: {}]   ;;  %s4589_s12 = inlined_call_operand.vmem [shape: f32[1,128], index: 12, kind: input, shape index: {}]   ;;  %s4590_s13 = inlined_call_operand.hbm [shape: f32[128,128], index: 13, kind: input, shape index: {}]   ;;  %s4591_s14 = inlined_call_operand.vmem [shape: f32[1,128], index: 14, kind: input, shape index: {}]   ;;  %s4592_s15 = inlined_call_operand.hbm [shape: f32[128,256], index: 15, kind: input, shape index: {}]   ;;  %s4593_s16 = inlined_call_operand.vmem [shape: f32[1,256], index: 16, kind: input, shape index: {}]   ;;  %s4594_s17 = inlined_call_operand.hbm [shape: f32[16,128], index: 17, kind: input, shape index: {}]   ;;  %s4595_s18 = inlined_call_operand.hbm [shape: f32[256,128], index: 18, kind: output, shape index: {0}]   ;;  %s4596_s19 = inlined_call_operand.hbm [shape: f32[256,256], index: 19, kind: output, shape index: {1}]  }
   0x1   :  { %4604 = sst [smem:[#allocation22_spill]] %s4577_s0 }
   0x2   :  { %4605 = sst [smem:[#allocation23_spill]] %s4578_s1 }
   0x3   :  { %4606 = sst [smem:[#allocation24_spill]] %s4579_s2 }
   0x4   :  { %4607 = sst [smem:[#allocation25_spill]] %s4580_s3 }
   0x5   :  { %4608 = sst [smem:[#allocation26_spill]] %s4585_s8 }
   0x6   :  { %4609 = sst [smem:[#allocation27_spill]] %s4587_s10 }
   0x7   :  { %4610 = sst [smem:[#allocation28_spill]] %s4589_s12 }
   0x8   :  { %4611 = sst [smem:[#allocation29_spill]] %s4590_s13 }
   0x9   :  { %4612 = sst [smem:[#allocation30_spill]] %s4591_s14 }
   0xa   :  { %4613 = sst [smem:[#allocation31_spill]] %s4592_s15 }
   0xb   :  { %4614 = sst [smem:[#allocation32_spill]] %s4593_s16 }
   0xc   :  { %4615 = sst [smem:[#allocation33_spill]] %s4594_s17 }
   0xd   :  { %4616 = sst [smem:[#allocation34_spill]] %s4595_s18 }
   0xe   :  { %4617 = sst [smem:[#allocation35_spill]] %s4596_s19 }
   0xf   :  { %25 = vsyncpa [#allocation3], 0 }
  0x10   :  { %27 = vsyncpa [#allocation3 + $0x1], 0 }
  0x11   :  { %28 = vsyncpa [#allocation6], 0 }
  0x12   :  { %29 = vsyncpa [#allocation9], 0 }
  0x13   :  { %30 = vsyncpa [#allocation12], 0 }
  0x14   :  { %31 = vsyncpa [#allocation4], 0 }
  0x15   :  { %33 = vsyncpa [#allocation4 + $0x1], 0 }
  0x16   :  { %34 = vsyncpa [#allocation15], 0 }
  0x17   :  { %36 = vsyncpa [#allocation15 + $0x1], 0  ;;  %s3532_s0 = smov 0   ;;  %s3534_s30 = smov 0  }
  0x18   :  { %s3536_s20 = smov 0   ;;  %s3538_s21 = smov 0  }
  0x19 LB: > { %s4618_s2 = sld [smem:[#allocation23_spill]]  ;;  %s3556_s24 = sadd.s32 4294967295, %s3417_s21   ;;  %s3417_s21 = sphi %s3538_s21, %s4644_s21   ;;  %s3413_s20 = sphi %s3536_s20, %s4643_s20   ;;  %s3409_s30 = sphi %s3534_s30, %s4642_s30   ;;  %s3405_s0 = sphi %s3532_s0, %s4641_s0  }
  0x1a   : > { %p2800_p0 = scmp.ge.s32.totalorder %s3417_s21, 1  ;;  %p63_p1 = scmp.eq.s32.totalorder %s3556_s24, 0 }
  0x1b   : > { %p482_p2 = scmp.lt.s32.totalorder %s3417_s21, 3  ;;  %s3419_s3 = smov [#allocation5]  }
  0x1c   : > { %s495_s26 = sshll.u32 %s3419_s3, 4  ;;  %s4620_s13 = sld [smem:[#allocation29_spill]]  ;;  %s496_s26 = int_to_ptr.vmem [resolvable:$true] %s495_s26 }
  0x1d   : > { %p3561_p3 = pnand %p2800_p0, %p482_p2  ;;  %s4622_s8 = sld [smem:[#allocation26_spill]] }
  0x1e   : > { %s3420_s18 = smov [#allocation8]   ;;  %s3421_s16 = smov 128  }
  0x1f   : > { %s493_s23 = sshll.u32 %s4618_s2, 4  ;;  %p2972_p4 = pneg %p3561_p3  ;;  %s494_s23 = int_to_ptr.hbm [resolvable:$true] %s493_s23 }
  0x20   : > { %s551_s19 = sshll.u32 %s3420_s18, 4  ;;  %s3422_s14 = smov 8   ;;  %s552_s19 = int_to_ptr.vmem [resolvable:$true] %s551_s19 }
  0x21   : > { %p3573_p6 = pnand %p2972_p4, %p63_p1  ;;  %s4623_s15 = sld [smem:[#allocation31_spill]] }
  0x22   : > { %s549_s29 = sshll.u32 %s4620_s13, 4  ;;  %s3423_s12 = smov [#allocation7]   ;;  %s550_s29 = int_to_ptr.hbm [resolvable:$true] %s549_s29 }
  0x23   : > { %s526_s3 = sshll.u32 %s4622_s8, 4  ;;  %s528_s10 = sshll.u32 %s3423_s12, 4  ;;  %s527_s3 = int_to_ptr.hbm [resolvable:$true] %s526_s3  ;;  %s529_s10 = int_to_ptr.vmem [resolvable:$true] %s528_s10 }
  0x24   : > { %2975 = dma.hbm_to_vmem [thread:$0]  (!%p3573_p6), %s494_s23, 4096, %s496_s26, [#allocation6], %s3421_s16, %s3421_s16, %s3422_s14  }
  0x25   : > { %2981 = dma.hbm_to_vmem [thread:$0]  (!%p3573_p6), %s550_s29, 2048, %s552_s19, [#allocation9], %s3421_s16, %s3421_s16, %s3422_s14  }
  0x26   : > { %2978 = dma.hbm_to_vmem [thread:$0]  (!%p3573_p6), %s527_s3, 16, %s529_s10, [#allocation6]  }
  0x27   : > { %s566_s13 = sshll.u32 %s4623_s15, 4  ;;  %s3424_s18 = smov [#allocation10]   ;;  %s567_s13 = int_to_ptr.hbm [resolvable:$true] %s566_s13 }
  0x28   : > { %s568_s23 = sshll.u32 %s3424_s18, 4  ;;  %s4601_s19 = smov 256   ;;  %s569_s23 = int_to_ptr.vmem [resolvable:$true] %s568_s23 }
  0x29   : > { %s4602_s26 = smov 16   ;;  %s4624_s17 = sld [smem:[#allocation33_spill]] }
  0x2a   : > { %2984 = dma.hbm_to_vmem [thread:$0]  (!%p3573_p6), %s567_s13, 4096, %s569_s23, [#allocation9], %s4601_s19, %s4601_s19, %s4602_s26  }
  0x2b   : > { %s3427_s22 = smov [#allocation11]   ;;  %s2799_s3 = sadd.s32 4294967294, %s3417_s21  }
  0x2c   : > { %s585_s2 = sshll.u32 %s3427_s22, 4  ;;  %s3601_s27 = sadd.s32 1, %s3417_s21   ;;  %s586_s2 = int_to_ptr.vmem [resolvable:$true] %s585_s2 }
  0x2d   : > { %s49_s28 = sadd.s32 1, %s3413_s20  ;;  %s46_s13 = ssub.s32 %s3417_s21, %s3601_s27 }
  0x2e   : > { %p56_p7 = scmp.ne.s32.totalorder %s3413_s20, %s3409_s30  ;;  %p47_p8 = scmp.eq.s32.totalorder %s46_s13, 0 }
  0x2f   : > { %s583_s10 = sshll.u32 %s4624_s17, 4  ;;  %p57_p9 = scmp.eq.s32.totalorder %s3417_s21, 0  ;;  %s584_s10 = int_to_ptr.hbm [resolvable:$true] %s583_s10 }
  0x30   : > { %2987 = dma.hbm_to_vmem [thread:$0]  (!%p3573_p6), %s584_s10, 256, %s586_s2, [#allocation12], %s3421_s16, %s3421_s16, %s3422_s14  }
  0x31   : > { %p62_p10 = scmp.ne.s32.totalorder %s3409_s30, %s3405_s0  ;;  %p443_p11 = scmp.eq.s32.totalorder %s3556_s24, 1 }
  0x32   : > { %s3613_s18 = scalar_select %p47_p8, %s3413_s20, %s49_s28  }
  0x33   : > { %p3617_p12 = por %p63_p1, %p62_p10  ;;  %p3621_p13 = por %p443_p11, %p56_p7 }
  0x34   : > { %p449_p0 = scmp.eq.s32.totalorder %s2799_s3, 1  ;;  %p58_p2 = por %p57_p9, %p56_p7 }
  0x35   : > { %s599_s16 = sand.u32 1, %s3413_s20   ;;  %p3004_p6 = scmp.lt.s32.totalorder %s3417_s21, 2 }
  0x36   : > { %p3626_p4 = por %p449_p0, %p62_p10  ;;  %s2807_s12 = sshll.u32 %s599_s16, 8 }
  0x37   : > { %s2894_s29 = sshll.u32 %s3417_s21, 8  ;;  %s4628_s2 = sld [smem:[#allocation22_spill]] }
  0x38   : > { %s603_s19 = scalar_lea.vmem [#allocation2], %s2807_s12  ;;  %p3635_p8 = pnand %p3004_p6, %p58_p2 }
  0x39   : > { %s612_s26 = sshll.u32 %s603_s19, 4  ;;  %s600_s8 = scalar_lea.sflag [#allocation3], %s599_s16  ;;  %s613_s26 = int_to_ptr.vmem [resolvable:$true] %s612_s26 }
  0x3a   : > { %p3281_p9 = pneg %p3635_p8 }
  0x3d   : > { %s609_s28 = scalar_lea.hbm %s4628_s2, %s2894_s29  ;;  %s3284_s19 = scalar_lea.hbm %s4628_s2, 512 }
  0x3e   : > { %s610_s13 = sshll.u32 %s609_s28, 4  ;;  %s611_s13 = int_to_ptr.hbm [resolvable:$true] %s610_s13 }
  0x3f   : > { %s3277_s15 = sshra.s32 %s611_s13, 4  ;;  %s3278_s15 = int_to_ptr.hbm [resolvable:$true] %s3277_s15 }
  0x40   : > { %s3279_s17 = scalar_lea.hbm %s3278_s15, 256  ;;  %p3285_p0 = scmp.lt.s32.totalorder %s3278_s15, %s4628_s2 }
  0x41   : > { %p3280_p7 = scmp.ne.s32.totalorder %s3278_s15, %s3279_s17  ;;  %p3286_p2 = scmp.lt.s32.totalorder %s3284_s19, %s3279_s17 }
  0x43   : > { %p3282_p10 = pnand %p3281_p9, %p3280_p7  ;;  %p3287_p6 = por %p3286_p2, %p3285_p0 }
  0x45   : > { %p3283_p11 = pneg %p3282_p10 }
  0x47   : > { %p3288_p5 = pnand %p3287_p6, %p3283_p11 }
  0x49   : > { %3291 = shalt.err (!%p3288_p5)
}
  0x4a   : > { %s4630_s16 = smov 16   ;;  %s4631_s28 = smov 256  }
  0x4b   : > { %2991 = dma.hbm_to_vmem [thread:$0]  (!%p3635_p8), %s611_s13, 4096, %s613_s26, %s600_s8, %s4631_s28, %s4631_s28, %s4630_s16  }
  0x4c   : > { %624 = sbr.rel (%p3561_p3) target bundleno = 1329 (0x531), region = 92  ;;  %s3655_s29 = sand.u32 (!%p3561_p3), 1, %s3409_s30  }
  0x4d   : > { %s2812_s15 = sshll.u32 (!%p3561_p3), %s3655_s29, 8  ;;  %s627_s17 = scalar_lea.sflag (!%p3561_p3), [#allocation3], %s3655_s29 }
  0x4e   : > { %s3661_s10 = scalar_lea.vmem (!%p3561_p3), [#allocation2], %s2812_s15 }
  0x51   : > { %3380 = dma.done.wait (%p3617_p12), %s627_s17, 4096  }
  0x52   : > { %3382 = vsyncadd (%p3617_p12), %s627_s17, 4294963200 }
  0x53   : > { %3384 = dma.done.wait (%p63_p1), [#allocation6], 4112  }
  0x54   : > { %3386 = vsyncadd (%p63_p1), [#allocation6], 4294963184 }
  0x55   : > { %3388 = dma.done.wait (%p63_p1), [#allocation9], 6144  }
  0x56   : > { %3390 = vsyncadd (%p63_p1), [#allocation9], 4294961152 }
  0x57   : > { %3392 = dma.done.wait (%p63_p1), [#allocation12], 256  }
  0x58   : > { %3394 = vsyncadd (%p63_p1), [#allocation12], 4294967040  ;;  %v766_v0 = vld [vmem:[#allocation5 + $0x78] sm:$0xff]  ;;  %v765_v1 = vld [vmem:[#allocation5 + $0x70] sm:$0xff]  ;;  %s4632_s26 = sld [smem:[#allocation25_spill]]  ;;  %vm1147_vm0 = vcmask 523264  }
  0x59   : > { %v3679_v2 = vld [vmem:[#allocation5 + $0xf8] sm:$0xff]  ;;  %787 = vmatpush.msra.mxu0 %v766_v0  ;;  %v3682_v3 = vld [vmem:[#allocation5 + $0xf0] sm:$0xff]  ;;  %v764_v4 = vld [vmem:[#allocation5 + $0x68] sm:$0xff]  ;;  %2898 = vmatpush.msra.mxu3 %v766_v0  ;;  %s4633_s8 = sld [smem:[#allocation24_spill]]  ;;  %vm1267_vm1 = vcmask 130048   ;;  %s4416_s25 = scalar_lea.vmem [#allocation14], %s2812_s15 }
  0x5a   : > { %852 = vmatpush.msra.mxu1 %v3679_v2  ;;  %v3684_v5 = vld [vmem:[#allocation5 + $0xe8] sm:$0xff]  ;;  %v763_v6 = vld [vmem:[#allocation5 + $0x60] sm:$0xff]  ;;  %v762_v8 = vld [vmem:[#allocation5 + $0x58] sm:$0xff]  ;;  %s4634_s13 = sld [smem:[#allocation27_spill]]  ;;  %s2818_s15 = sshll.u32 %s3655_s29, 7 }
  0x5b   : > { %788 = vmatpush.msra.mxu0 %v765_v1  ;;  %v3687_v7 = vld [vmem:[#allocation5 + $0xe0] sm:$0xff]  ;;  %2899 = vmatpush.msra.mxu3 %v765_v1  ;;  %v3690_v9 = vld [vmem:[#allocation5 + $0xd8] sm:$0xff]  ;;  %v761_v10 = vld [vmem:[#allocation5 + $0x50] sm:$0xff]  ;;  %s4635_s12 = sld [smem:[#allocation28_spill]]  ;;  %s4435_s1 = scalar_lea.vmem [#allocation13], %s2818_s15 }
  0x5c   : > { %853 = vmatpush.msra.mxu1 %v3682_v3  ;;  %v3693_v11 = vld [vmem:[#allocation5 + $0xd0] sm:$0xff]  ;;  %v760_v12 = vld [vmem:[#allocation5 + $0x48] sm:$0xff]  ;;  %v759_v14 = vld [vmem:[#allocation5 + $0x40] sm:$0xff]  ;;  %s2642_s16 = sshll.u32 %s4416_s25, 4  ;;  %s2612_s28 = scalar_lea.sflag [#allocation15], %s3655_s29  ;;  %s4517_s16 = int_to_ptr.vmem [resolvable:$true] %s2642_s16 }
  0x5d   : > { %789 = vmatpush.msra.mxu0 %v764_v4  ;;  %2900 = vmatpush.msra.mxu3 %v764_v4  ;;  %v3696_v13 = vld [vmem:[#allocation5 + $0xc8] sm:$0xff]  ;;  %v758_v15 = vld [vmem:[#allocation5 + $0x38] sm:$0xff]  ;;  %v3699_v16 = vld [vmem:[#allocation5 + $0xc0] sm:$0xff] }
  0x5e   : > { %854 = vmatpush.msra.mxu1 %v3684_v5  ;;  %v3702_v17 = vld [vmem:[#allocation5 + $0xb8] sm:$0xff]  ;;  %v757_v18 = vld [vmem:[#allocation5 + $0x30] sm:$0xff]  ;;  %v756_v20 = vld [vmem:[#allocation5 + $0x28] sm:$0xff] }
  0x5f   : > { %790 = vmatpush.msra.mxu0 %v763_v6  ;;  %2901 = vmatpush.msra.mxu3 %v763_v6  ;;  %v3705_v19 = vld [vmem:[#allocation5 + $0xb0] sm:$0xff]  ;;  %v772_v21 = vld [vmem:[#allocation5 + $0xa8] sm:$0xff]  ;;  %v755_v22 = vld [vmem:[#allocation5 + $0x20] sm:$0xff] }
  0x60   : > { %855 = vmatpush.msra.mxu1 %v3687_v7  ;;  %v771_v23 = vld [vmem:[#allocation5 + $0xa0] sm:$0xff]  ;;  %v754_v24 = vld [vmem:[#allocation5 + $0x18] sm:$0xff]  ;;  %v753_v26 = vld [vmem:[#allocation5 + $0x10] sm:$0xff] }
  0x61   : > { %791 = vmatpush.msra.mxu0 %v762_v8  ;;  %2902 = vmatpush.msra.mxu3 %v762_v8  ;;  %v770_v25 = vld [vmem:[#allocation5 + $0x98] sm:$0xff]  ;;  %v769_v27 = vld [vmem:[#allocation5 + $0x90] sm:$0xff]  ;;  %v752_v28 = vld [vmem:[#allocation5 + $0x8] sm:$0xff] }
  0x62   : > { %856 = vmatpush.msra.mxu1 %v3690_v9  ;;  %v768_v29 = vld [vmem:[#allocation5 + $0x88] sm:$0xff]  ;;  %v751_v30 = vld [vmem:[#allocation5] sm:$0xff]  ;;  %v721_v35 = vld [vmem:[%s3661_s10 + $0x10] sm:$0xff] }
  0x63   : > { %792 = vmatpush.msra.mxu0 %v761_v10  ;;  %2903 = vmatpush.msra.mxu3 %v761_v10  ;;  %v767_v31 = vld [vmem:[#allocation5 + $0x80] sm:$0xff]  ;;  %v720_v33 = vld [vmem:[%s3661_s10 + $0x8] sm:$0xff]  ;;  %v722_v36 = vld [vmem:[%s3661_s10 + $0x18] sm:$0xff] }
  0x64   : > { %857 = vmatpush.msra.mxu1 %v3693_v11  ;;  %v719_v32 = vld [vmem:[%s3661_s10] sm:$0xff]  ;;  %v745_v37 = vld [vmem:[%s3661_s10 + $0xd0] sm:$0xff]  ;;  %v724_v39 = vld [vmem:[%s3661_s10 + $0x28] sm:$0xff] }
  0x65   : > { %793 = vmatpush.msra.mxu0 %v760_v12  ;;  %2904 = vmatpush.msra.mxu3 %v760_v12  ;;  %v743_v34 = vld [vmem:[%s3661_s10 + $0xc0] sm:$0xff]  ;;  %v725_v41 = vld [vmem:[%s3661_s10 + $0x30] sm:$0xff]  ;;  %v726_v42 = vld [vmem:[%s3661_s10 + $0x38] sm:$0xff] }
  0x66   : > { %858 = vmatpush.msra.mxu1 %v3696_v13  ;;  %v723_v38 = vld [vmem:[%s3661_s10 + $0x20] sm:$0xff]  ;;  %v749_v43 = vld [vmem:[%s3661_s10 + $0xf0] sm:$0xff]  ;;  %v728_v45 = vld [vmem:[%s3661_s10 + $0x48] sm:$0xff] }
  0x67   : > { %794 = vmatpush.msra.mxu0 %v759_v14  ;;  %2905 = vmatpush.msra.mxu3 %v759_v14  ;;  %v747_v40 = vld [vmem:[%s3661_s10 + $0xe0] sm:$0xff]  ;;  %v744_v46 = vld [vmem:[%s3661_s10 + $0xc8] sm:$0xff]  ;;  %v729_v47 = vld [vmem:[%s3661_s10 + $0x50] sm:$0xff] }
  0x68   : > { %859 = vmatpush.msra.mxu1 %v3699_v16  ;;  %v727_v44 = vld [vmem:[%s3661_s10 + $0x40] sm:$0xff]  ;;  %v730_v48 = vld [vmem:[%s3661_s10 + $0x58] sm:$0xff]  ;;  %v732_v51 = vld [vmem:[%s3661_s10 + $0x68] sm:$0xff] }
  0x69   : > { %795 = vmatpush.msra.mxu0 %v758_v15  ;;  %2906 = vmatpush.msra.mxu3 %v758_v15  ;;  %v746_v49 = vld [vmem:[%s3661_s10 + $0xd8] sm:$0xff]  ;;  %v731_v50 = vld [vmem:[%s3661_s10 + $0x60] sm:$0xff]  ;;  %v748_v52 = vld [vmem:[%s3661_s10 + $0xe8] sm:$0xff] }
  0x6a   : > { %860 = vmatpush.msra.mxu1 %v3702_v17  ;;  %v733_v53 = vld [vmem:[%s3661_s10 + $0x70] sm:$0xff]  ;;  %v734_v54 = vld [vmem:[%s3661_s10 + $0x78] sm:$0xff]  ;;  %v946_v58 = vld [vmem:[%s4632_s26 + $0x68] sm:$0xff] }
  0x6b   : > { %796 = vmatpush.msra.mxu0 %v757_v18  ;;  %2907 = vmatpush.msra.mxu3 %v757_v18  ;;  %v750_v55 = vld [vmem:[%s3661_s10 + $0xf8] sm:$0xff]  ;;  %v947_v57 = vld [vmem:[%s4632_s26 + $0x70] sm:$0xff]  ;;  %v945_v59 = vld [vmem:[%s4632_s26 + $0x60] sm:$0xff] }
  0x6c   : > { %861 = vmatpush.msra.mxu1 %v3705_v19  ;;  %v948_v56 = vld [vmem:[%s4632_s26 + $0x78] sm:$0xff]  ;;  %v735_v60 = vld [vmem:[%s3661_s10 + $0x80] sm:$0xff]  ;;  %v736_v61 = vld [vmem:[%s3661_s10 + $0x88] sm:$0xff] }
  0x6d   : > { %797 = vmatpush.msra.mxu0 %v756_v20  ;;  %2908 = vmatpush.msra.mxu3 %v756_v20  ;;  %v944_v62 = vld [vmem:[%s4632_s26 + $0x58] sm:$0xff]  ;;  %v943_v63 = vld [vmem:[%s4632_s26 + $0x50] sm:$0xff]  ;;  %v942_v0 = vld [vmem:[%s4632_s26 + $0x48] sm:$0xff] }
  0x6e   : > { %862 = vmatpush.msra.mxu1 %v772_v21  ;;  %953 = vmatpush.msra.mxu2 %v948_v56  ;;  %v941_v1 = vld [vmem:[%s4632_s26 + $0x40] sm:$0xff]  ;;  %v940_v4 = vld [vmem:[%s4632_s26 + $0x38] sm:$0xff]  ;;  %v938_v6 = vld [vmem:[%s4632_s26 + $0x28] sm:$0xff] }
  0x6f   : > { %798 = vmatpush.msra.mxu0 %v755_v22  ;;  %2909 = vmatpush.msra.mxu3 %v755_v22  ;;  %v739_v8 = vld [vmem:[%s3661_s10 + $0xa0] sm:$0xff]  ;;  %v741_v10 = vld [vmem:[%s3661_s10 + $0xb0] sm:$0xff]  ;;  %v936_v12 = vld [vmem:[%s4632_s26 + $0x18] sm:$0xff] }
  0x70   : > { %863 = vmatpush.msra.mxu1 %v771_v23  ;;  %954 = vmatpush.msra.mxu2 %v947_v57  ;;  %v934_v14 = vld [vmem:[%s4632_s26 + $0x8] sm:$0xff]  ;;  %v933_v15 = vld [vmem:[%s4632_s26] sm:$0xff] }
  0x71   : > { %799 = vmatpush.msra.mxu0 %v754_v24  ;;  %2910 = vmatpush.msra.mxu3 %v754_v24 }
  0x72   : > { %864 = vmatpush.msra.mxu1 %v770_v25  ;;  %955 = vmatpush.msra.mxu2 %v946_v58 }
  0x73   : > { %800 = vmatpush.msra.mxu0 %v753_v26  ;;  %2911 = vmatpush.msra.mxu3 %v753_v26 }
  0x74   : > { %865 = vmatpush.msra.mxu1 %v769_v27  ;;  %956 = vmatpush.msra.mxu2 %v945_v59 }
  0x75   : > { %801 = vmatpush.msra.mxu0 %v752_v28  ;;  %2912 = vmatpush.msra.mxu3 %v752_v28 }
  0x76   : > { %866 = vmatpush.msra.mxu1 %v768_v29  ;;  %957 = vmatpush.msra.mxu2 %v944_v62 }
  0x77   : > { %802 = vmatpush.msra.mxu0 %v751_v30  ;;  %2913 = vmatpush.msra.mxu3 %v751_v30 }
  0x78   : > { %867 = vmatpush.msra.mxu1 %v767_v31  ;;  %803 = vmatmul.f32.vlgmr.msra.gmra.mxu0 %v719_v32 }
  0x79   : > { %868 = vmatmul.f32.vlgmr.msra.gmra.mxu1 %v720_v33  ;;  %839 = vmatmul.f32.vlgmr.msra.gmra.mxu3 %v743_v34 }
  0x7a   : > { %2914 = vmatpush.msrb.mxu3 %v3679_v2  ;;  %958 = vmatpush.msra.mxu2 %v943_v63  ;;  %v737_v2 = vld [vmem:[%s3661_s10 + $0x90] sm:$0xff] }
  0x7c   : > { %2915 = vmatpush.msrb.mxu3 %v3682_v3  ;;  %v738_v3 = vld [vmem:[%s3661_s10 + $0x98] sm:$0xff]  ;;  %959 = vmatpush.msra.mxu2 %v942_v0 }
  0x7e   : > { %2916 = vmatpush.msrb.mxu3 %v3684_v5  ;;  %960 = vmatpush.msra.mxu2 %v941_v1  ;;  %v939_v5 = vld [vmem:[%s4632_s26 + $0x30] sm:$0xff] }
  0x80   : > { %806 = vmatmul.f32.gmra.mxu0 %v721_v35  ;;  %2917 = vmatpush.msrb.mxu3 %v3687_v7  ;;  %v937_v7 = vld [vmem:[%s4632_s26 + $0x20] sm:$0xff] }
  0x81   : > { %871 = vmatmul.f32.gmra.mxu1 %v722_v36  ;;  %842 = vmatmul.f32.gmra.mxu3 %v745_v37 }
  0x82   : > { %2918 = vmatpush.msrb.mxu3 %v3690_v9  ;;  %961 = vmatpush.msra.mxu2 %v940_v4  ;;  %v740_v9 = vld [vmem:[%s3661_s10 + $0xa8] sm:$0xff] }
  0x84   : > { %2919 = vmatpush.msrb.mxu3 %v3693_v11  ;;  %962 = vmatpush.msra.mxu2 %v939_v5  ;;  %v742_v11 = vld [vmem:[%s3661_s10 + $0xb8] sm:$0xff]  ;;  %s4636_s10 = sld [smem:[#allocation30_spill]] }
  0x86   : > { %2920 = vmatpush.msrb.mxu3 %v3696_v13  ;;  %963 = vmatpush.msra.mxu2 %v938_v6  ;;  %v935_v13 = vld [vmem:[%s4632_s26 + $0x10] sm:$0xff] }
  0x88   : > { %809 = vmatmul.f32.gmra.mxu0 %v723_v38  ;;  %2921 = vmatpush.msrb.mxu3 %v3699_v16  ;;  %v3802_v16 = vld [vmem:[%s4633_s8] ss:$0 sm:$0xff]  ;;  %s4637_s8 = sld [smem:[#allocation32_spill]] }
  0x89   : > { %874 = vmatmul.f32.gmra.mxu1 %v724_v39  ;;  %845 = vmatmul.f32.gmra.mxu3 %v747_v40 }
  0x8a   : > { %2922 = vmatpush.msrb.mxu3 %v3702_v17  ;;  %964 = vmatpush.msra.mxu2 %v937_v7 }
  0x8c   : > { %2923 = vmatpush.msrb.mxu3 %v3705_v19  ;;  %965 = vmatpush.msra.mxu2 %v936_v12 }
  0x8e   : > { %2924 = vmatpush.msrb.mxu3 %v772_v21  ;;  %966 = vmatpush.msra.mxu2 %v935_v13 }
  0x90   : > { %812 = vmatmul.f32.gmra.mxu0 %v725_v41  ;;  %2925 = vmatpush.msrb.mxu3 %v771_v23 }
  0x91   : > { %877 = vmatmul.f32.gmra.mxu1 %v726_v42  ;;  %848 = vmatmul.f32.gmra.mxu3 %v749_v43 }
  0x92   : > { %2926 = vmatpush.msrb.mxu3 %v770_v25  ;;  %967 = vmatpush.msra.mxu2 %v934_v14 }
  0x94   : > { %2927 = vmatpush.msrb.mxu3 %v769_v27  ;;  %968 = vmatpush.msra.mxu2 %v933_v15 }
  0x96   : > { %2928 = vmatpush.msrb.mxu3 %v768_v29 }
  0x98   : > { %815 = vmatmul.f32.gmra.mxu0 %v727_v44  ;;  %2929 = vmatpush.msrb.mxu3 %v767_v31 }
  0x99   : > { %880 = vmatmul.f32.gmra.mxu1 %v728_v45  ;;  %904 = vmatmul.f32.vlgmr.msrb.gmra.mxu3 %v744_v46 }
  0x9a   : > { %2930 = vmatpush.msra.mxu3 %v948_v56 }
  0x9c   : > { %2931 = vmatpush.msra.mxu3 %v947_v57 }
  0x9e   : > { %2932 = vmatpush.msra.mxu3 %v946_v58 }
  0xa0   : > { %818 = vmatmul.f32.gmra.mxu0 %v729_v47  ;;  %2933 = vmatpush.msra.mxu3 %v945_v59 }
  0xa1   : > { %883 = vmatmul.f32.gmra.mxu1 %v730_v48  ;;  %907 = vmatmul.f32.gmra.mxu3 %v746_v49 }
  0xa2   : > { %2934 = vmatpush.msra.mxu3 %v944_v62 }
  0xa4   : > { %2935 = vmatpush.msra.mxu3 %v943_v63 }
  0xa6   : > { %2936 = vmatpush.msra.mxu3 %v942_v0 }
  0xa8   : > { %821 = vmatmul.f32.gmra.mxu0 %v731_v50  ;;  %2937 = vmatpush.msra.mxu3 %v941_v1 }
  0xa9   : > { %886 = vmatmul.f32.gmra.mxu1 %v732_v51  ;;  %910 = vmatmul.f32.gmra.mxu3 %v748_v52 }
  0xaa   : > { %2938 = vmatpush.msra.mxu3 %v940_v4 }
  0xac   : > { %2939 = vmatpush.msra.mxu3 %v939_v5 }
  0xae   : > { %2940 = vmatpush.msra.mxu3 %v938_v6 }
  0xb0   : > { %824 = vmatmul.f32.gmra.mxu0 %v733_v53  ;;  %2941 = vmatpush.msra.mxu3 %v937_v7 }
  0xb1   : > { %889 = vmatmul.f32.gmra.mxu1 %v734_v54  ;;  %913 = vmatmul.f32.gmra.mxu3 %v750_v55 }
  0xb2   : > { %2942 = vmatpush.msra.mxu3 %v936_v12 }
  0xb4   : > { %2943 = vmatpush.msra.mxu3 %v935_v13 }
  0xb6   : > { %2944 = vmatpush.msra.mxu3 %v934_v14 }
  0xb8   : > { %827 = vmatmul.f32.gmra.mxu0 %v735_v60  ;;  %2945 = vmatpush.msra.mxu3 %v933_v15 }
  0xb9   : > { %892 = vmatmul.f32.gmra.mxu1 %v736_v61 }
  0xc0   : > { %830 = vmatmul.f32.gmra.mxu0 %v737_v2 }
  0xc1   : > { %895 = vmatmul.f32.gmra.mxu1 %v738_v3 }
  0xc8   : > { %833 = vmatmul.f32.gmra.mxu0 %v739_v8 }
  0xc9   : > { %898 = vmatmul.f32.gmra.mxu1 %v740_v9 }
  0xd0   : > { %836 = vmatmul.f32.gmra.mxu0 %v741_v10  ;;  %v1049_v10 = vld [vmem:[%s4582_s5 + $0x78] sm:$0xff] }
  0xd1   : > { %901 = vmatmul.f32.gmra.mxu1 %v742_v11  ;;  %v1048_v11 = vld [vmem:[%s4582_s5 + $0x70] sm:$0xff]  ;;  %1054 = vmatpush.msrb.mxu3 %v1049_v10 }
  0xd3   : > { %1055 = vmatpush.msrb.mxu3 %v1048_v11 }
  0xf5   : > { %v804_v17 = vpop.f32.mrf.mxu0 }
  0xf6   : > { %v869_v18 = vpop.f32.mrf.mxu1  ;;  %v805_v19 = vadd.f32 %v3802_v16, %v804_v17  ;;  %v1047_v17 = vld [vmem:[%s4582_s5 + $0x68] sm:$0xff] }
  0xf7   : > { %1056 = vmatpush.msrb.mxu3 %v1047_v17 }
  0xf8   : > { %v870_v20 = vadd.f32 %v869_v18, %v805_v19 }
  0xfa   : > { %v917_v21 = vmax.f32 %v870_v20, 0.0 }
  0xfc   : > { %969 = vmatmul.f32.vlgmr.msra.gmra.mxu2 %v917_v21  ;;  %v840_v25 = vpop.f32.mrf.mxu3  ;;  %v1046_v21 = vld [vmem:[%s4582_s5 + $0x60] sm:$0xff] }
  0xfd   : > { %v807_v22 = vpop.f32.mrf.mxu0  ;;  %v841_v46 = vadd.f32 %v3802_v16, %v840_v25  ;;  %1057 = vmatpush.msrb.mxu3 %v1046_v21 }
  0xfe   : > { %v872_v23 = vpop.f32.mrf.mxu1  ;;  %v808_v24 = vadd.f32 %v3802_v16, %v807_v22 }
 0x100   : > { %v873_v26 = vadd.f32 %v872_v23, %v808_v24  ;;  %v1045_v23 = vld [vmem:[%s4582_s5 + $0x58] sm:$0xff] }
 0x101   : > { %1058 = vmatpush.msrb.mxu3 %v1045_v23 }
 0x102   : > { %v918_v27 = vmax.f32 %v873_v26, 0.0  ;;  %v1044_v26 = vld [vmem:[%s4582_s5 + $0x50] sm:$0xff] }
 0x103   : > { %1059 = vmatpush.msrb.mxu3 %v1044_v26  ;;  %v1136_v26 = vld [vmem:[%s4584_s7 + $0x8] sm:$0xff] }
 0x104   : > { %972 = vmatmul.f32.gmra.mxu2 %v918_v27  ;;  %v843_v31 = vpop.f32.mrf.mxu3 }
 0x105   : > { %v810_v28 = vpop.f32.mrf.mxu0  ;;  %v844_v55 = vadd.f32 %v3802_v16, %v843_v31 }
 0x106   : > { %v875_v29 = vpop.f32.mrf.mxu1  ;;  %v811_v30 = vadd.f32 %v3802_v16, %v810_v28  ;;  %v1043_v28 = vld [vmem:[%s4582_s5 + $0x48] sm:$0xff] }
 0x107   : > { %1060 = vmatpush.msrb.mxu3 %v1043_v28 }
 0x108   : > { %v876_v32 = vadd.f32 %v875_v29, %v811_v30  ;;  %v1042_v30 = vld [vmem:[%s4582_s5 + $0x40] sm:$0xff] }
 0x109   : > { %1061 = vmatpush.msrb.mxu3 %v1042_v30 }
 0x10a   : > { %v919_v33 = vmax.f32 %v876_v32, 0.0  ;;  %v1041_v32 = vld [vmem:[%s4582_s5 + $0x38] sm:$0xff] }
 0x10b   : > { %1062 = vmatpush.msrb.mxu3 %v1041_v32 }
 0x10c   : > { %975 = vmatmul.f32.gmra.mxu2 %v919_v33  ;;  %v846_v37 = vpop.f32.mrf.mxu3 }
 0x10d   : > { %v813_v34 = vpop.f32.mrf.mxu0  ;;  %v847_v0 = vadd.f32 %v3802_v16, %v846_v37  ;;  %v1039_v37 = vld [vmem:[%s4582_s5 + $0x28] sm:$0xff] }
 0x10e   : > { %v878_v35 = vpop.f32.mrf.mxu1  ;;  %v814_v36 = vadd.f32 %v3802_v16, %v813_v34 }
 0x110   : > { %v879_v38 = vadd.f32 %v878_v35, %v814_v36  ;;  %v1040_v35 = vld [vmem:[%s4582_s5 + $0x30] sm:$0xff] }
 0x111   : > { %1063 = vmatpush.msrb.mxu3 %v1040_v35 }
 0x112   : > { %v920_v39 = vmax.f32 %v879_v38, 0.0 }
 0x113   : > { %1064 = vmatpush.msrb.mxu3 %v1039_v37 }
 0x114   : > { %978 = vmatmul.f32.gmra.mxu2 %v920_v39  ;;  %v849_v43 = vpop.f32.mrf.mxu3  ;;  %v1038_v39 = vld [vmem:[%s4582_s5 + $0x20] sm:$0xff] }
 0x115   : > { %v816_v40 = vpop.f32.mrf.mxu0  ;;  %v850_v9 = vadd.f32 %v3802_v16, %v849_v43  ;;  %1065 = vmatpush.msrb.mxu3 %v1038_v39 }
 0x116   : > { %v881_v41 = vpop.f32.mrf.mxu1  ;;  %v817_v42 = vadd.f32 %v3802_v16, %v816_v40 }
 0x118   : > { %v882_v44 = vadd.f32 %v881_v41, %v817_v42  ;;  %v1037_v41 = vld [vmem:[%s4582_s5 + $0x18] sm:$0xff] }
 0x119   : > { %1066 = vmatpush.msrb.mxu3 %v1037_v41 }
 0x11a   : > { %v921_v45 = vmax.f32 %v882_v44, 0.0  ;;  %v1036_v44 = vld [vmem:[%s4582_s5 + $0x10] sm:$0xff] }
 0x11b   : > { %1067 = vmatpush.msrb.mxu3 %v1036_v44 }
 0x11c   : > { %981 = vmatmul.f32.gmra.mxu2 %v921_v45  ;;  %v905_v50 = vpop.f32.mrf.mxu3 }
 0x11d   : > { %v819_v47 = vpop.f32.mrf.mxu0  ;;  %v906_v51 = vadd.f32 %v905_v50, %v841_v46  ;;  %v3871_v50 = vld [vmem:[%s4581_s4] ss:$0 sm:$0xff] }
 0x11e   : > { %v884_v48 = vpop.f32.mrf.mxu1  ;;  %v820_v49 = vadd.f32 %v3802_v16, %v819_v47 }
 0x11f   : > { %v929_v53 = vmax.f32 %v906_v51, 0.0 }
 0x120   : > { %v885_v52 = vadd.f32 %v884_v48, %v820_v49  ;;  %v1035_v48 = vld [vmem:[%s4582_s5 + $0x8] sm:$0xff]  ;;  %v1034_v49 = vld [vmem:[%s4582_s5] sm:$0xff] }
 0x121   : > { %1005 = vmatmul.f32.vlgmr.msra.gmra.mxu3 %v929_v53 }
 0x122   : > { %v922_v54 = vmax.f32 %v885_v52, 0.0  ;;  %1068 = vmatpush.msrb.mxu3 %v1035_v48 }
 0x124   : > { %984 = vmatmul.f32.gmra.mxu2 %v922_v54  ;;  %v908_v59 = vpop.f32.mrf.mxu3  ;;  %1069 = vmatpush.msrb.mxu3 %v1034_v49 }
 0x125   : > { %v822_v56 = vpop.f32.mrf.mxu0  ;;  %v909_v60 = vadd.f32 %v908_v59, %v844_v55 }
 0x126   : > { %v887_v57 = vpop.f32.mrf.mxu1  ;;  %v823_v58 = vadd.f32 %v3802_v16, %v822_v56  ;;  %v1142_v56 = vld [vmem:[%s4584_s7 + $0x38] sm:$0xff] }
 0x127   : > { %v930_v62 = vmax.f32 %v909_v60, 0.0  ;;  %1204 = vmatpush.msrb.mxu0 %v1142_v56 }
 0x128   : > { %v888_v61 = vadd.f32 %v887_v57, %v823_v58 }
 0x129   : > { %1008 = vmatmul.f32.gmra.mxu3 %v930_v62  ;;  %v1141_v62 = vld [vmem:[%s4584_s7 + $0x30] sm:$0xff] }
 0x12a   : > { %v923_v63 = vmax.f32 %v888_v61, 0.0  ;;  %1205 = vmatpush.msrb.mxu0 %v1141_v62 }
 0x12c   : > { %987 = vmatmul.f32.gmra.mxu2 %v923_v63  ;;  %v911_v4 = vpop.f32.mrf.mxu3 }
 0x12d   : > { %v825_v1 = vpop.f32.mrf.mxu0  ;;  %v912_v5 = vadd.f32 %v911_v4, %v847_v0 }
 0x12e   : > { %v890_v2 = vpop.f32.mrf.mxu1  ;;  %v826_v3 = vadd.f32 %v3802_v16, %v825_v1 }
 0x12f   : > { %v931_v7 = vmax.f32 %v912_v5, 0.0 }
 0x130   : > { %v891_v6 = vadd.f32 %v890_v2, %v826_v3  ;;  %v1140_v3 = vld [vmem:[%s4584_s7 + $0x28] sm:$0xff] }
 0x131   : > { %1011 = vmatmul.f32.gmra.mxu3 %v931_v7  ;;  %1206 = vmatpush.msrb.mxu0 %v1140_v3 }
 0x132   : > { %v924_v8 = vmax.f32 %v891_v6, 0.0 }
 0x134   : > { %990 = vmatmul.f32.gmra.mxu2 %v924_v8  ;;  %v914_v15 = vpop.f32.mrf.mxu3 }
 0x135   : > { %v828_v12 = vpop.f32.mrf.mxu0  ;;  %v915_v18 = vadd.f32 %v914_v15, %v850_v9  ;;  %v1139_v9 = vld [vmem:[%s4584_s7 + $0x20] sm:$0xff] }
 0x136   : > { %v893_v13 = vpop.f32.mrf.mxu1  ;;  %v829_v14 = vadd.f32 %v3802_v16, %v828_v12  ;;  %1207 = vmatpush.msrb.mxu0 %v1139_v9 }
 0x137   : > { %v932_v20 = vmax.f32 %v915_v18, 0.0 }
 0x138   : > { %v894_v19 = vadd.f32 %v893_v13, %v829_v14  ;;  %v1138_v14 = vld [vmem:[%s4584_s7 + $0x18] sm:$0xff] }
 0x139   : > { %1014 = vmatmul.f32.gmra.mxu3 %v932_v20  ;;  %1208 = vmatpush.msrb.mxu0 %v1138_v14 }
 0x13a   : > { %v925_v22 = vmax.f32 %v894_v19, 0.0  ;;  %v1137_v19 = vld [vmem:[%s4584_s7 + $0x10] sm:$0xff] }
 0x13b   : > { %1209 = vmatpush.msrb.mxu0 %v1137_v19 }
 0x13c   : > { %993 = vmatmul.f32.gmra.mxu2 %v925_v22 }
 0x13d   : > { %v831_v24 = vpop.f32.mrf.mxu0  ;;  %1210 = vmatpush.msrb.mxu0 %v1136_v26 }
 0x13e   : > { %v896_v25 = vpop.f32.mrf.mxu1  ;;  %v832_v27 = vadd.f32 %v3802_v16, %v831_v24 }
 0x140   : > { %v897_v29 = vadd.f32 %v896_v25, %v832_v27 }
 0x142   : > { %v926_v31 = vmax.f32 %v897_v29, 0.0 }
 0x144   : > { %996 = vmatmul.f32.gmra.mxu2 %v926_v31  ;;  %v1135_v31 = vld [vmem:[%s4584_s7] sm:$0xff] }
 0x145   : > { %v834_v33 = vpop.f32.mrf.mxu0  ;;  %1211 = vmatpush.msrb.mxu0 %v1135_v31 }
 0x146   : > { %v899_v34 = vpop.f32.mrf.mxu1  ;;  %v835_v36 = vadd.f32 %v3802_v16, %v834_v33 }
 0x148   : > { %v900_v38 = vadd.f32 %v899_v34, %v835_v36 }
 0x14a   : > { %v927_v40 = vmax.f32 %v900_v38, 0.0 }
 0x14c   : > { %999 = vmatmul.f32.gmra.mxu2 %v927_v40 }
 0x14d   : > { %v837_v42 = vpop.f32.mrf.mxu0 }
 0x14e   : > { %v902_v43 = vpop.f32.mrf.mxu1  ;;  %v838_v45 = vadd.f32 %v3802_v16, %v837_v42 }
 0x150   : > { %v903_v46 = vadd.f32 %v902_v43, %v838_v45  ;;  %v3916_v43 = vld [vmem:[%s4583_s6] ss:$0 sm:$0xff] }
 0x152   : > { %v928_v47 = vmax.f32 %v903_v46, 0.0 }
 0x154   : > { %1002 = vmatmul.f32.gmra.mxu2 %v928_v47  ;;  %v1262_v47 = vld [vmem:[%s4586_s9 + $0x8] sm:$0xff] }
 0x155   : > { %1330 = vmatpush.msrb.mxu1 %v1262_v47 }
 0x17f   : > { %v970_v16 = vpop.f32.mrf.mxu2 }
 0x180   : > { %v971_v51 = vadd.f32 %v3871_v50, %v970_v16 }
 0x182   : > { %v1018_v52 = vmax.f32 %v971_v51, 0.0 }
 0x184   : > { %1070 = vmatmul.f32.vlgmr.msrb.gmra.mxu3 %v1018_v52 }
 0x187   : > { %v973_v53 = vpop.f32.mrf.mxu2 }
 0x188   : > { %v974_v54 = vadd.f32 %v3871_v50, %v973_v53 }
 0x18a   : > { %v1019_v55 = vmax.f32 %v974_v54, 0.0 }
 0x18c   : > { %1073 = vmatmul.f32.gmra.mxu3 %v1019_v55 }
 0x18f   : > { %v976_v57 = vpop.f32.mrf.mxu2 }
 0x190   : > { %v977_v58 = vadd.f32 %v3871_v50, %v976_v57 }
 0x192   : > { %v1020_v59 = vmax.f32 %v977_v58, 0.0 }
 0x194   : > { %1076 = vmatmul.f32.gmra.mxu3 %v1020_v59 }
 0x197   : > { %v979_v60 = vpop.f32.mrf.mxu2 }
 0x198   : > { %v980_v61 = vadd.f32 %v3871_v50, %v979_v60 }
 0x19a   : > { %v1021_v63 = vmax.f32 %v980_v61, 0.0 }
 0x19c   : > { %1079 = vmatmul.f32.gmra.mxu3 %v1021_v63 }
 0x19f   : > { %v982_v0 = vpop.f32.mrf.mxu2 }
 0x1a0   : > { %v983_v1 = vadd.f32 %v3871_v50, %v982_v0 }
 0x1a2   : > { %v1022_v2 = vmax.f32 %v983_v1, 0.0  ;;  %v1261_v1 = vld [vmem:[%s4586_s9] sm:$0xff] }
 0x1a3   : > { %1331 = vmatpush.msrb.mxu1 %v1261_v1 }
 0x1a4   : > { %1082 = vmatmul.f32.gmra.mxu3 %v1022_v2  ;;  %v1006_v27 = vpop.f32.mrf.mxu3 }
 0x1a5   : > { %v1007_v32 = vadd.f32 %v3871_v50, %v1006_v27 }
 0x1a7   : > { %v985_v4 = vpop.f32.mrf.mxu2  ;;  %v1030_v34 = vmax.f32 %v1007_v32, 0.0 }
 0x1a8   : > { %v986_v5 = vadd.f32 %v3871_v50, %v985_v4 }
 0x1aa   : > { %v1023_v6 = vmax.f32 %v986_v5, 0.0 }
 0x1ac   : > { %1085 = vmatmul.f32.gmra.mxu3 %v1023_v6  ;;  %v1009_v33 = vpop.f32.mrf.mxu3 }
 0x1ad   : > { %v1010_v35 = vadd.f32 %v3871_v50, %v1009_v33 }
 0x1af   : > { %v988_v7 = vpop.f32.mrf.mxu2  ;;  %v1031_v37 = vmax.f32 %v1010_v35, 0.0 }
 0x1b0   : > { %v989_v8 = vadd.f32 %v3871_v50, %v988_v7 }
 0x1b2   : > { %v1024_v10 = vmax.f32 %v989_v8, 0.0 }
 0x1b4   : > { %1088 = vmatmul.f32.gmra.mxu3 %v1024_v10  ;;  %v1012_v36 = vpop.f32.mrf.mxu3 }
 0x1b5   : > { %v1013_v38 = vadd.f32 %v3871_v50, %v1012_v36 }
 0x1b7   : > { %v991_v11 = vpop.f32.mrf.mxu2  ;;  %v1032_v39 = vmax.f32 %v1013_v38, 0.0 }
 0x1b8   : > { %v992_v12 = vadd.f32 %v3871_v50, %v991_v11 }
 0x1ba   : > { %v1025_v13 = vmax.f32 %v992_v12, 0.0 }
 0x1bc   : > { %1091 = vmatmul.f32.gmra.mxu3 %v1025_v13  ;;  %v1015_v40 = vpop.f32.mrf.mxu3 }
 0x1bd   : > { %v1016_v41 = vadd.f32 %v3871_v50, %v1015_v40 }
 0x1bf   : > { %v994_v15 = vpop.f32.mrf.mxu2  ;;  %v1033_v42 = vmax.f32 %v1016_v41, 0.0 }
 0x1c0   : > { %v995_v17 = vadd.f32 %v3871_v50, %v994_v15 }
 0x1c2   : > { %v1026_v18 = vmax.f32 %v995_v17, 0.0 }
 0x1c4   : > { %1094 = vmatmul.f32.gmra.mxu3 %v1026_v18 }
 0x1c7   : > { %v997_v20 = vpop.f32.mrf.mxu2 }
 0x1c8   : > { %v998_v21 = vadd.f32 %v3871_v50, %v997_v20 }
 0x1ca   : > { %v1027_v22 = vmax.f32 %v998_v21, 0.0 }
 0x1cc   : > { %1097 = vmatmul.f32.gmra.mxu3 %v1027_v22 }
 0x1cf   : > { %v1000_v23 = vpop.f32.mrf.mxu2 }
 0x1d0   : > { %v1001_v24 = vadd.f32 %v3871_v50, %v1000_v23 }
 0x1d2   : > { %v1028_v25 = vmax.f32 %v1001_v24, 0.0 }
 0x1d4   : > { %1100 = vmatmul.f32.gmra.mxu3 %v1028_v25 }
 0x1d7   : > { %v1003_v28 = vpop.f32.mrf.mxu2 }
 0x1d8   : > { %v1004_v29 = vadd.f32 %v3871_v50, %v1003_v28 }
 0x1da   : > { %v1029_v30 = vmax.f32 %v1004_v29, 0.0 }
 0x1dc   : > { %1103 = vmatmul.f32.gmra.mxu3 %v1029_v30  ;;  %v3956_v30 = vld [vmem:[#allocation7] ss:$0 sm:$0xff] }
 0x1e4   : > { %1106 = vmatmul.f32.gmra.mxu3 %v1030_v34  ;;  %v1404_v34 = vld [vmem:[%s4588_s11 + $0x38] sm:$0xff] }
 0x1e5   : > { %1465 = vmatpush.msrb.mxu2 %v1404_v34 }
 0x1ec   : > { %1109 = vmatmul.f32.gmra.mxu3 %v1031_v37 }
 0x1f4   : > { %1112 = vmatmul.f32.gmra.mxu3 %v1032_v39 }
 0x1fc   : > { %1115 = vmatmul.f32.gmra.mxu3 %v1033_v42  ;;  %v1403_v42 = vld [vmem:[%s4588_s11 + $0x30] sm:$0xff] }
 0x1fd   : > { %1466 = vmatpush.msrb.mxu2 %v1403_v42 }
 0x207   : > { %v1071_v44 = vpop.f32.mrf.mxu3 }
 0x208   : > { %v1072_v45 = vadd.f32 %v3916_v43, %v1071_v44 }
 0x20a   : > { %v1119_v46 = vmax.f32 %v1072_v45, 0.0 }
 0x20c   : > { %2820 = vmatmul.msk.f32.vlgmr.msrb.gmra.mxu0 %vm1147_vm0, %v1119_v46 }
 0x20f   : > { %v1074_v48 = vpop.f32.mrf.mxu3 }
 0x210   : > { %v1075_v49 = vadd.f32 %v3916_v43, %v1074_v48  ;;  %v1402_v48 = vld [vmem:[%s4588_s11 + $0x28] sm:$0xff] }
 0x211   : > { %1467 = vmatpush.msrb.mxu2 %v1402_v48 }
 0x212   : > { %v1120_v50 = vmax.f32 %v1075_v49, 0.0 }
 0x214   : > { %2821 = vmatmul.msk.f32.gmra.mxu0 %vm1147_vm0, %v1120_v50 }
 0x217   : > { %v1077_v16 = vpop.f32.mrf.mxu3 }
 0x218   : > { %v1078_v51 = vadd.f32 %v3916_v43, %v1077_v16 }
 0x21a   : > { %v1121_v52 = vmax.f32 %v1078_v51, 0.0 }
 0x21c   : > { %2822 = vmatmul.msk.f32.gmra.mxu0 %vm1147_vm0, %v1121_v52 }
 0x21f   : > { %v1080_v53 = vpop.f32.mrf.mxu3 }
 0x220   : > { %v1081_v54 = vadd.f32 %v3916_v43, %v1080_v53 }
 0x222   : > { %v1122_v55 = vmax.f32 %v1081_v54, 0.0 }
 0x224   : > { %2823 = vmatmul.msk.f32.gmra.mxu0 %vm1147_vm0, %v1122_v55  ;;  %v1401_v55 = vld [vmem:[%s4588_s11 + $0x20] sm:$0xff] }
 0x225   : > { %1468 = vmatpush.msrb.mxu2 %v1401_v55 }
 0x227   : > { %v1083_v56 = vpop.f32.mrf.mxu3 }
 0x228   : > { %v1084_v57 = vadd.f32 %v3916_v43, %v1083_v56 }
 0x22a   : > { %v1123_v58 = vmax.f32 %v1084_v57, 0.0 }
 0x22c   : > { %2824 = vmatmul.msk.f32.gmra.mxu0 %vm1147_vm0, %v1123_v58 }
 0x22f   : > { %v1086_v59 = vpop.f32.mrf.mxu3 }
 0x230   : > { %v1087_v60 = vadd.f32 %v3916_v43, %v1086_v59 }
 0x232   : > { %v1124_v61 = vmax.f32 %v1087_v60, 0.0 }
 0x234   : > { %2825 = vmatmul.msk.f32.gmra.mxu0 %vm1147_vm0, %v1124_v61  ;;  %v1400_v61 = vld [vmem:[%s4588_s11 + $0x18] sm:$0xff] }
 0x235   : > { %1469 = vmatpush.msrb.mxu2 %v1400_v61 }
 0x237   : > { %v1089_v62 = vpop.f32.mrf.mxu3 }
 0x238   : > { %v1090_v63 = vadd.f32 %v3916_v43, %v1089_v62 }
 0x23a   : > { %v1125_v0 = vmax.f32 %v1090_v63, 0.0 }
 0x23c   : > { %2826 = vmatmul.msk.f32.gmra.mxu0 %vm1147_vm0, %v1125_v0 }
 0x23f   : > { %v1092_v2 = vpop.f32.mrf.mxu3 }
 0x240   : > { %v1093_v3 = vadd.f32 %v3916_v43, %v1092_v2 }
 0x242   : > { %v1126_v4 = vmax.f32 %v1093_v3, 0.0 }
 0x244   : > { %2827 = vmatmul.msk.f32.gmra.mxu0 %vm1147_vm0, %v1126_v4 }
 0x247   : > { %v1095_v5 = vpop.f32.mrf.mxu3 }
 0x248   : > { %v1096_v6 = vadd.f32 %v3916_v43, %v1095_v5  ;;  %v1399_v5 = vld [vmem:[%s4588_s11 + $0x10] sm:$0xff] }
 0x249   : > { %1470 = vmatpush.msrb.mxu2 %v1399_v5 }
 0x24a   : > { %v1127_v7 = vmax.f32 %v1096_v6, 0.0 }
 0x24c   : > { %2828 = vmatmul.msk.f32.gmra.mxu0 %vm1147_vm0, %v1127_v7 }
 0x24f   : > { %v1098_v8 = vpop.f32.mrf.mxu3 }
 0x250   : > { %v1099_v9 = vadd.f32 %v3916_v43, %v1098_v8 }
 0x252   : > { %v1128_v10 = vmax.f32 %v1099_v9, 0.0 }
 0x254   : > { %2829 = vmatmul.msk.f32.gmra.mxu0 %vm1147_vm0, %v1128_v10  ;;  %v1839_v10 = vld [vmem:[#allocation11] sm:$0xff] }
 0x257   : > { %v1101_v11 = vpop.f32.mrf.mxu3 }
 0x258   : > { %v1102_v12 = vadd.f32 %v3916_v43, %v1101_v11  ;;  %v1840_v11 = vld [vmem:[#allocation11 + $0x8] sm:$0xff] }
 0x25a   : > { %v1129_v13 = vmax.f32 %v1102_v12, 0.0  ;;  %v1970_v12 = vmul.f32 %v1839_v10, %v1839_v10 }
 0x25c   : > { %2830 = vmatmul.msk.f32.gmra.mxu0 %vm1147_vm0, %v1129_v13  ;;  %v1971_v13 = vmul.f32 %v1840_v11, %v1840_v11 }
 0x25f   : > { %v1104_v14 = vpop.f32.mrf.mxu3 }
 0x260   : > { %v1105_v15 = vadd.f32 %v3916_v43, %v1104_v14 }
 0x262   : > { %v1130_v17 = vmax.f32 %v1105_v15, 0.0  ;;  %v1398_v15 = vld [vmem:[%s4588_s11 + $0x8] sm:$0xff] }
 0x263   : > { %1471 = vmatpush.msrb.mxu2 %v1398_v15 }
 0x264   : > { %2831 = vmatmul.msk.f32.gmra.mxu0 %vm1147_vm0, %v1130_v17  ;;  %v4058_v17 = vadd.f32 %v1971_v13, %v1970_v12  ;;  %v1548_v13 = vld [vmem:[#allocation8 + $0x50] sm:$0xff] }
 0x267   : > { %v1107_v18 = vpop.f32.mrf.mxu3 }
 0x268   : > { %v1108_v19 = vadd.f32 %v3916_v43, %v1107_v18 }
 0x26a   : > { %v1131_v20 = vmax.f32 %v1108_v19, 0.0 }
 0x26c   : > { %2832 = vmatmul.msk.f32.gmra.mxu0 %vm1147_vm0, %v1131_v20 }
 0x26f   : > { %v1110_v21 = vpop.f32.mrf.mxu3 }
 0x270   : > { %v1111_v22 = vadd.f32 %v3916_v43, %v1110_v21 }
 0x272   : > { %v1132_v23 = vmax.f32 %v1111_v22, 0.0 }
 0x274   : > { %2833 = vmatmul.msk.f32.gmra.mxu0 %vm1147_vm0, %v1132_v23 }
 0x277   : > { %v1113_v24 = vpop.f32.mrf.mxu3 }
 0x278   : > { %v1114_v25 = vadd.f32 %v3916_v43, %v1113_v24 }
 0x27a   : > { %v1133_v26 = vmax.f32 %v1114_v25, 0.0  ;;  %v1397_v25 = vld [vmem:[%s4588_s11] sm:$0xff] }
 0x27b   : > { %1472 = vmatpush.msrb.mxu2 %v1397_v25  ;;  %v1546_v25 = vld [vmem:[#allocation8 + $0x40] sm:$0xff] }
 0x27c   : > { %2834 = vmatmul.msk.f32.gmra.mxu0 %vm1147_vm0, %v1133_v26 }
 0x27d   : > { %1855 = vmatpush.msra.mxu2 %v1840_v11 }
 0x27f   : > { %v1116_v27 = vpop.f32.mrf.mxu3  ;;  %1856 = vmatpush.msra.mxu2 %v1839_v10 }
 0x280   : > { %v1117_v28 = vadd.f32 %v3916_v43, %v1116_v27 }
 0x282   : > { %v1134_v29 = vmax.f32 %v1117_v28, 0.0 }
 0x284   : > { %2835 = vmatmul.msk.f32.gmra.mxu0 %vm1147_vm0, %v1134_v29 }
 0x289   : > { %v1213_v31 = vpop.f32.mrf.mxu0 }
 0x28a   : > { %v3959_v32 = vadd.f32 %v3956_v30, %v1213_v31 }
 0x28c   : > { %2836 = vmatmul.msk.f32.vlgmr.msrb.gmra.mxu1 %vm1267_vm1, %v3959_v32  ;;  %v1906_v33 = vmul.f32 %v3959_v32, %v3959_v32 }
 0x28e   : > { %v1922_v35 = vsel %vm1267_vm1, %v1906_v33, 0.0 }
 0x28f   : > { %1923 = vadd.xlane.f32.xlu0 %v1922_v35 }
 0x291   : > { %v1216_v36 = vpop.f32.mrf.mxu0 }
 0x292   : > { %v3970_v37 = vadd.f32 %v3956_v30, %v1216_v36 }
 0x294   : > { %2837 = vmatmul.msk.f32.gmra.mxu1 %vm1267_vm1, %v3970_v37  ;;  %v1907_v38 = vmul.f32 %v3970_v37, %v3970_v37 }
 0x296   : > { %v1925_v39 = vsel %vm1267_vm1, %v1907_v38, 0.0 }
 0x297   : > { %1926 = vadd.xlane.f32.xlu0 %v1925_v39 }
 0x299   : > { %v1219_v40 = vpop.f32.mrf.mxu0 }
 0x29a   : > { %v3978_v41 = vadd.f32 %v3956_v30, %v1219_v40 }
 0x29c   : > { %2838 = vmatmul.msk.f32.gmra.mxu1 %vm1267_vm1, %v3978_v41  ;;  %v1908_v43 = vmul.f32 %v3978_v41, %v3978_v41 }
 0x29e   : > { %v1928_v44 = vsel %vm1267_vm1, %v1908_v43, 0.0 }
 0x29f   : > { %1929 = vadd.xlane.f32.xlu1 %v1928_v44 }
 0x2a1   : > { %v1222_v45 = vpop.f32.mrf.mxu0 }
 0x2a2   : > { %v3989_v46 = vadd.f32 %v3956_v30, %v1222_v45 }
 0x2a4   : > { %2839 = vmatmul.msk.f32.gmra.mxu1 %vm1267_vm1, %v3989_v46  ;;  %v1909_v47 = vmul.f32 %v3989_v46, %v3989_v46 }
 0x2a6   : > { %v1931_v49 = vsel %vm1267_vm1, %v1909_v47, 0.0 }
 0x2a7   : > { %1932 = vadd.xlane.f32.xlu1 %v1931_v49  ;;  %v4115_v49 = vld [vmem:[%s4634_s13] ss:$0 sm:$0xff]  ;;  %s2897_s13 = sshll.u32 %s3556_s24, 8 }
 0x2a9   : > { %v1225_v50 = vpop.f32.mrf.mxu0 }
 0x2aa   : > { %v4000_v16 = vadd.f32 %v3956_v30, %v1225_v50 }
 0x2ac   : > { %2840 = vmatmul.msk.f32.gmra.mxu1 %vm1267_vm1, %v4000_v16  ;;  %v1910_v51 = vmul.f32 %v4000_v16, %v4000_v16 }
 0x2ae   : > { %v1934_v52 = vsel %vm1267_vm1, %v1910_v51, 0.0 }
 0x2af   : > { %1935 = vadd.xlane.f32.xlu2 %v1934_v52 }
 0x2b1   : > { %v1228_v53 = vpop.f32.mrf.mxu0 }
 0x2b2   : > { %v4008_v54 = vadd.f32 %v3956_v30, %v1228_v53 }
 0x2b4   : > { %2841 = vmatmul.msk.f32.gmra.mxu1 %vm1267_vm1, %v4008_v54  ;;  %v1911_v56 = vmul.f32 %v4008_v54, %v4008_v54 }
 0x2b6   : > { %v1937_v57 = vsel %vm1267_vm1, %v1911_v56, 0.0 }
 0x2b7   : > { %1938 = vadd.xlane.f32.xlu2 %v1937_v57  ;;  %v1552_v57 = vld [vmem:[#allocation8 + $0x70] sm:$0xff] }
 0x2b9   : > { %v1231_v58 = vpop.f32.mrf.mxu0 }
 0x2ba   : > { %v4019_v59 = vadd.f32 %v3956_v30, %v1231_v58 }
 0x2bc   : > { %2842 = vmatmul.msk.f32.gmra.mxu1 %vm1267_vm1, %v4019_v59  ;;  %v1912_v60 = vmul.f32 %v4019_v59, %v4019_v59 }
 0x2be   : > { %v1940_v62 = vsel %vm1267_vm1, %v1912_v60, 0.0 }
 0x2bf   : > { %1941 = vadd.xlane.f32.xlu0 %v1940_v62  ;;  %v1551_v62 = vld [vmem:[#allocation8 + $0x68] sm:$0xff] }
 0x2c1   : > { %v1234_v63 = vpop.f32.mrf.mxu0 }
 0x2c2   : > { %v4030_v0 = vadd.f32 %v3956_v30, %v1234_v63 }
 0x2c4   : > { %2843 = vmatmul.msk.f32.gmra.mxu1 %vm1267_vm1, %v4030_v0  ;;  %v1913_v1 = vmul.f32 %v4030_v0, %v4030_v0 }
 0x2c6   : > { %v1943_v2 = vsel %vm1267_vm1, %v1913_v1, 0.0 }
 0x2c7   : > { %1944 = vadd.xlane.f32.xlu1 %v1943_v2 }
 0x2c9   : > { %v1237_v3 = vpop.f32.mrf.mxu0 }
 0x2ca   : > { %v4038_v4 = vadd.f32 %v3956_v30, %v1237_v3  ;;  %v1550_v3 = vld [vmem:[#allocation8 + $0x60] sm:$0xff] }
 0x2cc   : > { %2844 = vmatmul.msk.f32.gmra.mxu1 %vm1267_vm1, %v4038_v4  ;;  %v1914_v6 = vmul.f32 %v4038_v4, %v4038_v4 }
 0x2ce   : > { %v1946_v7 = vsel %vm1267_vm1, %v1914_v6, 0.0 }
 0x2cf   : > { %1947 = vadd.xlane.f32.xlu2 %v1946_v7 }
 0x2d1   : > { %v1240_v8 = vpop.f32.mrf.mxu0 }
 0x2d2   : > { %v4049_v9 = vadd.f32 %v3956_v30, %v1240_v8  ;;  %v1549_v8 = vld [vmem:[#allocation8 + $0x58] sm:$0xff] }
 0x2d4   : > { %2845 = vmatmul.msk.f32.gmra.mxu1 %vm1267_vm1, %v4049_v9  ;;  %v1915_v14 = vmul.f32 %v4049_v9, %v4049_v9 }
 0x2d6   : > { %v1949_v18 = vsel %vm1267_vm1, %v1915_v14, 0.0 }
 0x2d7   : > { %1950 = vadd.xlane.f32.xlu0 %v1949_v18 }
 0x2d9   : > { %v1243_v19 = vpop.f32.mrf.mxu0 }
 0x2da   : > { %v4062_v20 = vadd.f32 %v3956_v30, %v1243_v19  ;;  %v1547_v19 = vld [vmem:[#allocation8 + $0x48] sm:$0xff] }
 0x2dc   : > { %2846 = vmatmul.msk.f32.gmra.mxu1 %vm1267_vm1, %v4062_v20  ;;  %v1916_v21 = vmul.f32 %v4062_v20, %v4062_v20 }
 0x2de   : > { %v1952_v22 = vsel %vm1267_vm1, %v1916_v21, 0.0 }
 0x2df   : > { %1953 = vadd.xlane.f32.xlu1 %v1952_v22 }
 0x2e1   : > { %v1246_v23 = vpop.f32.mrf.mxu0 }
 0x2e2   : > { %v4070_v24 = vadd.f32 %v3956_v30, %v1246_v23 }
 0x2e4   : > { %2847 = vmatmul.msk.f32.gmra.mxu1 %vm1267_vm1, %v4070_v24  ;;  %v1917_v26 = vmul.f32 %v4070_v24, %v4070_v24 }
 0x2e6   : > { %v1955_v27 = vsel %vm1267_vm1, %v1917_v26, 0.0 }
 0x2e7   : > { %1956 = vadd.xlane.f32.xlu2 %v1955_v27 }
 0x2e9   : > { %v1249_v28 = vpop.f32.mrf.mxu0 }
 0x2ea   : > { %v4081_v29 = vadd.f32 %v3956_v30, %v1249_v28 }
 0x2ec   : > { %2848 = vmatmul.msk.f32.gmra.mxu1 %vm1267_vm1, %v4081_v29  ;;  %v1918_v31 = vmul.f32 %v4081_v29, %v4081_v29 }
 0x2ee   : > { %v1958_v33 = vsel %vm1267_vm1, %v1918_v31, 0.0  ;;  %v1545_v31 = vld [vmem:[#allocation8 + $0x38] sm:$0xff] }
 0x2ef   : > { %1959 = vadd.xlane.f32.xlu0 %v1958_v33 }
 0x2f1   : > { %v1252_v34 = vpop.f32.mrf.mxu0 }
 0x2f2   : > { %v4089_v35 = vadd.f32 %v3956_v30, %v1252_v34 }
 0x2f4   : > { %2849 = vmatmul.msk.f32.gmra.mxu1 %vm1267_vm1, %v4089_v35  ;;  %v1919_v36 = vmul.f32 %v4089_v35, %v4089_v35 }
 0x2f6   : > { %v1961_v38 = vsel %vm1267_vm1, %v1919_v36, 0.0 }
 0x2f7   : > { %1962 = vadd.xlane.f32.xlu1 %v1961_v38  ;;  %v1544_v38 = vld [vmem:[#allocation8 + $0x30] sm:$0xff] }
 0x2f9   : > { %v1255_v39 = vpop.f32.mrf.mxu0 }
 0x2fa   : > { %v4097_v40 = vadd.f32 %v3956_v30, %v1255_v39 }
 0x2fc   : > { %2850 = vmatmul.msk.f32.gmra.mxu1 %vm1267_vm1, %v4097_v40  ;;  %v1920_v42 = vmul.f32 %v4097_v40, %v4097_v40 }
 0x2fe   : > { %v1964_v43 = vsel %vm1267_vm1, %v1920_v42, 0.0 }
 0x2ff   : > { %1965 = vadd.xlane.f32.xlu2 %v1964_v43 }
 0x301   : > { %v1258_v44 = vpop.f32.mrf.mxu0 }
 0x302   : > { %v4105_v45 = vadd.f32 %v3956_v30, %v1258_v44  ;;  %v1553_v30 = vld [vmem:[#allocation8 + $0x78] sm:$0xff]  ;;  %v1543_v44 = vld [vmem:[#allocation8 + $0x28] sm:$0xff] }
 0x303   : > { %1558 = vmatpush.msra.mxu3 %v1553_v30 }
 0x304   : > { %2851 = vmatmul.msk.f32.gmra.mxu1 %vm1267_vm1, %v4105_v45  ;;  %v1921_v47 = vmul.f32 %v4105_v45, %v4105_v45 }
 0x305   : > { %1559 = vmatpush.msra.mxu3 %v1552_v57 }
 0x306   : > { %v1967_v48 = vsel %vm1267_vm1, %v1921_v47, 0.0 }
 0x307   : > { %1968 = vadd.xlane.f32.xlu0 %v1967_v48  ;;  %1560 = vmatpush.msra.mxu3 %v1551_v62  ;;  %v1538_v62 = vld [vmem:[#allocation8] sm:$0xff] }
 0x309   : > { %v1333_v50 = vpop.f32.mrf.mxu1  ;;  %1561 = vmatpush.msra.mxu3 %v1550_v3 }
 0x30a   : > { %v1334_v51 = vadd.f32 %v4115_v49, %v1333_v50 }
 0x30b   : > { %1562 = vmatpush.msra.mxu3 %v1549_v8 }
 0x30c   : > { %v1381_v52 = vmax.f32 %v1334_v51, 0.0  ;;  %v1542_v51 = vld [vmem:[#allocation8 + $0x20] sm:$0xff] }
 0x30d   : > { %1563 = vmatpush.msra.mxu3 %v1548_v13  ;;  %v1670_v13 = vld [vmem:[#allocation10 + $0xf8] sm:$0xff] }
 0x30e   : > { %2852 = vmatmul.msk.f32.vlgmr.msrb.gmra.mxu2 %vm1147_vm0, %v1381_v52  ;;  %v1541_v52 = vld [vmem:[#allocation8 + $0x18] sm:$0xff]  ;;  %1742 = vmatpush.msra.mxu1 %v1670_v13 }
 0x30f   : > { %1564 = vmatpush.msra.mxu3 %v1547_v19 }
 0x311   : > { %v1336_v53 = vpop.f32.mrf.mxu1  ;;  %1565 = vmatpush.msra.mxu3 %v1546_v25  ;;  %v1666_v25 = vld [vmem:[#allocation10 + $0xd8] sm:$0xff] }
 0x312   : > { %v1337_v55 = vadd.f32 %v4115_v49, %v1336_v53 }
 0x313   : > { %1566 = vmatpush.msra.mxu3 %v1545_v31  ;;  %v1664_v31 = vld [vmem:[#allocation10 + $0xc8] sm:$0xff] }
 0x314   : > { %v1382_v56 = vmax.f32 %v1337_v55, 0.0 }
 0x315   : > { %1567 = vmatpush.msra.mxu3 %v1544_v38  ;;  %v1662_v38 = vld [vmem:[#allocation10 + $0xb8] sm:$0xff] }
 0x316   : > { %2853 = vmatmul.msk.f32.gmra.mxu2 %vm1147_vm0, %v1382_v56  ;;  %v1540_v56 = vld [vmem:[#allocation8 + $0x10] sm:$0xff] }
 0x317   : > { %1568 = vmatpush.msra.mxu3 %v1543_v44  ;;  %v1660_v44 = vld [vmem:[#allocation10 + $0xa8] sm:$0xff] }
 0x319   : > { %v1339_v58 = vpop.f32.mrf.mxu1  ;;  %1569 = vmatpush.msra.mxu3 %v1542_v51  ;;  %v1658_v51 = vld [vmem:[#allocation10 + $0x98] sm:$0xff] }
 0x31a   : > { %v1340_v60 = vadd.f32 %v4115_v49, %v1339_v58 }
 0x31b   : > { %1570 = vmatpush.msra.mxu3 %v1541_v52 }
 0x31c   : > { %v1383_v61 = vmax.f32 %v1340_v60, 0.0  ;;  %v1539_v60 = vld [vmem:[#allocation8 + $0x8] sm:$0xff] }
 0x31d   : > { %1571 = vmatpush.msra.mxu3 %v1540_v56 }
 0x31e   : > { %2854 = vmatmul.msk.f32.gmra.mxu2 %vm1147_vm0, %v1383_v61 }
 0x31f   : > { %1572 = vmatpush.msra.mxu3 %v1539_v60  ;;  %v1654_v60 = vld [vmem:[#allocation10 + $0x78] sm:$0xff] }
 0x321   : > { %v1342_v63 = vpop.f32.mrf.mxu1  ;;  %1573 = vmatpush.msra.mxu3 %v1538_v62 }
 0x322   : > { %v1343_v1 = vadd.f32 %v4115_v49, %v1342_v63 }
 0x324   : > { %v1384_v2 = vmax.f32 %v1343_v1, 0.0 }
 0x326   : > { %2855 = vmatmul.msk.f32.gmra.mxu2 %vm1147_vm0, %v1384_v2 }
 0x329   : > { %v1345_v5 = vpop.f32.mrf.mxu1 }
 0x32a   : > { %v1346_v6 = vadd.f32 %v4115_v49, %v1345_v5 }
 0x32c   : > { %v1385_v7 = vmax.f32 %v1346_v6, 0.0 }
 0x32e   : > { %2856 = vmatmul.msk.f32.gmra.mxu2 %vm1147_vm0, %v1385_v7  ;;  %v4154_v7 = vld [vmem:[%s4635_s12] ss:$0 sm:$0xff]  ;;  %s4638_s12 = sld [smem:[#allocation35_spill]] }
 0x331   : > { %v1348_v10 = vpop.f32.mrf.mxu1 }
 0x332   : > { %v1349_v11 = vadd.f32 %v4115_v49, %v1348_v10 }
 0x334   : > { %v1386_v12 = vmax.f32 %v1349_v11, 0.0  ;;  %s2641_s22 = scalar_lea.hbm %s4638_s12, %s2897_s13  ;;  %s3327_s3 = scalar_lea.hbm %s4638_s12, 512 }
 0x336   : > { %2857 = vmatmul.msk.f32.gmra.mxu2 %vm1147_vm0, %v1386_v12  ;;  %v1669_v12 = vld [vmem:[#allocation10 + $0xf0] sm:$0xff] }
 0x337   : > { %1677 = vmatpush.msra.mxu0 %v1669_v12  ;;  %v1648_v12 = vld [vmem:[#allocation10 + $0x48] sm:$0xff] }
 0x339   : > { %v1351_v14 = vpop.f32.mrf.mxu1 }
 0x33a   : > { %v1352_v15 = vadd.f32 %v4115_v49, %v1351_v14 }
 0x33c   : > { %v1387_v18 = vmax.f32 %v1352_v15, 0.0  ;;  %v1667_v15 = vld [vmem:[#allocation10 + $0xe0] sm:$0xff] }
 0x33d   : > { %1678 = vmatpush.msra.mxu0 %v1667_v15  ;;  %v1644_v15 = vld [vmem:[#allocation10 + $0x28] sm:$0xff] }
 0x33e   : > { %2858 = vmatmul.msk.f32.gmra.mxu2 %vm1147_vm0, %v1387_v18  ;;  %v1668_v18 = vld [vmem:[#allocation10 + $0xe8] sm:$0xff] }
 0x33f   : > { %1743 = vmatpush.msra.mxu1 %v1668_v18 }
 0x341   : > { %v1354_v21 = vpop.f32.mrf.mxu1  ;;  %1744 = vmatpush.msra.mxu1 %v1666_v25  ;;  %v1639_v25 = vld [vmem:[#allocation10] sm:$0xff] }
 0x342   : > { %v1355_v22 = vadd.f32 %v4115_v49, %v1354_v21 }
 0x343   : > { %1745 = vmatpush.msra.mxu1 %v1664_v31 }
 0x344   : > { %v1388_v23 = vmax.f32 %v1355_v22, 0.0 }
 0x345   : > { %1746 = vmatpush.msra.mxu1 %v1662_v38 }
 0x346   : > { %2859 = vmatmul.msk.f32.gmra.mxu2 %vm1147_vm0, %v1388_v23  ;;  %v1665_v23 = vld [vmem:[#allocation10 + $0xd0] sm:$0xff] }
 0x347   : > { %1679 = vmatpush.msra.mxu0 %v1665_v23  ;;  %1747 = vmatpush.msra.mxu1 %v1660_v44 }
 0x349   : > { %v1357_v26 = vpop.f32.mrf.mxu1  ;;  %1748 = vmatpush.msra.mxu1 %v1658_v51 }
 0x34a   : > { %v1358_v27 = vadd.f32 %v4115_v49, %v1357_v26 }
 0x34c   : > { %v1389_v28 = vmax.f32 %v1358_v27, 0.0 }
 0x34e   : > { %2860 = vmatmul.msk.f32.gmra.mxu2 %vm1147_vm0, %v1389_v28  ;;  %v1663_v28 = vld [vmem:[#allocation10 + $0xc0] sm:$0xff] }
 0x34f   : > { %1680 = vmatpush.msra.mxu0 %v1663_v28 }
 0x351   : > { %v1360_v33 = vpop.f32.mrf.mxu1 }
 0x352   : > { %v1361_v34 = vadd.f32 %v4115_v49, %v1360_v33 }
 0x354   : > { %v1390_v36 = vmax.f32 %v1361_v34, 0.0 }
 0x356   : > { %2861 = vmatmul.msk.f32.gmra.mxu2 %vm1147_vm0, %v1390_v36  ;;  %v1661_v36 = vld [vmem:[#allocation10 + $0xb0] sm:$0xff] }
 0x357   : > { %1681 = vmatpush.msra.mxu0 %v1661_v36 }
 0x359   : > { %v1363_v39 = vpop.f32.mrf.mxu1 }
 0x35a   : > { %v1364_v42 = vadd.f32 %v4115_v49, %v1363_v39 }
 0x35c   : > { %v1391_v43 = vmax.f32 %v1364_v42, 0.0 }
 0x35e   : > { %2862 = vmatmul.msk.f32.gmra.mxu2 %vm1147_vm0, %v1391_v43  ;;  %v1659_v43 = vld [vmem:[#allocation10 + $0xa0] sm:$0xff] }
 0x35f   : > { %1682 = vmatpush.msra.mxu0 %v1659_v43 }
 0x361   : > { %v1366_v47 = vpop.f32.mrf.mxu1 }
 0x362   : > { %v1367_v48 = vadd.f32 %v4115_v49, %v1366_v47 }
 0x364   : > { %v1392_v50 = vmax.f32 %v1367_v48, 0.0 }
 0x366   : > { %2863 = vmatmul.msk.f32.gmra.mxu2 %vm1147_vm0, %v1392_v50  ;;  %v1657_v50 = vld [vmem:[#allocation10 + $0x90] sm:$0xff] }
 0x367   : > { %1683 = vmatpush.msra.mxu0 %v1657_v50 }
 0x369   : > { %v1369_v30 = vpop.f32.mrf.mxu1 }
 0x36a   : > { %v1370_v53 = vadd.f32 %v4115_v49, %v1369_v30 }
 0x36c   : > { %v1393_v55 = vmax.f32 %v1370_v53, 0.0  ;;  %v1655_v53 = vld [vmem:[#allocation10 + $0x80] sm:$0xff] }
 0x36d   : > { %1684 = vmatpush.msra.mxu0 %v1655_v53 }
 0x36e   : > { %2864 = vmatmul.msk.f32.gmra.mxu2 %vm1147_vm0, %v1393_v55  ;;  %v1656_v55 = vld [vmem:[#allocation10 + $0x88] sm:$0xff] }
 0x36f   : > { %1749 = vmatpush.msra.mxu1 %v1656_v55 }
 0x371   : > { %v1372_v57 = vpop.f32.mrf.mxu1  ;;  %1750 = vmatpush.msra.mxu1 %v1654_v60 }
 0x372   : > { %v1373_v58 = vadd.f32 %v4115_v49, %v1372_v57 }
 0x374   : > { %v1394_v61 = vmax.f32 %v1373_v58, 0.0  ;;  %v1653_v58 = vld [vmem:[#allocation10 + $0x70] sm:$0xff] }
 0x375   : > { %1685 = vmatpush.msra.mxu0 %v1653_v58 }
 0x376   : > { %2865 = vmatmul.msk.f32.gmra.mxu2 %vm1147_vm0, %v1394_v61 }
 0x379   : > { %v1375_v63 = vpop.f32.mrf.mxu1 }
 0x37a   : > { %v1376_v1 = vadd.f32 %v4115_v49, %v1375_v63  ;;  %v1651_v63 = vld [vmem:[#allocation10 + $0x60] sm:$0xff] }
 0x37b   : > { %1686 = vmatpush.msra.mxu0 %v1651_v63 }
 0x37c   : > { %v1395_v2 = vmax.f32 %v1376_v1, 0.0  ;;  %v1652_v1 = vld [vmem:[#allocation10 + $0x68] sm:$0xff] }
 0x37d   : > { %1751 = vmatpush.msra.mxu1 %v1652_v1 }
 0x37e   : > { %2866 = vmatmul.msk.f32.gmra.mxu2 %vm1147_vm0, %v1395_v2 }
 0x381   : > { %v1378_v3 = vpop.f32.mrf.mxu1 }
 0x382   : > { %v1379_v5 = vadd.f32 %v4115_v49, %v1378_v3 }
 0x384   : > { %v1396_v6 = vmax.f32 %v1379_v5, 0.0  ;;  %v1649_v5 = vld [vmem:[#allocation10 + $0x50] sm:$0xff] }
 0x385   : > { %1687 = vmatpush.msra.mxu0 %v1649_v5 }
 0x386   : > { %2867 = vmatmul.msk.f32.gmra.mxu2 %vm1147_vm0, %v1396_v6  ;;  %v1650_v6 = vld [vmem:[#allocation10 + $0x58] sm:$0xff] }
 0x387   : > { %1752 = vmatpush.msra.mxu1 %v1650_v6 }
 0x389   : > { %1753 = vmatpush.msra.mxu1 %v1648_v12 }
 0x38e   : > { %2868 = vmatmul.msk.f32.vlgmr.msra.gmra.mxu2 %vm1267_vm1, %v3959_v32 }
 0x391   : > { %v1474_v8 = vpop.f32.mrf.mxu2 }
 0x392   : > { %v1475_v10 = vadd.f32 %v4154_v7, %v1474_v8 }
 0x394   : > { %v1522_v11 = vmax.f32 %v1475_v10, 0.0 }
 0x396   : > { %1574 = vmatmul.f32.vlgmr.msra.gmra.mxu3 %v1522_v11  ;;  %2869 = vmatmul.msk.f32.gmra.mxu2 %vm1267_vm1, %v3970_v37  ;;  %v1647_v11 = vld [vmem:[#allocation10 + $0x40] sm:$0xff] }
 0x397   : > { %1688 = vmatpush.msra.mxu0 %v1647_v11 }
 0x399   : > { %v1477_v49 = vpop.f32.mrf.mxu2 }
 0x39a   : > { %v1478_v32 = vadd.f32 %v4154_v7, %v1477_v49 }
 0x39c   : > { %v1523_v14 = vmax.f32 %v1478_v32, 0.0  ;;  %v1646_v32 = vld [vmem:[#allocation10 + $0x38] sm:$0xff] }
 0x39d   : > { %1754 = vmatpush.msra.mxu1 %v1646_v32 }
 0x39e   : > { %1577 = vmatmul.f32.gmra.mxu3 %v1523_v14  ;;  %2870 = vmatmul.msk.f32.gmra.mxu2 %vm1267_vm1, %v3978_v41  ;;  %v1643_v14 = vld [vmem:[#allocation10 + $0x20] sm:$0xff] }
 0x39f   : > { %1755 = vmatpush.msra.mxu1 %v1644_v15 }
 0x3a1   : > { %v1480_v19 = vpop.f32.mrf.mxu2 }
 0x3a2   : > { %v1481_v21 = vadd.f32 %v4154_v7, %v1480_v19  ;;  %v1973_v19 = vrot.slane %v4058_v17, 4 }
 0x3a4   : > { %v1524_v22 = vmax.f32 %v1481_v21, 0.0  ;;  %v1641_v21 = vld [vmem:[#allocation10 + $0x10] sm:$0xff] }
 0x3a6   : > { %1580 = vmatmul.f32.gmra.mxu3 %v1524_v22  ;;  %2871 = vmatmul.msk.f32.gmra.mxu2 %vm1267_vm1, %v3989_v46  ;;  %v1642_v22 = vld [vmem:[#allocation10 + $0x18] sm:$0xff] }
 0x3a7   : > { %1756 = vmatpush.msra.mxu1 %v1642_v22 }
 0x3a9   : > { %v1483_v37 = vpop.f32.mrf.mxu2 }
 0x3aa   : > { %v1484_v26 = vadd.f32 %v4154_v7, %v1483_v37  ;;  %v1974_v37 = vadd.f32 %v1973_v19, %v4058_v17  ;;  %v1924_v17 = vpop.xlane.xlu0 %1923 }
 0x3ac   : > { %v1525_v27 = vmax.f32 %v1484_v26, 0.0 }
 0x3ae   : > { %1583 = vmatmul.f32.gmra.mxu3 %v1525_v27  ;;  %2872 = vmatmul.msk.f32.gmra.mxu2 %vm1267_vm1, %v4000_v16  ;;  %v1975_v27 = vrot.slane %v1974_v37, 2 }
 0x3b1   : > { %v1486_v41 = vpop.f32.mrf.mxu2 }
 0x3b2   : > { %v1487_v33 = vadd.f32 %v4154_v7, %v1486_v41  ;;  %v1976_v41 = vadd.f32 %v1975_v27, %v1974_v37 }
 0x3b4   : > { %v1526_v34 = vmax.f32 %v1487_v33, 0.0 }
 0x3b6   : > { %1586 = vmatmul.f32.gmra.mxu3 %v1526_v34  ;;  %2873 = vmatmul.msk.f32.gmra.mxu2 %vm1267_vm1, %v4008_v54  ;;  %v1977_v34 = vrot.slane %v1976_v41, 1 }
 0x3b9   : > { %v1489_v46 = vpop.f32.mrf.mxu2 }
 0x3ba   : > { %v1490_v39 = vadd.f32 %v4154_v7, %v1489_v46  ;;  %v4204_v46 = vadd.f32 %v1977_v34, %v1976_v41 }
 0x3bc   : > { %v1527_v42 = vmax.f32 %v1490_v39, 0.0  ;;  %v1979_v39 = vadd.f32 %v4204_v46, %v1924_v17 }
 0x3be   : > { %1589 = vmatmul.f32.gmra.mxu3 %v1527_v42  ;;  %2874 = vmatmul.msk.f32.gmra.mxu2 %vm1267_vm1, %v4019_v59 }
 0x3c1   : > { %v1492_v16 = vpop.f32.mrf.mxu2 }
 0x3c2   : > { %v1493_v47 = vadd.f32 %v4154_v7, %v1492_v16  ;;  %v4210_v16 = vld [vmem:[%s4636_s10] ss:$0 sm:$0xff]  ;;  %s2644_s10 = sshll.u32 %s2641_s22, 4  ;;  %s4519_s10 = int_to_ptr.hbm [resolvable:$true] %s2644_s10 }
 0x3c3   : > { %s3321_s17 = sshra.s32 %s4519_s10, 4  ;;  %s3322_s17 = int_to_ptr.hbm [resolvable:$true] %s3321_s17 }
 0x3c4   : > { %v1528_v48 = vmax.f32 %v1493_v47, 0.0  ;;  %p3328_p12 = scmp.lt.s32.totalorder %s3322_s17, %s4638_s12 }
 0x3c6   : > { %1592 = vmatmul.f32.gmra.mxu3 %v1528_v48  ;;  %2875 = vmatmul.msk.f32.gmra.mxu2 %vm1267_vm1, %v4030_v0 }
 0x3c9   : > { %v1495_v54 = vpop.f32.mrf.mxu2 }
 0x3ca   : > { %v1496_v52 = vadd.f32 %v4154_v7, %v1495_v54 }
 0x3cc   : > { %v1529_v30 = vmax.f32 %v1496_v52, 0.0  ;;  %v1930_v52 = vpop.xlane.xlu1 %1929 }
 0x3ce   : > { %1595 = vmatmul.f32.gmra.mxu3 %v1529_v30  ;;  %2876 = vmatmul.msk.f32.gmra.mxu2 %vm1267_vm1, %v4038_v4 }
 0x3d1   : > { %v1498_v59 = vpop.f32.mrf.mxu2 }
 0x3d2   : > { %v1499_v56 = vadd.f32 %v4154_v7, %v1498_v59 }
 0x3d4   : > { %v1530_v57 = vmax.f32 %v1499_v56, 0.0 }
 0x3d6   : > { %1598 = vmatmul.f32.gmra.mxu3 %v1530_v57  ;;  %2877 = vmatmul.msk.f32.gmra.mxu2 %vm1267_vm1, %v4049_v9  ;;  %v2299_v57 = vlaneseq }
 0x3d8   : > { %v4216_v5 = vand.u32 127, %v2299_v57 }
 0x3d9   : > { %v1501_v0 = vpop.f32.mrf.mxu2 }
 0x3da   : > { %v1502_v61 = vadd.f32 %v4154_v7, %v1501_v0  ;;  %vm2301_vm5 = vcmp.lt.s32.totalorder %v4216_v5, 10 }
 0x3dc   : > { %v1531_v62 = vmax.f32 %v1502_v61, 0.0  ;;  %v1981_v61 = vadd.f32 %v4204_v46, %v1930_v52 }
 0x3de   : > { %1601 = vmatmul.f32.gmra.mxu3 %v1531_v62  ;;  %2878 = vmatmul.msk.f32.gmra.mxu2 %vm1267_vm1, %v4062_v20 }
 0x3e1   : > { %v1504_v4 = vpop.f32.mrf.mxu2 }
 0x3e2   : > { %v1505_v2 = vadd.f32 %v4154_v7, %v1504_v4 }
 0x3e4   : > { %v1532_v3 = vmax.f32 %v1505_v2, 0.0 }
 0x3e6   : > { %1604 = vmatmul.f32.gmra.mxu3 %v1532_v3  ;;  %2879 = vmatmul.msk.f32.gmra.mxu2 %vm1267_vm1, %v4070_v24  ;;  %v1645_v24 = vld [vmem:[#allocation10 + $0x30] sm:$0xff] }
 0x3e7   : > { %1689 = vmatpush.msra.mxu0 %v1645_v24 }
 0x3e9   : > { %v1507_v9 = vpop.f32.mrf.mxu2  ;;  %1690 = vmatpush.msra.mxu0 %v1643_v14 }
 0x3ea   : > { %v1508_v8 = vadd.f32 %v4154_v7, %v1507_v9 }
 0x3eb   : > { %1691 = vmatpush.msra.mxu0 %v1641_v21 }
 0x3ec   : > { %v1533_v10 = vmax.f32 %v1508_v8, 0.0  ;;  %v1933_v8 = vpop.xlane.xlu1 %1932 }
 0x3ed   : > { %1692 = vmatpush.msra.mxu0 %v1639_v25 }
 0x3ee   : > { %1607 = vmatmul.f32.gmra.mxu3 %v1533_v10  ;;  %2880 = vmatmul.msk.f32.gmra.mxu2 %vm1267_vm1, %v4081_v29 }
 0x3f1   : > { %v1510_v20 = vpop.f32.mrf.mxu2 }
 0x3f2   : > { %v1511_v13 = vadd.f32 %v4154_v7, %v1510_v20 }
 0x3f4   : > { %v1534_v49 = vmax.f32 %v1511_v13, 0.0 }
 0x3f6   : > { %1610 = vmatmul.f32.gmra.mxu3 %v1534_v49  ;;  %2881 = vmatmul.msk.f32.gmra.mxu2 %vm1267_vm1, %v4089_v35  ;;  %v1640_v35 = vld [vmem:[#allocation10 + $0x8] sm:$0xff]  ;;  %v1982_v49 = vadd.f32 %v4204_v46, %v1933_v8 }
 0x3f7   : > { %1757 = vmatpush.msra.mxu1 %v1640_v35 }
 0x3f9   : > { %v1513_v18 = vpop.f32.mrf.mxu2 }
 0x3fa   : > { %v1514_v29 = vadd.f32 %v4154_v7, %v1513_v18 }
 0x3fc   : > { %v1535_v23 = vmax.f32 %v1514_v29, 0.0 }
 0x3fe   : > { %1613 = vmatmul.f32.gmra.mxu3 %v1535_v23  ;;  %2882 = vmatmul.msk.f32.gmra.mxu2 %vm1267_vm1, %v4097_v40  ;;  %v1936_v23 = vpop.xlane.xlu2 %1935 }
 0x401   : > { %v1516_v26 = vpop.f32.mrf.mxu2 }
 0x402   : > { %v1517_v28 = vadd.f32 %v4154_v7, %v1516_v26 }
 0x404   : > { %v1536_v31 = vmax.f32 %v1517_v28, 0.0 }
 0x406   : > { %1616 = vmatmul.f32.gmra.mxu3 %v1536_v31  ;;  %2883 = vmatmul.msk.f32.gmra.mxu2 %vm1267_vm1, %v4105_v45  ;;  %v1927_v45 = vpop.xlane.xlu0 %1926  ;;  %v1939_v52 = vpop.xlane.xlu2 %1938 }
 0x407   : > { %v1980_v50 = vadd.f32 %v4204_v46, %v1927_v45  ;;  %v1984_v57 = vadd.f32 %v4204_v46, %v1939_v52 }
 0x409   : > { %v1519_v33 = vpop.f32.mrf.mxu2 }
 0x40a   : > { %v1520_v36 = vadd.f32 %v4154_v7, %v1519_v33 }
 0x40c   : > { %v1537_v38 = vmax.f32 %v1520_v36, 0.0  ;;  %v1983_v36 = vadd.f32 %v4204_v46, %v1936_v23 }
 0x40e   : > { %1619 = vmatmul.f32.gmra.mxu3 %v1537_v38 }
 0x411   : > { %v1858_v40 = vpop.f32.mrf.mxu2 }
 0x412   : > { %v1995_v42 = vmul.f32 2.0, %v1858_v40 }
 0x414   : > { %v2011_v43 = vsub.f32 %v1979_v39, %v1995_v42 }
 0x416   : > { %v2027_v44 = vmax.f32 %v2011_v43, 0.0 }
 0x418   : > { %v2043_v47 = vadd.f32 1.0, %v2027_v44 }
 0x419   : > { %v1575_v48 = vpop.f32.mrf.mxu3  ;;  %v1861_v7 = vpop.f32.mrf.mxu2 }
 0x41a   : > { %3063 = vrcp.f32 %v2043_v47  ;;  %v1576_v51 = vadd.f32 %v4210_v16, %v1575_v48  ;;  %v1996_v54 = vmul.f32 2.0, %v1861_v7  ;;  %v2070_v3 = vand.u32 2147483648, %v2043_v47 }
 0x41b   : > { %v2068_v9 = vand.u32 2147483647, %v2043_v47  ;;  %vm2064_vm3 = vweird.f32 %v2043_v47 }
 0x41c   : > { %v1623_v30 = vmax.f32 %v1576_v51, 0.0  ;;  %v2012_v53 = vsub.f32 %v1980_v50, %v1996_v54  ;;  %v2071_v13 = vor.u32 1.1754944e-38, %v2070_v3 }
 0x41d   : > { %vm2069_vm6 = vcmp.eq.f32.partialorder %v2068_v9, 8.507059e+37 }
 0x41e   : > { %v2028_v55 = vmax.f32 %v2012_v53, 0.0  ;;  %1693 = vmatmul.f32.vlgmr.msra.gmra.mxu0 %v1623_v30  ;;  %1758 = vmatmul.f32.vlgmr.msra.gmra.mxu1 %v1623_v30 }
 0x420   : > { %v3064_v59 = vpop.eup %3063  ;;  %v2044_v56 = vadd.f32 1.0, %v2028_v55 }
 0x421   : > { %v1578_v58 = vpop.f32.mrf.mxu3  ;;  %v1864_v60 = vpop.f32.mrf.mxu2  ;;  %v2060_v0 = vmul.f32 %v3064_v59, %v2043_v47  ;;  %vm2065_vm2 = vweird.f32 %v3064_v59 }
 0x422   : > { %3065 = vrcp.f32 %v2044_v56  ;;  %v1579_v62 = vadd.f32 %v4210_v16, %v1578_v58  ;;  %v1997_v63 = vmul.f32 2.0, %v1864_v60  ;;  %vm2066_vm4 = vmor %vm2064_vm3, %vm2065_vm2  ;;  %v2085_v37 = vand.u32 2147483648, %v2044_v56 }
 0x423   : > { %v2061_v1 = vsub.f32 1.0, %v2060_v0  ;;  %v2083_v27 = vand.u32 2147483647, %v2044_v56  ;;  %vm2079_vm8 = vweird.f32 %v2044_v56 }
 0x424   : > { %v1624_v4 = vmax.f32 %v1579_v62, 0.0  ;;  %v2013_v2 = vsub.f32 %v1981_v61, %v1997_v63  ;;  %v2086_v34 = vor.u32 1.1754944e-38, %v2085_v37 }
 0x425   : > { %v2062_v6 = vmul.f32 %v3064_v59, %v2061_v1  ;;  %vm2084_vm10 = vcmp.eq.f32.partialorder %v2083_v27, 8.507059e+37 }
 0x426   : > { %v2029_v10 = vmax.f32 %v2013_v2, 0.0  ;;  %1696 = vmatmul.f32.gmra.mxu0 %v1624_v4  ;;  %1761 = vmatmul.f32.gmra.mxu1 %v1624_v4 }
 0x427   : > { %v2063_v11 = vadd.f32 %v3064_v59, %v2062_v6 }
 0x428   : > { %v3066_v12 = vpop.eup %3065  ;;  %v4218_v20 = vadd.f32 1.0, %v2029_v10 }
 0x429   : > { %v1581_v24 = vpop.f32.mrf.mxu3  ;;  %v1867_v32 = vpop.f32.mrf.mxu2  ;;  %v2067_v14 = vsel %vm2066_vm4, %v3064_v59, %v2063_v11  ;;  %v2075_v15 = vmul.f32 %v3066_v12, %v2044_v56  ;;  %vm2080_vm7 = vweird.f32 %v3066_v12 }
 0x42a   : > { %3067 = vrcp.f32 %v4218_v20  ;;  %v1582_v18 = vadd.f32 %v4210_v16, %v1581_v24  ;;  %v1998_v19 = vmul.f32 2.0, %v1867_v32  ;;  %v2072_v29 = vsel %vm2069_vm6, %v2071_v13, %v2067_v14  ;;  %vm2081_vm9 = vmor %vm2079_vm8, %vm2080_vm7  ;;  %v1942_v11 = vpop.xlane.xlu0 %1941 }
 0x42b   : > { %v4226_v21 = vsel %vm2301_vm5, %v2072_v29, 0.0  ;;  %v2076_v22 = vsub.f32 1.0, %v2075_v15  ;;  %v2100_v50 = vand.u32 2147483648, %v4218_v20  ;;  %v2098_v54 = vand.u32 2147483647, %v4218_v20 }
 0x42c   : > { %v1625_v25 = vmax.f32 %v1582_v18, 0.0  ;;  %v2014_v35 = vsub.f32 %v1982_v49, %v1998_v19  ;;  %2318 = vadd.xlane.f32.xlu1 %v4226_v21  ;;  %vm2094_vm12 = vweird.f32 %v4218_v20  ;;  %v1985_v32 = vadd.f32 %v4204_v46, %v1942_v11 }
 0x42d   : > { %v2077_v26 = vmul.f32 %v3066_v12, %v2076_v22  ;;  %v2101_v56 = vor.u32 1.1754944e-38, %v2100_v50  ;;  %vm2099_vm14 = vcmp.eq.f32.partialorder %v2098_v54, 8.507059e+37 }
 0x42e   : > { %v2030_v28 = vmax.f32 %v2014_v35, 0.0  ;;  %1699 = vmatmul.f32.gmra.mxu0 %v1625_v25  ;;  %1764 = vmatmul.f32.gmra.mxu1 %v1625_v25 }
 0x42f   : > { %v2078_v31 = vadd.f32 %v3066_v12, %v2077_v26 }
 0x430   : > { %v3068_v41 = vpop.eup %3067  ;;  %v4229_v33 = vadd.f32 1.0, %v2030_v28 }
 0x431   : > { %v1584_v38 = vpop.f32.mrf.mxu3  ;;  %v1870_v17 = vpop.f32.mrf.mxu2  ;;  %v2082_v40 = vsel %vm2081_vm9, %v3066_v12, %v2078_v31  ;;  %v2090_v39 = vmul.f32 %v3068_v41, %v4218_v20  ;;  %vm2095_vm11 = vweird.f32 %v3068_v41 }
 0x432   : > { %3069 = vrcp.f32 %v4229_v33  ;;  %v1585_v42 = vadd.f32 %v4210_v16, %v1584_v38  ;;  %v1999_v43 = vmul.f32 2.0, %v1870_v17  ;;  %v2087_v44 = vsel %vm2084_vm10, %v2086_v34, %v2082_v40  ;;  %vm2096_vm13 = vmor %vm2094_vm12, %vm2095_vm11 }
 0x433   : > { %v4237_v45 = vsel %vm2301_vm5, %v2087_v44, 0.0  ;;  %v2091_v47 = vsub.f32 1.0, %v2090_v39  ;;  %v2115_v9 = vand.u32 2147483648, %v4229_v33  ;;  %v2113_v10 = vand.u32 2147483647, %v4229_v33 }
 0x434   : > { %v1626_v48 = vmax.f32 %v1585_v42, 0.0  ;;  %v2015_v7 = vsub.f32 %v1983_v36, %v1999_v43  ;;  %2320 = vadd.xlane.f32.xlu2 %v4237_v45  ;;  %vm2109_vm0 = vweird.f32 %v4229_v33 }
 0x435   : > { %v2092_v51 = vmul.f32 %v3068_v41, %v2091_v47  ;;  %v2116_v24 = vor.u32 1.1754944e-38, %v2115_v9  ;;  %vm2114_vm2 = vcmp.eq.f32.partialorder %v2113_v10, 8.507059e+37 }
 0x436   : > { %v2031_v30 = vmax.f32 %v2015_v7, 0.0  ;;  %1702 = vmatmul.f32.gmra.mxu0 %v1626_v48  ;;  %1767 = vmatmul.f32.gmra.mxu1 %v1626_v48 }
 0x437   : > { %v2093_v53 = vadd.f32 %v3068_v41, %v2092_v51 }
 0x438   : > { %v3070_v55 = vpop.eup %3069  ;;  %v4243_v59 = vadd.f32 1.0, %v2031_v30 }
 0x439   : > { %v1587_v58 = vpop.f32.mrf.mxu3  ;;  %v1873_v60 = vpop.f32.mrf.mxu2  ;;  %v2097_v0 = vsel %vm2096_vm13, %v3068_v41, %v2093_v53  ;;  %v2105_v61 = vmul.f32 %v3070_v55, %v4229_v33  ;;  %vm2110_vm15 = vweird.f32 %v3070_v55 }
 0x43a   : > { %3071 = vrcp.f32 %v4243_v59  ;;  %v1588_v62 = vadd.f32 %v4210_v16, %v1587_v58  ;;  %v2000_v63 = vmul.f32 2.0, %v1873_v60  ;;  %v2102_v1 = vsel %vm2099_vm14, %v2101_v56, %v2097_v0  ;;  %vm2111_vm1 = vmor %vm2109_vm0, %vm2110_vm15  ;;  %v1945_v41 = vpop.xlane.xlu1 %1944 }
 0x43b   : > { %v4251_v4 = vsel %vm2301_vm5, %v2102_v1, 0.0  ;;  %v2106_v2 = vsub.f32 1.0, %v2105_v61  ;;  %v2130_v27 = vand.u32 2147483648, %v4243_v59  ;;  %v2128_v31 = vand.u32 2147483647, %v4243_v59 }
 0x43c   : > { %v1627_v3 = vmax.f32 %v1588_v62, 0.0  ;;  %v2016_v6 = vsub.f32 %v1984_v57, %v2000_v63  ;;  %2322 = vadd.xlane.f32.xlu0 %v4251_v4  ;;  %vm2124_vm4 = vweird.f32 %v4243_v59  ;;  %v1986_v40 = vadd.f32 %v4204_v46, %v1945_v41 }
 0x43d   : > { %v2107_v8 = vmul.f32 %v3070_v55, %v2106_v2  ;;  %v2131_v17 = vor.u32 1.1754944e-38, %v2130_v27  ;;  %vm2129_vm7 = vcmp.eq.f32.partialorder %v2128_v31, 8.507059e+37 }
 0x43e   : > { %v2032_v12 = vmax.f32 %v2016_v6, 0.0  ;;  %1705 = vmatmul.f32.gmra.mxu0 %v1627_v3  ;;  %1770 = vmatmul.f32.gmra.mxu1 %v1627_v3 }
 0x43f   : > { %v2108_v20 = vadd.f32 %v3070_v55, %v2107_v8 }
 0x440   : > { %v3072_v13 = vpop.eup %3071  ;;  %v4257_v49 = vadd.f32 1.0, %v2032_v12 }
 0x441   : > { %v1590_v14 = vpop.f32.mrf.mxu3  ;;  %v1876_v15 = vpop.f32.mrf.mxu2  ;;  %v2112_v18 = vsel %vm2111_vm1, %v3070_v55, %v2108_v20  ;;  %v2120_v19 = vmul.f32 %v3072_v13, %v4243_v59  ;;  %vm2125_vm3 = vweird.f32 %v3072_v13 }
 0x442   : > { %3073 = vrcp.f32 %v4257_v49  ;;  %v1591_v29 = vadd.f32 %v4210_v16, %v1590_v14  ;;  %v2001_v22 = vmul.f32 2.0, %v1876_v15  ;;  %v2117_v23 = vsel %vm2114_vm2, %v2116_v24, %v2112_v18  ;;  %vm2126_vm6 = vmor %vm2124_vm4, %vm2125_vm3  ;;  %v1948_v59 = vpop.xlane.xlu2 %1947  ;;  %v1951_v24 = vpop.xlane.xlu0 %1950 }
 0x443   : > { %v4265_v25 = vsel %vm2301_vm5, %v2117_v23, 0.0  ;;  %v2121_v35 = vsub.f32 1.0, %v2120_v19  ;;  %v2145_v30 = vand.u32 2147483648, %v4257_v49  ;;  %v2143_v55 = vand.u32 2147483647, %v4257_v49 }
 0x444   : > { %v1628_v37 = vmax.f32 %v1591_v29, 0.0  ;;  %v2017_v26 = vsub.f32 %v1985_v32, %v2001_v22  ;;  %2324 = vadd.xlane.f32.xlu1 %v4265_v25  ;;  %vm2139_vm9 = vweird.f32 %v4257_v49  ;;  %v1987_v61 = vadd.f32 %v4204_v46, %v1948_v59 }
 0x445   : > { %v2122_v28 = vmul.f32 %v3072_v13, %v2121_v35  ;;  %v2146_v0 = vor.u32 1.1754944e-38, %v2145_v30  ;;  %vm2144_vm11 = vcmp.eq.f32.partialorder %v2143_v55, 8.507059e+37  ;;  %v1988_v29 = vadd.f32 %v4204_v46, %v1951_v24 }
 0x446   : > { %v2033_v33 = vmax.f32 %v2017_v26, 0.0  ;;  %1708 = vmatmul.f32.gmra.mxu0 %v1628_v37  ;;  %1773 = vmatmul.f32.gmra.mxu1 %v1628_v37 }
 0x447   : > { %v2123_v34 = vadd.f32 %v3072_v13, %v2122_v28 }
 0x448   : > { %v3074_v36 = vpop.eup %3073  ;;  %v4271_v38 = vadd.f32 1.0, %v2033_v33 }
 0x449   : > { %v1593_v39 = vpop.f32.mrf.mxu3  ;;  %v1879_v42 = vpop.f32.mrf.mxu2  ;;  %v2127_v43 = vsel %vm2126_vm6, %v3072_v13, %v2123_v34  ;;  %v2135_v44 = vmul.f32 %v3074_v36, %v4257_v49  ;;  %vm2140_vm8 = vweird.f32 %v3074_v36 }
 0x44a   : > { %3075 = vrcp.f32 %v4271_v38  ;;  %v1594_v47 = vadd.f32 %v4210_v16, %v1593_v39  ;;  %v2002_v48 = vmul.f32 2.0, %v1879_v42  ;;  %v2132_v7 = vsel %vm2129_vm7, %v2131_v17, %v2127_v43  ;;  %vm2141_vm10 = vmor %vm2139_vm9, %vm2140_vm8 }
 0x44b   : > { %v4279_v50 = vsel %vm2301_vm5, %v2132_v7, 0.0  ;;  %v2136_v51 = vsub.f32 1.0, %v2135_v44  ;;  %v2160_v20 = vand.u32 2147483648, %v4271_v38  ;;  %v2158_v49 = vand.u32 2147483647, %v4271_v38 }
 0x44c   : > { %v1629_v54 = vmax.f32 %v1594_v47, 0.0  ;;  %v2018_v52 = vsub.f32 %v1986_v40, %v2002_v48  ;;  %2326 = vadd.xlane.f32.xlu2 %v4279_v50  ;;  %vm2154_vm13 = vweird.f32 %v4271_v38  ;;  %v1954_v40 = vpop.xlane.xlu1 %1953 }
 0x44d   : > { %v2137_v53 = vmul.f32 %v3074_v36, %v2136_v51  ;;  %v2161_v19 = vor.u32 1.1754944e-38, %v2160_v20  ;;  %vm2159_vm15 = vcmp.eq.f32.partialorder %v2158_v49, 8.507059e+37  ;;  %v1989_v48 = vadd.f32 %v4204_v46, %v1954_v40 }
 0x44e   : > { %v2034_v56 = vmax.f32 %v2018_v52, 0.0  ;;  %1711 = vmatmul.f32.gmra.mxu0 %v1629_v54  ;;  %1776 = vmatmul.f32.gmra.mxu1 %v1629_v54 }
 0x44f   : > { %v2138_v57 = vadd.f32 %v3074_v36, %v2137_v53 }
 0x450   : > { %v3076_v58 = vpop.eup %3075  ;;  %v4285_v60 = vadd.f32 1.0, %v2034_v56 }
 0x451   : > { %v1596_v62 = vpop.f32.mrf.mxu3  ;;  %v1882_v63 = vpop.f32.mrf.mxu2  ;;  %v2142_v1 = vsel %vm2141_vm10, %v3074_v36, %v2138_v57  ;;  %v2150_v2 = vmul.f32 %v3076_v58, %v4271_v38  ;;  %vm2155_vm12 = vweird.f32 %v3076_v58 }
 0x452   : > { %3077 = vrcp.f32 %v4285_v60  ;;  %v1597_v3 = vadd.f32 %v4210_v16, %v1596_v62  ;;  %v2003_v6 = vmul.f32 2.0, %v1882_v63  ;;  %v2147_v9 = vsel %vm2144_vm11, %v2146_v0, %v2142_v1  ;;  %vm2156_vm14 = vmor %vm2154_vm13, %vm2155_vm12  ;;  %v1957_v62 = vpop.xlane.xlu2 %1956 }
 0x453   : > { %v4293_v8 = vsel %vm2301_vm5, %v2147_v9, 0.0  ;;  %v2151_v10 = vsub.f32 1.0, %v2150_v2  ;;  %v2175_v36 = vand.u32 2147483648, %v4285_v60  ;;  %v2173_v17 = vand.u32 2147483647, %v4285_v60 }
 0x454   : > { %v1630_v11 = vmax.f32 %v1597_v3, 0.0  ;;  %v2019_v12 = vsub.f32 %v1987_v61, %v2003_v6  ;;  %2328 = vadd.xlane.f32.xlu0 %v4293_v8  ;;  %vm2169_vm1 = vweird.f32 %v4285_v60  ;;  %v1990_v9 = vadd.f32 %v4204_v46, %v1957_v62 }
 0x455   : > { %v2152_v13 = vmul.f32 %v3076_v58, %v2151_v10  ;;  %v2176_v47 = vor.u32 1.1754944e-38, %v2175_v36  ;;  %vm2174_vm3 = vcmp.eq.f32.partialorder %v2173_v17, 8.507059e+37 }
 0x456   : > { %v2035_v32 = vmax.f32 %v2019_v12, 0.0  ;;  %1714 = vmatmul.f32.gmra.mxu0 %v1630_v11  ;;  %1779 = vmatmul.f32.gmra.mxu1 %v1630_v11 }
 0x457   : > { %v2153_v14 = vadd.f32 %v3076_v58, %v2152_v13 }
 0x458   : > { %v3078_v15 = vpop.eup %3077  ;;  %v4299_v18 = vadd.f32 1.0, %v2035_v32 }
 0x459   : > { %v1599_v22 = vpop.f32.mrf.mxu3  ;;  %v1885_v23 = vpop.f32.mrf.mxu2  ;;  %v2157_v35 = vsel %vm2156_vm14, %v3076_v58, %v2153_v14  ;;  %v2165_v37 = vmul.f32 %v3078_v15, %v4285_v60  ;;  %vm2170_vm0 = vweird.f32 %v3078_v15 }
 0x45a   : > { %3079 = vrcp.f32 %v4299_v18  ;;  %v1600_v26 = vadd.f32 %v4210_v16, %v1599_v22  ;;  %v2004_v27 = vmul.f32 2.0, %v1885_v23  ;;  %v2162_v28 = vsel %vm2159_vm15, %v2161_v19, %v2157_v35  ;;  %vm2171_vm2 = vmor %vm2169_vm1, %vm2170_vm0  ;;  %v1960_v23 = vpop.xlane.xlu0 %1959 }
 0x45b   : > { %v4307_v31 = vsel %vm2301_vm5, %v2162_v28, 0.0  ;;  %v2166_v41 = vsub.f32 1.0, %v2165_v37  ;;  %v2190_v60 = vand.u32 2147483648, %v4299_v18  ;;  %v2188_v61 = vand.u32 2147483647, %v4299_v18 }
 0x45c   : > { %v1631_v33 = vmax.f32 %v1600_v26, 0.0  ;;  %v2020_v34 = vsub.f32 %v1988_v29, %v2004_v27  ;;  %2330 = vadd.xlane.f32.xlu1 %v4307_v31  ;;  %vm2184_vm6 = vweird.f32 %v4299_v18 }
 0x45d   : > { %v2167_v38 = vmul.f32 %v3078_v15, %v2166_v41  ;;  %v2191_v6 = vor.u32 1.1754944e-38, %v2190_v60  ;;  %vm2189_vm8 = vcmp.eq.f32.partialorder %v2188_v61, 8.507059e+37  ;;  %v1991_v41 = vadd.f32 %v4204_v46, %v1960_v23 }
 0x45e   : > { %v2036_v39 = vmax.f32 %v2020_v34, 0.0  ;;  %1717 = vmatmul.f32.gmra.mxu0 %v1631_v33  ;;  %1782 = vmatmul.f32.gmra.mxu1 %v1631_v33 }
 0x45f   : > { %v2168_v42 = vadd.f32 %v3078_v15, %v2167_v38 }
 0x460   : > { %v3080_v43 = vpop.eup %3079  ;;  %v4313_v44 = vadd.f32 1.0, %v2036_v39 }
 0x461   : > { %v1602_v7 = vpop.f32.mrf.mxu3  ;;  %v1888_v51 = vpop.f32.mrf.mxu2  ;;  %v2172_v54 = vsel %vm2171_vm2, %v3078_v15, %v2168_v42  ;;  %v2180_v52 = vmul.f32 %v3080_v43, %v4299_v18  ;;  %vm2185_vm4 = vweird.f32 %v3080_v43 }
 0x462   : > { %3081 = vrcp.f32 %v4313_v44  ;;  %v1603_v30 = vadd.f32 %v4210_v16, %v1602_v7  ;;  %v2005_v53 = vmul.f32 2.0, %v1888_v51  ;;  %v2177_v55 = vsel %vm2174_vm3, %v2176_v47, %v2172_v54  ;;  %vm2186_vm7 = vmor %vm2184_vm6, %vm2185_vm4  ;;  %v1963_v54 = vpop.xlane.xlu1 %1962 }
 0x463   : > { %v4321_v59 = vsel %vm2301_vm5, %v2177_v55, 0.0  ;;  %v2181_v56 = vsub.f32 1.0, %v2180_v52  ;;  %v2205_v19 = vand.u32 2147483648, %v4313_v44  ;;  %v2203_v22 = vand.u32 2147483647, %v4313_v44 }
 0x464   : > { %v1632_v57 = vmax.f32 %v1603_v30, 0.0  ;;  %v2021_v58 = vsub.f32 %v1989_v48, %v2005_v53  ;;  %2332 = vadd.xlane.f32.xlu2 %v4321_v59  ;;  %vm2199_vm10 = vweird.f32 %v4313_v44 }
 0x465   : > { %v2182_v0 = vmul.f32 %v3080_v43, %v2181_v56  ;;  %v2206_v28 = vor.u32 1.1754944e-38, %v2205_v19  ;;  %vm2204_vm12 = vcmp.eq.f32.partialorder %v2203_v22, 8.507059e+37 }
 0x466   : > { %v2037_v63 = vmax.f32 %v2021_v58, 0.0  ;;  %1720 = vmatmul.f32.gmra.mxu0 %v1632_v57  ;;  %1785 = vmatmul.f32.gmra.mxu1 %v1632_v57  ;;  %v1992_v57 = vadd.f32 %v4204_v46, %v1963_v54 }
 0x467   : > { %v2183_v1 = vadd.f32 %v3080_v43, %v2182_v0 }
 0x468   : > { %v3082_v2 = vpop.eup %3081  ;;  %v4327_v3 = vadd.f32 1.0, %v2037_v63 }
 0x469   : > { %v1605_v10 = vpop.f32.mrf.mxu3  ;;  %v1891_v11 = vpop.f32.mrf.mxu2  ;;  %v2187_v12 = vsel %vm2186_vm7, %v3080_v43, %v2183_v1  ;;  %v2195_v20 = vmul.f32 %v3082_v2, %v4313_v44  ;;  %vm2200_vm9 = vweird.f32 %v3082_v2 }
 0x46a   : > { %3083 = vrcp.f32 %v4327_v3  ;;  %v1606_v13 = vadd.f32 %v4210_v16, %v1605_v10  ;;  %v2006_v49 = vmul.f32 2.0, %v1891_v11  ;;  %v2192_v24 = vsel %vm2189_vm8, %v2191_v6, %v2187_v12  ;;  %vm2201_vm11 = vmor %vm2199_vm10, %vm2200_vm9 }
 0x46b   : > { %v4335_v32 = vsel %vm2301_vm5, %v2192_v24, 0.0  ;;  %v2196_v14 = vsub.f32 1.0, %v2195_v20  ;;  %v2220_v48 = vand.u32 2147483648, %v4327_v3  ;;  %v2218_v51 = vand.u32 2147483647, %v4327_v3  ;;  %v1966_v20 = vpop.xlane.xlu2 %1965 }
 0x46c   : > { %v1633_v15 = vmax.f32 %v1606_v13, 0.0  ;;  %v2022_v18 = vsub.f32 %v1990_v9, %v2006_v49  ;;  %2334 = vadd.xlane.f32.xlu0 %v4335_v32  ;;  %vm2214_vm14 = vweird.f32 %v4327_v3 }
 0x46d   : > { %v2197_v29 = vmul.f32 %v3082_v2, %v2196_v14  ;;  %v2221_v56 = vor.u32 1.1754944e-38, %v2220_v48  ;;  %vm2219_vm0 = vcmp.eq.f32.partialorder %v2218_v51, 8.507059e+37 }
 0x46e   : > { %v2038_v35 = vmax.f32 %v2022_v18, 0.0  ;;  %1723 = vmatmul.f32.gmra.mxu0 %v1633_v15  ;;  %1788 = vmatmul.f32.gmra.mxu1 %v1633_v15  ;;  %v1993_v18 = vadd.f32 %v4204_v46, %v1966_v20 }
 0x46f   : > { %v2198_v37 = vadd.f32 %v3082_v2, %v2197_v29 }
 0x470   : > { %v3084_v26 = vpop.eup %3083  ;;  %v4341_v27 = vadd.f32 1.0, %v2038_v35 }
 0x471   : > { %v1608_v33 = vpop.f32.mrf.mxu3  ;;  %v1894_v34 = vpop.f32.mrf.mxu2  ;;  %v2202_v36 = vsel %vm2201_vm11, %v3082_v2, %v2198_v37  ;;  %v2210_v38 = vmul.f32 %v3084_v26, %v4327_v3  ;;  %vm2215_vm13 = vweird.f32 %v3084_v26 }
 0x472   : > { %3085 = vrcp.f32 %v4341_v27  ;;  %v1609_v17 = vadd.f32 %v4210_v16, %v1608_v33  ;;  %v2007_v40 = vmul.f32 2.0, %v1894_v34  ;;  %v2207_v39 = vsel %vm2204_vm12, %v2206_v28, %v2202_v36  ;;  %vm2216_vm15 = vmor %vm2214_vm14, %vm2215_vm13 }
 0x473   : > { %v4349_v42 = vsel %vm2301_vm5, %v2207_v39, 0.0  ;;  %v2211_v43 = vsub.f32 1.0, %v2210_v38  ;;  %v2235_v10 = vand.u32 2147483648, %v4341_v27  ;;  %v2233_v12 = vand.u32 2147483647, %v4341_v27 }
 0x474   : > { %v1634_v44 = vmax.f32 %v1609_v17, 0.0  ;;  %v2023_v47 = vsub.f32 %v1991_v41, %v2007_v40  ;;  %2336 = vadd.xlane.f32.xlu1 %v4349_v42  ;;  %vm2229_vm2 = vweird.f32 %v4341_v27  ;;  %v1969_v17 = vpop.xlane.xlu0 %1968 }
 0x475   : > { %v2212_v7 = vmul.f32 %v3084_v26, %v2211_v43  ;;  %v2236_v15 = vor.u32 1.1754944e-38, %v2235_v10  ;;  %vm2234_vm4 = vcmp.eq.f32.partialorder %v2233_v12, 8.507059e+37  ;;  %v1994_v48 = vadd.f32 %v4204_v46, %v1969_v17 }
 0x476   : > { %v2039_v52 = vmax.f32 %v2023_v47, 0.0  ;;  %1726 = vmatmul.f32.gmra.mxu0 %v1634_v44  ;;  %1791 = vmatmul.f32.gmra.mxu1 %v1634_v44 }
 0x477   : > { %v2213_v30 = vadd.f32 %v3084_v26, %v2212_v7 }
 0x478   : > { %v3086_v53 = vpop.eup %3085  ;;  %v4355_v55 = vadd.f32 1.0, %v2039_v52 }
 0x479   : > { %v1611_v58 = vpop.f32.mrf.mxu3  ;;  %v1897_v60 = vpop.f32.mrf.mxu2  ;;  %v2217_v0 = vsel %vm2216_vm15, %v3084_v26, %v2213_v30  ;;  %v2225_v61 = vmul.f32 %v3086_v53, %v4341_v27  ;;  %vm2230_vm1 = vweird.f32 %v3086_v53 }
 0x47a   : > { %3087 = vrcp.f32 %v4355_v55  ;;  %v1612_v62 = vadd.f32 %v4210_v16, %v1611_v58  ;;  %v2008_v63 = vmul.f32 2.0, %v1897_v60  ;;  %v2222_v1 = vsel %vm2219_vm0, %v2221_v56, %v2217_v0  ;;  %vm2231_vm3 = vmor %vm2229_vm2, %vm2230_vm1 }
 0x47b   : > { %v4363_v2 = vsel %vm2301_vm5, %v2222_v1, 0.0  ;;  %v2226_v3 = vsub.f32 1.0, %v2225_v61  ;;  %v2250_v34 = vand.u32 2147483648, %v4355_v55  ;;  %v2248_v38 = vand.u32 2147483647, %v4355_v55 }
 0x47c   : > { %v1635_v6 = vmax.f32 %v1612_v62, 0.0  ;;  %v2024_v9 = vsub.f32 %v1992_v57, %v2008_v63  ;;  %2338 = vadd.xlane.f32.xlu2 %v4363_v2  ;;  %vm2244_vm7 = vweird.f32 %v4355_v55 }
 0x47d   : > { %v2227_v11 = vmul.f32 %v3086_v53, %v2226_v3  ;;  %v2251_v47 = vor.u32 1.1754944e-38, %v2250_v34  ;;  %vm2249_vm9 = vcmp.eq.f32.partialorder %v2248_v38, 8.507059e+37 }
 0x47e   : > { %v2040_v13 = vmax.f32 %v2024_v9, 0.0  ;;  %1729 = vmatmul.f32.gmra.mxu0 %v1635_v6  ;;  %1794 = vmatmul.f32.gmra.mxu1 %v1635_v6 }
 0x47f   : > { %v2228_v49 = vadd.f32 %v3086_v53, %v2227_v11 }
 0x480   : > { %v3088_v24 = vpop.eup %3087  ;;  %v4369_v14 = vadd.f32 1.0, %v2040_v13 }
 0x481   : > { %v1614_v19 = vpop.f32.mrf.mxu3  ;;  %v1900_v29 = vpop.f32.mrf.mxu2  ;;  %v2232_v22 = vsel %vm2231_vm3, %v3086_v53, %v2228_v49  ;;  %v2240_v23 = vmul.f32 %v3088_v24, %v4355_v55  ;;  %vm2245_vm6 = vweird.f32 %v3088_v24 }
 0x482   : > { %3089 = vrcp.f32 %v4369_v14  ;;  %v1615_v35 = vadd.f32 %v4210_v16, %v1614_v19  ;;  %v2009_v37 = vmul.f32 2.0, %v1900_v29  ;;  %v2237_v26 = vsel %vm2234_vm4, %v2236_v15, %v2232_v22  ;;  %vm2246_vm8 = vmor %vm2244_vm7, %vm2245_vm6  ;;  %v1671_v15 = vld [vmem:[%s4637_s8] sm:$0x3]  ;;  %s3323_s8 = scalar_lea.hbm %s3322_s17, 256 }
 0x483   : > { %v4377_v27 = vsel %vm2301_vm5, %v2237_v26, 0.0  ;;  %v2241_v28 = vsub.f32 1.0, %v2240_v23  ;;  %v2265_v46 = vand.u32 2147483648, %v4369_v14  ;;  %v2263_v61 = vand.u32 2147483647, %v4369_v14  ;;  %p3324_p1 = scmp.ne.s32.totalorder %s3322_s17, %s3323_s8  ;;  %p3329_p8 = scmp.lt.s32.totalorder %s3327_s3, %s3323_s8 }
 0x484   : > { %v1636_v41 = vmax.f32 %v1615_v35, 0.0  ;;  %v2025_v33 = vsub.f32 %v1993_v18, %v2009_v37  ;;  %2340 = vadd.xlane.f32.xlu0 %v4377_v27  ;;  %vm2259_vm11 = vweird.f32 %v4369_v14  ;;  %v4403_v22 = vperm.slane %v1671_v15, 0 }
 0x485   : > { %v2242_v36 = vmul.f32 %v3088_v24, %v2241_v28  ;;  %v2266_v6 = vor.u32 1.1754944e-38, %v2265_v46  ;;  %vm2264_vm13 = vcmp.eq.f32.partialorder %v2263_v61, 8.507059e+37  ;;  %v4405_v23 = vperm.slane %v1671_v15, 1  ;;  %p3325_p3 = pnand %p3324_p1, %p3621_p13  ;;  %p3330_p7 = por %p3329_p8, %p3328_p12 }
 0x486   : > { %v2041_v40 = vmax.f32 %v2025_v33, 0.0  ;;  %1732 = vmatmul.f32.gmra.mxu0 %v1636_v41  ;;  %1797 = vmatmul.f32.gmra.mxu1 %v1636_v41 }
 0x487   : > { %v2243_v39 = vadd.f32 %v3088_v24, %v2242_v36  ;;  %p3326_p5 = pneg %p3325_p3 }
 0x488   : > { %v3090_v43 = vpop.eup %3089  ;;  %v2057_v44 = vadd.f32 1.0, %v2041_v40 }
 0x489   : > { %v1617_v7 = vpop.f32.mrf.mxu3  ;;  %v1903_v51 = vpop.f32.mrf.mxu2  ;;  %v2247_v54 = vsel %vm2246_vm8, %v3088_v24, %v2243_v39  ;;  %v2255_v52 = vmul.f32 %v3090_v43, %v4369_v14  ;;  %vm2260_vm10 = vweird.f32 %v3090_v43  ;;  %p3331_p9 = pnand %p3330_p7, %p3326_p5 }
 0x48a   : > { %3091 = vrcp.f32 %v2057_v44  ;;  %v1618_v30 = vadd.f32 %v4210_v16, %v1617_v7  ;;  %v2010_v53 = vmul.f32 2.0, %v1903_v51  ;;  %v2252_v56 = vsel %vm2249_vm9, %v2251_v47, %v2247_v54  ;;  %vm2261_vm12 = vmor %vm2259_vm11, %vm2260_vm10 }
 0x48b   : > { %v4388_v55 = vsel %vm2301_vm5, %v2252_v56, 0.0  ;;  %v2256_v57 = vsub.f32 1.0, %v2255_v52  ;;  %v2280_v14 = vand.u32 2147483648, %v2057_v44  ;;  %v2278_v19 = vand.u32 2147483647, %v2057_v44 }
 0x48c   : > { %v1637_v58 = vmax.f32 %v1618_v30, 0.0  ;;  %v2026_v60 = vsub.f32 %v1994_v48, %v2010_v53  ;;  %2342 = vadd.xlane.f32.xlu1 %v4388_v55  ;;  %vm2274_vm15 = vweird.f32 %v2057_v44 }
 0x48d   : > { %v2257_v0 = vmul.f32 %v3090_v43, %v2256_v57  ;;  %v2281_v35 = vor.u32 1.1754944e-38, %v2280_v14  ;;  %vm2279_vm1 = vcmp.eq.f32.partialorder %v2278_v19, 8.507059e+37 }
 0x48e   : > { %v2042_v62 = vmax.f32 %v2026_v60, 0.0  ;;  %1735 = vmatmul.f32.gmra.mxu0 %v1637_v58  ;;  %1800 = vmatmul.f32.gmra.mxu1 %v1637_v58 }
 0x48f   : > { %v2258_v63 = vadd.f32 %v3090_v43, %v2257_v0 }
 0x490   : > { %v3092_v1 = vpop.eup %3091  ;;  %v2058_v3 = vadd.f32 1.0, %v2042_v62 }
 0x491   : > { %v1620_v9 = vpop.f32.mrf.mxu3  ;;  %v2262_v10 = vsel %vm2261_vm12, %v3090_v43, %v2258_v63  ;;  %v2270_v11 = vmul.f32 %v3092_v1, %v2057_v44  ;;  %vm2275_vm14 = vweird.f32 %v3092_v1 }
 0x492   : > { %3093 = vrcp.f32 %v2058_v3  ;;  %v1621_v12 = vadd.f32 %v4210_v16, %v1620_v9  ;;  %v2267_v20 = vsel %vm2264_vm13, %v2266_v6, %v2262_v10  ;;  %vm2276_vm0 = vmor %vm2274_vm15, %vm2275_vm14  ;;  %v2295_v40 = vand.u32 2147483648, %v2058_v3 }
 0x493   : > { %v4397_v13 = vsel %vm2301_vm5, %v2267_v20, 0.0  ;;  %v2271_v49 = vsub.f32 1.0, %v2270_v11  ;;  %v2293_v43 = vand.u32 2147483647, %v2058_v3  ;;  %vm2289_vm3 = vweird.f32 %v2058_v3 }
 0x494   : > { %v1638_v24 = vmax.f32 %v1621_v12, 0.0  ;;  %2344 = vadd.xlane.f32.xlu2 %v4397_v13  ;;  %v2296_v48 = vor.u32 1.1754944e-38, %v2295_v40 }
 0x495   : > { %v2272_v18 = vmul.f32 %v3092_v1, %v2271_v49  ;;  %vm2294_vm6 = vcmp.eq.f32.partialorder %v2293_v43, 8.507059e+37 }
 0x496   : > { %1738 = vmatmul.f32.gmra.mxu0 %v1638_v24  ;;  %1803 = vmatmul.f32.gmra.mxu1 %v1638_v24 }
 0x497   : > { %v2273_v16 = vadd.f32 %v3092_v1, %v2272_v18 }
 0x498   : > { %v3094_v29 = vpop.eup %3093 }
 0x499   : > { %v2277_v37 = vsel %vm2276_vm0, %v3092_v1, %v2273_v16  ;;  %v2285_v26 = vmul.f32 %v3094_v29, %v2058_v3  ;;  %vm2290_vm2 = vweird.f32 %v3094_v29 }
 0x49a   : > { %v2282_v28 = vsel %vm2279_vm1, %v2281_v35, %v2277_v37  ;;  %vm2291_vm4 = vmor %vm2289_vm3, %vm2290_vm2 }
 0x49b   : > { %v1694_v41 = vpop.f32.mrf.mxu0  ;;  %v1759_v33 = vpop.f32.mrf.mxu1  ;;  %v4409_v34 = vsel %vm2301_vm5, %v2282_v28, 0.0  ;;  %v2286_v36 = vsub.f32 1.0, %v2285_v26 }
 0x49c   : > { %v1695_v38 = vadd.f32 %v1694_v41, %v4403_v22  ;;  %v1760_v17 = vadd.f32 %v1759_v33, %v4405_v23  ;;  %2346 = vadd.xlane.f32.xlu0 %v4409_v34 }
 0x49d   : > { %v2287_v39 = vmul.f32 %v3094_v29, %v2286_v36 }
 0x49e   : > { %1807 = vst [vmem:[%s4416_s25] sm:$0xff] %v1695_v38 }
 0x49f   : > { %1808 = vst [vmem:[%s4416_s25 + $0x8] sm:$0xff] %v1760_v17  ;;  %v2319_v44 = vpop.xlane.xlu1 %2318  ;;  %v2288_v47 = vadd.f32 %v3094_v29, %v2287_v39 }
 0x4a0   : > { %3095 = vrcp.f32 %v2319_v44  ;;  %v2361_v0 = vand.u32 2147483648, %v2319_v44  ;;  %v2359_v5 = vand.u32 2147483647, %v2319_v44 }
 0x4a1   : > { %v2292_v7 = vsel %vm2291_vm4, %v3094_v29, %v2288_v47 }
 0x4a2   : > { %v2297_v51 = vsel %vm2294_vm6, %v2296_v48, %v2292_v7  ;;  %v2362_v10 = vor.u32 1.1754944e-38, %v2361_v0  ;;  %vm2360_vm9 = vcmp.eq.f32.partialorder %v2359_v5, 8.507059e+37 }
 0x4a3   : > { %v1697_v54 = vpop.f32.mrf.mxu0  ;;  %v1762_v52 = vpop.f32.mrf.mxu1  ;;  %v4422_v30 = vsel %vm2301_vm5, %v2297_v51, 0.0  ;;  %vm2355_vm5 = vweird.f32 %v2319_v44 }
 0x4a4   : > { %v1698_v53 = vadd.f32 %v1697_v54, %v4403_v22  ;;  %v1763_v56 = vadd.f32 %v1762_v52, %v4405_v23  ;;  %2348 = vadd.xlane.f32.xlu1 %v4422_v30 }
 0x4a6   : > { %v3096_v57 = vpop.eup %3095  ;;  %1809 = vst [vmem:[%s4416_s25 + $0x10] sm:$0xff] %v1698_v53 }
 0x4a7   : > { %v2351_v58 = vmul.f32 %v3096_v57, %v2319_v44  ;;  %1810 = vst [vmem:[%s4416_s25 + $0x18] sm:$0xff] %v1763_v56  ;;  %v2321_v60 = vpop.xlane.xlu2 %2320  ;;  %vm2356_vm7 = vweird.f32 %v3096_v57 }
 0x4a8   : > { %3097 = vrcp.f32 %v2321_v60  ;;  %vm2357_vm8 = vmor %vm2355_vm5, %vm2356_vm7  ;;  %v2376_v15 = vand.u32 2147483648, %v2321_v60  ;;  %v2374_v19 = vand.u32 2147483647, %v2321_v60  ;;  %vm2370_vm11 = vweird.f32 %v2321_v60 }
 0x4a9   : > { %v2352_v46 = vsub.f32 1.0, %v2351_v58 }
 0x4aa   : > { %v2377_v28 = vor.u32 1.1754944e-38, %v2376_v15  ;;  %vm2375_vm13 = vcmp.eq.f32.partialorder %v2374_v19, 8.507059e+37 }
 0x4ab   : > { %v2353_v61 = vmul.f32 %v3096_v57, %v2352_v46  ;;  %v1700_v62 = vpop.f32.mrf.mxu0  ;;  %v1765_v63 = vpop.f32.mrf.mxu1 }
 0x4ac   : > { %v1701_v1 = vadd.f32 %v1700_v62, %v4403_v22  ;;  %v1766_v3 = vadd.f32 %v1765_v63, %v4405_v23 }
 0x4ad   : > { %v2354_v6 = vadd.f32 %v3096_v57, %v2353_v61 }
 0x4ae   : > { %v3098_v9 = vpop.eup %3097  ;;  %1811 = vst [vmem:[%s4416_s25 + $0x20] sm:$0xff] %v1701_v1 }
 0x4af   : > { %v2358_v11 = vsel %vm2357_vm8, %v3096_v57, %v2354_v6  ;;  %v2366_v12 = vmul.f32 %v3098_v9, %v2321_v60  ;;  %1812 = vst [vmem:[%s4416_s25 + $0x28] sm:$0xff] %v1766_v3  ;;  %v2323_v20 = vpop.xlane.xlu0 %2322  ;;  %vm2371_vm10 = vweird.f32 %v3098_v9 }
 0x4b0   : > { %v2363_v49 = vsel %vm2360_vm9, %v2362_v10, %v2358_v11  ;;  %3099 = vrcp.f32 %v2323_v20  ;;  %vm2372_vm12 = vmor %vm2370_vm11, %vm2371_vm10  ;;  %v2391_v39 = vand.u32 2147483648, %v2323_v20  ;;  %v2389_v44 = vand.u32 2147483647, %v2323_v20 }
 0x4b1   : > { %v2364_v24 = vmul.f32 %v2363_v49, %v4226_v21  ;;  %v2367_v14 = vsub.f32 1.0, %v2366_v12  ;;  %vm2385_vm15 = vweird.f32 %v2323_v20 }
 0x4b2   : > { %vm2390_vm1 = vcmp.eq.f32.partialorder %v2389_v44, 8.507059e+37 }
 0x4b3   : > { %2590 = vst [vmem:[%s4435_s1] sm:$0xff] %v2364_v24  ;;  %v2368_v18 = vmul.f32 %v3098_v9, %v2367_v14  ;;  %v1703_v16 = vpop.f32.mrf.mxu0  ;;  %v1768_v29 = vpop.f32.mrf.mxu1 }
 0x4b4   : > { %v1704_v35 = vadd.f32 %v1703_v16, %v4403_v22  ;;  %v1769_v37 = vadd.f32 %v1768_v29, %v4405_v23 }
 0x4b5   : > { %v2369_v26 = vadd.f32 %v3098_v9, %v2368_v18 }
 0x4b6   : > { %v3100_v21 = vpop.eup %3099  ;;  %1813 = vst [vmem:[%s4416_s25 + $0x30] sm:$0xff] %v1704_v35 }
 0x4b7   : > { %v2373_v41 = vsel %vm2372_vm12, %v3098_v9, %v2369_v26  ;;  %v2381_v33 = vmul.f32 %v3100_v21, %v2323_v20  ;;  %1814 = vst [vmem:[%s4416_s25 + $0x38] sm:$0xff] %v1769_v37  ;;  %v2325_v36 = vpop.xlane.xlu1 %2324  ;;  %vm2386_vm14 = vweird.f32 %v3100_v21 }
 0x4b8   : > { %v2378_v38 = vsel %vm2375_vm13, %v2377_v28, %v2373_v41  ;;  %3101 = vrcp.f32 %v2325_v36  ;;  %vm2387_vm0 = vmor %vm2385_vm15, %vm2386_vm14  ;;  %v2406_v0 = vand.u32 2147483648, %v2325_v36  ;;  %v2404_v5 = vand.u32 2147483647, %v2325_v36 }
 0x4b9   : > { %v2379_v17 = vmul.f32 %v2378_v38, %v4237_v45  ;;  %v2382_v40 = vsub.f32 1.0, %v2381_v33  ;;  %v2392_v45 = vor.u32 1.1754944e-38, %v2391_v39  ;;  %vm2400_vm3 = vweird.f32 %v2325_v36 }
 0x4ba   : > { %vm2405_vm6 = vcmp.eq.f32.partialorder %v2404_v5, 8.507059e+37 }
 0x4bb   : > { %2591 = vst [vmem:[%s4435_s1 + $0x8] sm:$0xff] %v2379_v17  ;;  %v2383_v43 = vmul.f32 %v3100_v21, %v2382_v40  ;;  %v1706_v47 = vpop.f32.mrf.mxu0  ;;  %v1771_v48 = vpop.f32.mrf.mxu1 }
 0x4bc   : > { %v1707_v7 = vadd.f32 %v1706_v47, %v4403_v22  ;;  %v1772_v51 = vadd.f32 %v1771_v48, %v4405_v23 }
 0x4bd   : > { %v2384_v54 = vadd.f32 %v3100_v21, %v2383_v43 }
 0x4be   : > { %v3102_v52 = vpop.eup %3101  ;;  %1815 = vst [vmem:[%s4416_s25 + $0x40] sm:$0xff] %v1707_v7 }
 0x4bf   : > { %v2388_v53 = vsel %vm2387_vm0, %v3100_v21, %v2384_v54  ;;  %v2396_v56 = vmul.f32 %v3102_v52, %v2325_v36  ;;  %1816 = vst [vmem:[%s4416_s25 + $0x48] sm:$0xff] %v1772_v51  ;;  %v2327_v57 = vpop.xlane.xlu2 %2326  ;;  %vm2401_vm2 = vweird.f32 %v3102_v52 }
 0x4c0   : > { %v2393_v58 = vsel %vm2390_vm1, %v2392_v45, %v2388_v53  ;;  %3103 = vrcp.f32 %v2327_v57  ;;  %vm2402_vm4 = vmor %vm2400_vm3, %vm2401_vm2  ;;  %v2421_v14 = vand.u32 2147483648, %v2327_v57  ;;  %v2419_v18 = vand.u32 2147483647, %v2327_v57 }
 0x4c1   : > { %v2394_v60 = vmul.f32 %v2393_v58, %v4251_v4  ;;  %v2397_v46 = vsub.f32 1.0, %v2396_v56  ;;  %v2407_v4 = vor.u32 1.1754944e-38, %v2406_v0  ;;  %vm2415_vm5 = vweird.f32 %v2327_v57 }
 0x4c2   : > { %vm2420_vm9 = vcmp.eq.f32.partialorder %v2419_v18, 8.507059e+37 }
 0x4c3   : > { %2592 = vst [vmem:[%s4435_s1 + $0x10] sm:$0xff] %v2394_v60  ;;  %v2398_v61 = vmul.f32 %v3102_v52, %v2397_v46  ;;  %v1709_v62 = vpop.f32.mrf.mxu0  ;;  %v1774_v63 = vpop.f32.mrf.mxu1 }
 0x4c4   : > { %v1710_v1 = vadd.f32 %v1709_v62, %v4403_v22  ;;  %v1775_v3 = vadd.f32 %v1774_v63, %v4405_v23 }
 0x4c5   : > { %v2399_v6 = vadd.f32 %v3102_v52, %v2398_v61 }
 0x4c6   : > { %v3104_v9 = vpop.eup %3103  ;;  %1817 = vst [vmem:[%s4416_s25 + $0x50] sm:$0xff] %v1710_v1 }
 0x4c7   : > { %v2403_v10 = vsel %vm2402_vm4, %v3102_v52, %v2399_v6  ;;  %v2411_v11 = vmul.f32 %v3104_v9, %v2327_v57  ;;  %1818 = vst [vmem:[%s4416_s25 + $0x58] sm:$0xff] %v1775_v3  ;;  %v2329_v12 = vpop.xlane.xlu0 %2328  ;;  %vm2416_vm7 = vweird.f32 %v3104_v9 }
 0x4c8   : > { %v2408_v20 = vsel %vm2405_vm6, %v2407_v4, %v2403_v10  ;;  %3105 = vrcp.f32 %v2329_v12  ;;  %vm2417_vm8 = vmor %vm2415_vm5, %vm2416_vm7  ;;  %v2436_v17 = vand.u32 2147483648, %v2329_v12  ;;  %v2434_v39 = vand.u32 2147483647, %v2329_v12 }
 0x4c9   : > { %v2409_v49 = vmul.f32 %v2408_v20, %v4265_v25  ;;  %v2412_v24 = vsub.f32 1.0, %v2411_v11  ;;  %v2422_v25 = vor.u32 1.1754944e-38, %v2421_v14  ;;  %vm2430_vm11 = vweird.f32 %v2329_v12 }
 0x4ca   : > { %vm2435_vm13 = vcmp.eq.f32.partialorder %v2434_v39, 8.507059e+37 }
 0x4cb   : > { %2593 = vst [vmem:[%s4435_s1 + $0x18] sm:$0xff] %v2409_v49  ;;  %v2413_v15 = vmul.f32 %v3104_v9, %v2412_v24  ;;  %v1712_v19 = vpop.f32.mrf.mxu0  ;;  %v1777_v16 = vpop.f32.mrf.mxu1 }
 0x4cc   : > { %v1713_v29 = vadd.f32 %v1712_v19, %v4403_v22  ;;  %v1778_v35 = vadd.f32 %v1777_v16, %v4405_v23 }
 0x4cd   : > { %v2414_v37 = vadd.f32 %v3104_v9, %v2413_v15 }
 0x4ce   : > { %v3106_v26 = vpop.eup %3105  ;;  %1819 = vst [vmem:[%s4416_s25 + $0x60] sm:$0xff] %v1713_v29 }
 0x4cf   : > { %v2418_v21 = vsel %vm2417_vm8, %v3104_v9, %v2414_v37  ;;  %v2426_v28 = vmul.f32 %v3106_v26, %v2329_v12  ;;  %1820 = vst [vmem:[%s4416_s25 + $0x68] sm:$0xff] %v1778_v35  ;;  %v2331_v41 = vpop.xlane.xlu1 %2330  ;;  %vm2431_vm10 = vweird.f32 %v3106_v26 }
 0x4d0   : > { %v2423_v33 = vsel %vm2420_vm9, %v2422_v25, %v2418_v21  ;;  %3107 = vrcp.f32 %v2331_v41  ;;  %vm2432_vm12 = vmor %vm2430_vm11, %vm2431_vm10  ;;  %v2451_v58 = vand.u32 2147483648, %v2331_v41  ;;  %v2449_v46 = vand.u32 2147483647, %v2331_v41 }
 0x4d1   : > { %v2424_v36 = vmul.f32 %v2423_v33, %v4279_v50  ;;  %v2427_v38 = vsub.f32 1.0, %v2426_v28  ;;  %v2437_v50 = vor.u32 1.1754944e-38, %v2436_v17  ;;  %vm2445_vm15 = vweird.f32 %v2331_v41 }
 0x4d2   : > { %vm2450_vm1 = vcmp.eq.f32.partialorder %v2449_v46, 8.507059e+37 }
 0x4d3   : > { %2594 = vst [vmem:[%s4435_s1 + $0x20] sm:$0xff] %v2424_v36  ;;  %v2428_v40 = vmul.f32 %v3106_v26, %v2427_v38  ;;  %v1715_v43 = vpop.f32.mrf.mxu0  ;;  %v1780_v44 = vpop.f32.mrf.mxu1 }
 0x4d4   : > { %v1716_v47 = vadd.f32 %v1715_v43, %v4403_v22  ;;  %v1781_v48 = vadd.f32 %v1780_v44, %v4405_v23 }
 0x4d5   : > { %v2429_v7 = vadd.f32 %v3106_v26, %v2428_v40 }
 0x4d6   : > { %v3108_v51 = vpop.eup %3107  ;;  %1821 = vst [vmem:[%s4416_s25 + $0x70] sm:$0xff] %v1716_v47 }
 0x4d7   : > { %v2433_v54 = vsel %vm2432_vm12, %v3106_v26, %v2429_v7  ;;  %v2441_v52 = vmul.f32 %v3108_v51, %v2331_v41  ;;  %1822 = vst [vmem:[%s4416_s25 + $0x78] sm:$0xff] %v1781_v48  ;;  %v2333_v45 = vpop.xlane.xlu2 %2332  ;;  %vm2446_vm14 = vweird.f32 %v3108_v51 }
 0x4d8   : > { %v2438_v53 = vsel %vm2435_vm13, %v2437_v50, %v2433_v54  ;;  %3109 = vrcp.f32 %v2333_v45  ;;  %vm2447_vm0 = vmor %vm2445_vm15, %vm2446_vm14  ;;  %v2466_v12 = vand.u32 2147483648, %v2333_v45  ;;  %v2464_v49 = vand.u32 2147483647, %v2333_v45 }
 0x4d9   : > { %v2439_v56 = vmul.f32 %v2438_v53, %v4293_v8  ;;  %v2442_v57 = vsub.f32 1.0, %v2441_v52  ;;  %v2452_v8 = vor.u32 1.1754944e-38, %v2451_v58  ;;  %vm2460_vm3 = vweird.f32 %v2333_v45 }
 0x4da   : > { %vm2465_vm6 = vcmp.eq.f32.partialorder %v2464_v49, 8.507059e+37 }
 0x4db   : > { %2595 = vst [vmem:[%s4435_s1 + $0x28] sm:$0xff] %v2439_v56  ;;  %v2443_v60 = vmul.f32 %v3108_v51, %v2442_v57  ;;  %v1718_v0 = vpop.f32.mrf.mxu0  ;;  %v1783_v61 = vpop.f32.mrf.mxu1 }
 0x4dc   : > { %v1719_v5 = vadd.f32 %v1718_v0, %v4403_v22  ;;  %v1784_v62 = vadd.f32 %v1783_v61, %v4405_v23 }
 0x4dd   : > { %v2444_v63 = vadd.f32 %v3108_v51, %v2443_v60 }
 0x4de   : > { %v3110_v1 = vpop.eup %3109  ;;  %1823 = vst [vmem:[%s4416_s25 + $0x80] sm:$0xff] %v1719_v5 }
 0x4df   : > { %v2448_v3 = vsel %vm2447_vm0, %v3108_v51, %v2444_v63  ;;  %v2456_v6 = vmul.f32 %v3110_v1, %v2333_v45  ;;  %1824 = vst [vmem:[%s4416_s25 + $0x88] sm:$0xff] %v1784_v62  ;;  %v2335_v9 = vpop.xlane.xlu0 %2334  ;;  %vm2461_vm2 = vweird.f32 %v3110_v1 }
 0x4e0   : > { %v2453_v4 = vsel %vm2450_vm1, %v2452_v8, %v2448_v3  ;;  %3111 = vrcp.f32 %v2335_v9  ;;  %vm2462_vm4 = vmor %vm2460_vm3, %vm2461_vm2  ;;  %v2481_v28 = vand.u32 2147483648, %v2335_v9  ;;  %v2479_v33 = vand.u32 2147483647, %v2335_v9 }
 0x4e1   : > { %v2454_v10 = vmul.f32 %v2453_v4, %v4307_v31  ;;  %v2457_v11 = vsub.f32 1.0, %v2456_v6  ;;  %v2467_v31 = vor.u32 1.1754944e-38, %v2466_v12  ;;  %vm2475_vm5 = vweird.f32 %v2335_v9 }
 0x4e2   : > { %vm2480_vm9 = vcmp.eq.f32.partialorder %v2479_v33, 8.507059e+37 }
 0x4e3   : > { %2596 = vst [vmem:[%s4435_s1 + $0x30] sm:$0xff] %v2454_v10  ;;  %v2458_v20 = vmul.f32 %v3110_v1, %v2457_v11  ;;  %v1721_v24 = vpop.f32.mrf.mxu0  ;;  %v1786_v14 = vpop.f32.mrf.mxu1 }
 0x4e4   : > { %v1722_v15 = vadd.f32 %v1721_v24, %v4403_v22  ;;  %v1787_v18 = vadd.f32 %v1786_v14, %v4405_v23 }
 0x4e5   : > { %v2459_v19 = vadd.f32 %v3110_v1, %v2458_v20 }
 0x4e6   : > { %v3112_v16 = vpop.eup %3111  ;;  %1825 = vst [vmem:[%s4416_s25 + $0x90] sm:$0xff] %v1722_v15 }
 0x4e7   : > { %v2463_v29 = vsel %vm2462_vm4, %v3110_v1, %v2459_v19  ;;  %v2471_v35 = vmul.f32 %v3112_v16, %v2335_v9  ;;  %1826 = vst [vmem:[%s4416_s25 + $0x98] sm:$0xff] %v1787_v18  ;;  %v2337_v37 = vpop.xlane.xlu1 %2336  ;;  %vm2476_vm7 = vweird.f32 %v3112_v16 }
 0x4e8   : > { %v2468_v26 = vsel %vm2465_vm6, %v2467_v31, %v2463_v29  ;;  %3113 = vrcp.f32 %v2337_v37  ;;  %vm2477_vm8 = vmor %vm2475_vm5, %vm2476_vm7  ;;  %v2496_v54 = vand.u32 2147483648, %v2337_v37  ;;  %v2494_v45 = vand.u32 2147483647, %v2337_v37 }
 0x4e9   : > { %v2469_v25 = vmul.f32 %v2468_v26, %v4321_v59  ;;  %v2472_v21 = vsub.f32 1.0, %v2471_v35  ;;  %v2482_v59 = vor.u32 1.1754944e-38, %v2481_v28  ;;  %vm2490_vm11 = vweird.f32 %v2337_v37 }
 0x4ea   : > { %vm2495_vm13 = vcmp.eq.f32.partialorder %v2494_v45, 8.507059e+37 }
 0x4eb   : > { %2597 = vst [vmem:[%s4435_s1 + $0x38] sm:$0xff] %v2469_v25  ;;  %v2473_v41 = vmul.f32 %v3112_v16, %v2472_v21  ;;  %v1724_v36 = vpop.f32.mrf.mxu0  ;;  %v1789_v38 = vpop.f32.mrf.mxu1 }
 0x4ec   : > { %v1725_v17 = vadd.f32 %v1724_v36, %v4403_v22  ;;  %v1790_v40 = vadd.f32 %v1789_v38, %v4405_v23 }
 0x4ed   : > { %v2474_v39 = vadd.f32 %v3112_v16, %v2473_v41 }
 0x4ee   : > { %v3114_v43 = vpop.eup %3113  ;;  %1827 = vst [vmem:[%s4416_s25 + $0xa0] sm:$0xff] %v1725_v17 }
 0x4ef   : > { %v2478_v44 = vsel %vm2477_vm8, %v3112_v16, %v2474_v39  ;;  %v2486_v47 = vmul.f32 %v3114_v43, %v2337_v37  ;;  %1828 = vst [vmem:[%s4416_s25 + $0xa8] sm:$0xff] %v1790_v40  ;;  %v2339_v48 = vpop.xlane.xlu2 %2338  ;;  %vm2491_vm10 = vweird.f32 %v3114_v43 }
 0x4f0   : > { %v2483_v7 = vsel %vm2480_vm9, %v2482_v59, %v2478_v44  ;;  %3115 = vrcp.f32 %v2339_v48  ;;  %vm2492_vm12 = vmor %vm2490_vm11, %vm2491_vm10  ;;  %v2511_v8 = vand.u32 2147483648, %v2339_v48  ;;  %v2509_v6 = vand.u32 2147483647, %v2339_v48 }
 0x4f1   : > { %v2484_v51 = vmul.f32 %v2483_v7, %v4335_v32  ;;  %v2487_v50 = vsub.f32 1.0, %v2486_v47  ;;  %v2497_v32 = vor.u32 1.1754944e-38, %v2496_v54  ;;  %vm2505_vm15 = vweird.f32 %v2339_v48 }
 0x4f2   : > { %vm2510_vm1 = vcmp.eq.f32.partialorder %v2509_v6, 8.507059e+37 }
 0x4f3   : > { %2598 = vst [vmem:[%s4435_s1 + $0x40] sm:$0xff] %v2484_v51  ;;  %v2488_v52 = vmul.f32 %v3114_v43, %v2487_v50  ;;  %v1727_v53 = vpop.f32.mrf.mxu0  ;;  %v1792_v56 = vpop.f32.mrf.mxu1 }
 0x4f4   : > { %v1728_v57 = vadd.f32 %v1727_v53, %v4403_v22  ;;  %v1793_v58 = vadd.f32 %v1792_v56, %v4405_v23 }
 0x4f5   : > { %v2489_v60 = vadd.f32 %v3114_v43, %v2488_v52 }
 0x4f6   : > { %v3116_v46 = vpop.eup %3115  ;;  %1829 = vst [vmem:[%s4416_s25 + $0xb0] sm:$0xff] %v1728_v57 }
 0x4f7   : > { %v2493_v0 = vsel %vm2492_vm12, %v3114_v43, %v2489_v60  ;;  %v2501_v61 = vmul.f32 %v3116_v46, %v2339_v48  ;;  %1830 = vst [vmem:[%s4416_s25 + $0xb8] sm:$0xff] %v1793_v58  ;;  %v2341_v5 = vpop.xlane.xlu0 %2340  ;;  %vm2506_vm14 = vweird.f32 %v3116_v46 }
 0x4f8   : > { %v2498_v62 = vsel %vm2495_vm13, %v2497_v32, %v2493_v0  ;;  %3117 = vrcp.f32 %v2341_v5  ;;  %vm2507_vm0 = vmor %vm2505_vm15, %vm2506_vm14  ;;  %v2526_v16 = vand.u32 2147483648, %v2341_v5  ;;  %v2524_v29 = vand.u32 2147483647, %v2341_v5 }
 0x4f9   : > { %v2499_v63 = vmul.f32 %v2498_v62, %v4349_v42  ;;  %v2502_v1 = vsub.f32 1.0, %v2501_v61  ;;  %v2512_v42 = vor.u32 1.1754944e-38, %v2511_v8  ;;  %vm2520_vm3 = vweird.f32 %v2341_v5 }
 0x4fa   : > { %vm2525_vm6 = vcmp.eq.f32.partialorder %v2524_v29, 8.507059e+37 }
 0x4fb   : > { %2599 = vst [vmem:[%s4435_s1 + $0x48] sm:$0xff] %v2499_v63  ;;  %v2503_v3 = vmul.f32 %v3116_v46, %v2502_v1  ;;  %v1730_v9 = vpop.f32.mrf.mxu0  ;;  %v1795_v4 = vpop.f32.mrf.mxu1 }
 0x4fc   : > { %v1731_v10 = vadd.f32 %v1730_v9, %v4403_v22  ;;  %v1796_v11 = vadd.f32 %v1795_v4, %v4405_v23 }
 0x4fd   : > { %v2504_v12 = vadd.f32 %v3116_v46, %v2503_v3 }
 0x4fe   : > { %v3118_v20 = vpop.eup %3117  ;;  %1831 = vst [vmem:[%s4416_s25 + $0xc0] sm:$0xff] %v1731_v10 }
 0x4ff   : > { %v2508_v49 = vsel %vm2507_vm0, %v3116_v46, %v2504_v12  ;;  %v2516_v24 = vmul.f32 %v3118_v20, %v2341_v5  ;;  %1832 = vst [vmem:[%s4416_s25 + $0xc8] sm:$0xff] %v1796_v11  ;;  %v2343_v14 = vpop.xlane.xlu1 %2342  ;;  %vm2521_vm2 = vweird.f32 %v3118_v20 }
 0x500   : > { %v2513_v15 = vsel %vm2510_vm1, %v2512_v42, %v2508_v49  ;;  %3119 = vrcp.f32 %v2343_v14  ;;  %vm2522_vm4 = vmor %vm2520_vm3, %vm2521_vm2  ;;  %v2541_v39 = vand.u32 2147483648, %v2343_v14  ;;  %v2539_v59 = vand.u32 2147483647, %v2343_v14 }
 0x501   : > { %v2514_v18 = vmul.f32 %v2513_v15, %v4363_v2  ;;  %v2517_v19 = vsub.f32 1.0, %v2516_v24  ;;  %v2527_v2 = vor.u32 1.1754944e-38, %v2526_v16  ;;  %vm2535_vm5 = vweird.f32 %v2343_v14 }
 0x502   : > { %vm2540_vm9 = vcmp.eq.f32.partialorder %v2539_v59, 8.507059e+37 }
 0x503   : > { %2600 = vst [vmem:[%s4435_s1 + $0x50] sm:$0xff] %v2514_v18  ;;  %v2518_v31 = vmul.f32 %v3118_v20, %v2517_v19  ;;  %v1733_v35 = vpop.f32.mrf.mxu0  ;;  %v1798_v37 = vpop.f32.mrf.mxu1 }
 0x504   : > { %v1734_v26 = vadd.f32 %v1733_v35, %v4403_v22  ;;  %v1799_v25 = vadd.f32 %v1798_v37, %v4405_v23 }
 0x505   : > { %v2519_v21 = vadd.f32 %v3118_v20, %v2518_v31 }
 0x506   : > { %v3120_v28 = vpop.eup %3119  ;;  %1833 = vst [vmem:[%s4416_s25 + $0xd0] sm:$0xff] %v1734_v26 }
 0x507   : > { %v2523_v41 = vsel %vm2522_vm4, %v3118_v20, %v2519_v21  ;;  %v2531_v33 = vmul.f32 %v3120_v28, %v2343_v14  ;;  %1834 = vst [vmem:[%s4416_s25 + $0xd8] sm:$0xff] %v1799_v25  ;;  %v2345_v36 = vpop.xlane.xlu2 %2344  ;;  %vm2536_vm7 = vweird.f32 %v3120_v28 }
 0x508   : > { %v2528_v38 = vsel %vm2525_vm6, %v2527_v2, %v2523_v41  ;;  %3121 = vrcp.f32 %v2345_v36  ;;  %vm2537_vm8 = vmor %vm2535_vm5, %vm2536_vm7  ;;  %v2556_v58 = vand.u32 2147483648, %v2345_v36  ;;  %v2554_v46 = vand.u32 2147483647, %v2345_v36 }
 0x509   : > { %v2529_v17 = vmul.f32 %v2528_v38, %v4377_v27  ;;  %v2532_v40 = vsub.f32 1.0, %v2531_v33  ;;  %v2542_v27 = vor.u32 1.1754944e-38, %v2541_v39  ;;  %vm2550_vm11 = vweird.f32 %v2345_v36 }
 0x50a   : > { %v2557_v63 = vor.u32 1.1754944e-38, %v2556_v58  ;;  %vm2555_vm13 = vcmp.eq.f32.partialorder %v2554_v46, 8.507059e+37 }
 0x50b   : > { %2601 = vst [vmem:[%s4435_s1 + $0x58] sm:$0xff] %v2529_v17  ;;  %v2533_v43 = vmul.f32 %v3120_v28, %v2532_v40  ;;  %v1736_v44 = vpop.f32.mrf.mxu0  ;;  %v1801_v47 = vpop.f32.mrf.mxu1 }
 0x50c   : > { %v1737_v48 = vadd.f32 %v1736_v44, %v4403_v22  ;;  %v1802_v7 = vadd.f32 %v1801_v47, %v4405_v23 }
 0x50d   : > { %v2534_v51 = vadd.f32 %v3120_v28, %v2533_v43 }
 0x50e   : > { %v3122_v50 = vpop.eup %3121  ;;  %1835 = vst [vmem:[%s4416_s25 + $0xe0] sm:$0xff] %v1737_v48 }
 0x50f   : > { %v2538_v54 = vsel %vm2537_vm8, %v3120_v28, %v2534_v51  ;;  %v2546_v52 = vmul.f32 %v3122_v50, %v2345_v36  ;;  %1836 = vst [vmem:[%s4416_s25 + $0xe8] sm:$0xff] %v1802_v7  ;;  %v2347_v45 = vpop.xlane.xlu0 %2346  ;;  %vm2551_vm10 = vweird.f32 %v3122_v50 }
 0x510   : > { %v2543_v53 = vsel %vm2540_vm9, %v2542_v27, %v2538_v54  ;;  %3123 = vrcp.f32 %v2347_v45  ;;  %vm2552_vm12 = vmor %vm2550_vm11, %vm2551_vm10 }
 0x511   : > { %v2544_v56 = vmul.f32 %v2543_v53, %v4388_v55  ;;  %v2547_v57 = vsub.f32 1.0, %v2546_v52 }
 0x513   : > { %2602 = vst [vmem:[%s4435_s1 + $0x60] sm:$0xff] %v2544_v56  ;;  %v2548_v60 = vmul.f32 %v3122_v50, %v2547_v57  ;;  %v1739_v32 = vpop.f32.mrf.mxu0  ;;  %v1804_v0 = vpop.f32.mrf.mxu1 }
 0x514   : > { %v1740_v61 = vadd.f32 %v1739_v32, %v4403_v22  ;;  %v1805_v5 = vadd.f32 %v1804_v0, %v4405_v23 }
 0x515   : > { %v2549_v55 = vadd.f32 %v3122_v50, %v2548_v60 }
 0x516   : > { %v3124_v62 = vpop.eup %3123  ;;  %1837 = vst [vmem:[%s4416_s25 + $0xf0] sm:$0xff] %v1740_v61 }
 0x517   : > { %v2553_v1 = vsel %vm2552_vm12, %v3122_v50, %v2549_v55  ;;  %v2561_v8 = vmul.f32 %v3124_v62, %v2347_v45  ;;  %1838 = vst [vmem:[%s4416_s25 + $0xf8] sm:$0xff] %v1805_v5  ;;  %v2349_v22 = vpop.xlane.xlu1 %2348 }
 0x518   : > { %v2558_v3 = vsel %vm2555_vm13, %v2557_v63, %v2553_v1  ;;  %3125 = vrcp.f32 %v2349_v22 }
 0x519   : > { %3334 = shalt.err (!%p3331_p9)
}
 0x51a   : > { %s3428_s25 = smov 256   ;;  %s3429_s2 = smov 16   ;;  %v2559_v23 = vmul.f32 %v2558_v3, %v4397_v13  ;;  %v2562_v6 = vsub.f32 1.0, %v2561_v8  ;;  %v2571_v9 = vand.u32 2147483648, %v2347_v45  ;;  %vm2566_vm14 = vweird.f32 %v3124_v62 }
 0x51b   : > { %2969 = dma.vmem_to_hbm [thread:$0]  (%p3621_p13), %s4517_s16, 4096, %s4519_s10, %s2612_s28, %s3428_s25, %s3428_s25, %s3429_s2   ;;  %v2569_v10 = vand.u32 2147483647, %v2347_v45  ;;  %vm2565_vm15 = vweird.f32 %v2347_v45  ;;  %v2586_v15 = vand.u32 2147483648, %v2349_v22  ;;  %v2584_v19 = vand.u32 2147483647, %v2349_v22 }
 0x51c   : > { %2603 = vst [vmem:[%s4435_s1 + $0x68] sm:$0xff] %v2559_v23  ;;  %v2563_v4 = vmul.f32 %v3124_v62, %v2562_v6  ;;  %vm2567_vm0 = vmor %vm2565_vm15, %vm2566_vm14  ;;  %v2572_v20 = vor.u32 1.1754944e-38, %v2571_v9  ;;  %s2895_s2 = sshll.u32 %s3556_s24, 7  ;;  %s4639_s28 = sld [smem:[#allocation34_spill]]  ;;  %vm2580_vm3 = vweird.f32 %v2349_v22 }
 0x51d   : > { %vm2570_vm1 = vcmp.eq.f32.partialorder %v2569_v10, 8.507059e+37  ;;  %s2624_s8 = sshll.u32 %s4435_s1, 4  ;;  %v2587_v31 = vor.u32 1.1754944e-38, %v2586_v15  ;;  %vm2585_vm6 = vcmp.eq.f32.partialorder %v2584_v19, 8.507059e+37  ;;  %s2607_s15 = scalar_lea.sflag [#allocation4], %s3655_s29  ;;  %s2625_s8 = int_to_ptr.vmem [resolvable:$true] %s2624_s8 }
 0x51e   : > { %v2564_v11 = vadd.f32 %v3124_v62, %v2563_v4  ;;  %v3126_v12 = vpop.eup %3125 }
 0x51f   : > { %v2576_v49 = vmul.f32 %v3126_v12, %v2349_v22  ;;  %vm2581_vm2 = vweird.f32 %v3126_v12 }
 0x520   : > { %v2568_v42 = vsel %vm2567_vm0, %v3124_v62, %v2564_v11  ;;  %vm2582_vm4 = vmor %vm2580_vm3, %vm2581_vm2 }
 0x521   : > { %v2573_v24 = vsel %vm2570_vm1, %v2572_v20, %v2568_v42  ;;  %v2577_v14 = vsub.f32 1.0, %v2576_v49 }
 0x522   : > { %v2574_v13 = vmul.f32 %v2573_v24, %v4409_v34  ;;  %s2623_s17 = scalar_lea.hbm %s4639_s28, %s2895_s2  ;;  %s3355_s25 = scalar_lea.hbm %s4639_s28, 256 }
 0x523   : > { %v2578_v18 = vmul.f32 %v3126_v12, %v2577_v14  ;;  %s2626_s24 = sshll.u32 %s2623_s17, 4  ;;  %s2627_s24 = int_to_ptr.hbm [resolvable:$true] %s2626_s24 }
 0x524   : > { %2604 = vst [vmem:[%s4435_s1 + $0x70] sm:$0xff] %v2574_v13  ;;  %s3349_s13 = sshra.s32 %s2627_s24, 4  ;;  %s3350_s13 = int_to_ptr.hbm [resolvable:$true] %s3349_s13 }
 0x525   : > { %v2579_v16 = vadd.f32 %v3126_v12, %v2578_v18  ;;  %s3351_s3 = scalar_lea.hbm %s3350_s13, 128  ;;  %p3356_p2 = scmp.lt.s32.totalorder %s3350_s13, %s4639_s28 }
 0x526   : > { %p3352_p10 = scmp.ne.s32.totalorder %s3350_s13, %s3351_s3  ;;  %p3357_p6 = scmp.lt.s32.totalorder %s3355_s25, %s3351_s3 }
 0x527   : > { %v2583_v34 = vsel %vm2582_vm4, %v3126_v12, %v2579_v16 }
 0x528   : > { %v2588_v29 = vsel %vm2585_vm6, %v2587_v31, %v2583_v34  ;;  %p3353_p11 = pnand %p3352_p10, %p3621_p13  ;;  %p3358_p1 = por %p3357_p6, %p3356_p2 }
 0x529   : > { %v2589_v35 = vmul.f32 %v2588_v29, %v4422_v30 }
 0x52a   : > { %p3354_p0 = pneg %p3353_p11 }
 0x52b   : > { %2605 = vst [vmem:[%s4435_s1 + $0x78] sm:$0xff] %v2589_v35 }
 0x52c   : > { %p3359_p3 = pnand %p3358_p1, %p3354_p0 }
 0x52e   : > { %3362 = shalt.err (!%p3359_p3)
}
 0x52f   : > { %s3430_s29 = smov 128   ;;  %s3431_s1 = smov 8  }
 0x530   : > { %2968 = dma.vmem_to_hbm [thread:$0]  (%p3621_p13), %s2625_s8, 2048, %s2627_s24, %s2607_s15, %s3430_s29, %s3430_s29, %s3431_s1  }
 0x531 PF: > { %s2659_s10 = sand.u32 1, %s3405_s0   ;;  %p4640_p5 = scmp.ge.s32.totalorder %s3417_s21, 2 }
 0x532   : > { %s2660_s17 = scalar_lea.sflag [#allocation4], %s2659_s10 }
 0x533   : > { %p2993_p12 = pnand %p4640_p5, %p3626_p4 }
 0x535   : > { %p2994_p8 = pneg %p2993_p12 }
 0x537   : > { %3396 = dma.done.wait (%p2994_p8), %s2660_s17, 2048  }
 0x538   : > { %3398 = vsyncadd (%p2994_p8), %s2660_s17, 4294965248  ;;  %s2670_s13 = scalar_lea.sflag [#allocation15], %s2659_s10 }
 0x539   : > { %3400 = dma.done.wait (%p2994_p8), %s2670_s13, 4096  }
 0x53a   : > { %3402 = vsyncadd (%p2994_p8), %s2670_s13, 4294963200  ;;  %p39_p13 = scmp.ge.s32.totalorder %s3601_s27, 4   ;;  %s4641_s0 = smov %s3409_s30 }
 0x53b   : > { %s4642_s30 = smov %s3413_s20  ;;  %s4643_s20 = smov %s3613_s18 }
 0x53c   : > { %s4644_s21 = smov %s3601_s27  ;;  %41 = sbr.rel (!%p39_p13) target bundleno = 25 (0x19), region = 174 }
 0x541   :  { %2676 = vsyncpa [#allocation3], 1 }
 0x542   :  { %2678 = vsyncpa [#allocation3 + $0x1], 1 }
 0x543   :  { %2679 = vsyncpa [#allocation6], 1 }
 0x544   :  { %2680 = vsyncpa [#allocation9], 1 }
 0x545   :  { %2681 = vsyncpa [#allocation12], 1 }
 0x546   :  { %2682 = vsyncpa [#allocation4], 1 }
 0x547   :  { %2684 = vsyncpa [#allocation4 + $0x1], 1 }
 0x548   :  { %2685 = vsyncpa [#allocation15], 1 }
 0x549   :  { %2687 = vsyncpa [#allocation15 + $0x1], 1 }

</bundles_post_ra>
